<compile_context>
chip_gen: v5e
topology: v5e:2x2
jax: 0.10.0
libtpu: 0.0.40
codegen_flags: <defaults>
</compile_context>

<pallas_src>
import functools

import jax
import jax.numpy as jnp
from jax.experimental import pallas as pl
from jax.experimental.pallas import tpu as pltpu

_HIGHEST = jax.lax.Precision.HIGHEST


def _erf(x):
    # Abramowitz & Stegun 7.1.26 (max abs err ~1.5e-7): keeps nn.GELU()'s exact
    # erf-GELU semantics without relying on an erf primitive lowering in Mosaic.
    a1, a2, a3, a4, a5 = (0.254829592, -0.284496736, 1.421413741,
                          -1.453152027, 1.061405429)
    p = 0.3275911
    ax = jnp.abs(x)
    t = 1.0 / (1.0 + p * ax)
    poly = ((((a5 * t + a4) * t + a3) * t + a2) * t + a1) * t
    y = 1.0 - poly * jnp.exp(-ax * ax)
    return jnp.where(x >= 0.0, y, -y)


def _gelu_exact(x):
    return 0.5 * x * (1.0 + _erf(x * 0.7071067811865476))


def _matmul(a, b):
    return jax.lax.dot_general(
        a, b, (((a.ndim - 1,), (0,)), ((), ())),
        preferred_element_type=jnp.float32, precision=_HIGHEST)


def _layer_norm(v, w, b, eps):
    mu = jnp.mean(v, axis=-1, keepdims=True)
    c = v - mu
    var = jnp.mean(c * c, axis=-1, keepdims=True)
    return c * jax.lax.rsqrt(var + eps) * w + b


def _transformer_block_kernel(
        x_ref, mrow_ref, mcol_ref,
        ln1w_ref, ln1b_ref,
        wq_ref, bq_ref, wk_ref, bk_ref, wv_ref, bv_ref, wo_ref, bo_ref,
        ln2w_ref, ln2b_ref,
        w1_ref, b1_ref, w2_ref, b2_ref,
        o_ref, *, num_heads, eps):
    f32 = jnp.float32
    x = x_ref[0].astype(f32)                      # (N, D)
    n, d = x.shape
    hd = d // num_heads
    scale = float(hd) ** -0.5

    mrow = mrow_ref[0].astype(f32)                # (1, N)
    mcol = mcol_ref[0].astype(f32)                # (N, 1)
    mask2d = mcol * mrow                          # (N, N)  == mask_h * mask_w

    # ---- norm1 + multi-head attention ----
    y = _layer_norm(x, ln1w_ref[...].astype(f32), ln1b_ref[...].astype(f32), eps)

    q = _matmul(y, wq_ref[...].astype(f32)) + bq_ref[...].astype(f32)
    k = _matmul(y, wk_ref[...].astype(f32)) + bk_ref[...].astype(f32)
    v = _matmul(y, wv_ref[...].astype(f32)) + bv_ref[...].astype(f32)
    wo = wo_ref[...].astype(f32)                  # (D, D)

    attn_proj = jnp.zeros((n, d), f32)
    for h in range(num_heads):
        sl = slice(h * hd, (h + 1) * hd)
        qh, kh, vh = q[:, sl], k[:, sl], v[:, sl]
        # scores = qh @ kh^T  (contract head dims -> no explicit transpose)
        s = jax.lax.dot_general(qh, kh, (((1,), (1,)), ((), ())),
                                preferred_element_type=f32,
                                precision=_HIGHEST) * scale          # (N, N)
        s = jnp.where(mask2d == 0.0, jnp.float32(-1000.0), s)
        s = s - jnp.max(s, axis=-1, keepdims=True)
        e = jnp.exp(s)
        p = e / jnp.sum(e, axis=-1, keepdims=True)
        oh = _matmul(p, vh)                                          # (N, hd)
        # Fold this head's slice of the output projection in directly
        # (== concat(heads) @ Wo, without a lane-dim concatenate).
        attn_proj = attn_proj + _matmul(oh, wo[sl, :])
    attn_proj = attn_proj + bo_ref[...].astype(f32)

    x1 = x + attn_proj                            # residual 1 (DropPath=Identity)

    # ---- norm2 + MLP ----
    z = _layer_norm(x1, ln2w_ref[...].astype(f32), ln2b_ref[...].astype(f32), eps)
    h1 = _matmul(z, w1_ref[...].astype(f32)) + b1_ref[...].astype(f32)
    h1 = _gelu_exact(h1)
    h2 = _matmul(h1, w2_ref[...].astype(f32)) + b2_ref[...].astype(f32)

    o_ref[0] = (x1 + h2).astype(o_ref.dtype)      # residual 2


def transformer_block(x, inputs_masks, params, *, num_heads, eps=1e-6):
    """x: (B, N, D) float; inputs_masks: (B, N) 0/1; params: dict of (in, out) weights."""
    B, N, D = x.shape
    M = params["w1"].shape[1]
    assert D % num_heads == 0

    mask = inputs_masks.astype(x.dtype)
    mask_row = mask.reshape(B, 1, N)
    mask_col = mask.reshape(B, N, 1)

    def batch3(shape):
        return pl.BlockSpec(shape, lambda b: (b, 0, 0))

    def full2(shape):
        return pl.BlockSpec(shape, lambda b: (0, 0))

    kernel = functools.partial(_transformer_block_kernel,
                               num_heads=num_heads, eps=eps)

    return pl.pallas_call(
        kernel,
        out_shape=jax.ShapeDtypeStruct((B, N, D), x.dtype),
        grid_spec=pltpu.PrefetchScalarGridSpec(
            num_scalar_prefetch=0,
            grid=(B,),
            in_specs=[
                batch3((1, N, D)),                       # x
                batch3((1, 1, N)),                       # mask, row layout
                batch3((1, N, 1)),                       # mask, col layout
                full2((1, D)), full2((1, D)),            # ln1 w, b
                full2((D, D)), full2((1, D)),            # wq, bq
                full2((D, D)), full2((1, D)),            # wk, bk
                full2((D, D)), full2((1, D)),            # wv, bv
                full2((D, D)), full2((1, D)),            # wo, bo
                full2((1, D)), full2((1, D)),            # ln2 w, b
                full2((D, M)), full2((1, M)),            # fc1 w, b
                full2((M, D)), full2((1, D)),            # fc2 w, b
            ],
            out_specs=batch3((1, N, D)),
        ),
        compiler_params=pltpu.CompilerParams(
            dimension_semantics=("parallel",),
        ),
    )(x, mask_row, mask_col,
      params["ln1_w"], params["ln1_b"],
      params["wq"], params["bq"],
      params["wk"], params["bk"],
      params["wv"], params["bv"],
      params["wo"], params["bo"],
      params["ln2_w"], params["ln2_b"],
      params["w1"], params["b1"],
      params["w2"], params["b2"])


def transformer_block_ref(x, inputs_masks, params, *, num_heads, eps=1e-6):
    """Pure-JAX reference mirroring the PyTorch TransformerBlock (eval mode)."""
    f32 = jnp.float32
    x = x.astype(f32)
    B, N, D = x.shape
    hd = D // num_heads
    mask = inputs_masks.astype(f32)

    def ln(v, w, b):
        mu = jnp.mean(v, -1, keepdims=True)
        var = jnp.mean((v - mu) ** 2, -1, keepdims=True)
        return (v - mu) * jax.lax.rsqrt(var + eps) * w + b

    y = ln(x, params["ln1_w"], params["ln1_b"])
    q = jnp.einsum("bnd,de->bne", y, params["wq"], precision=_HIGHEST) + params["bq"]
    k = jnp.einsum("bnd,de->bne", y, params["wk"], precision=_HIGHEST) + params["bk"]
    v = jnp.einsum("bnd,de->bne", y, params["wv"], precision=_HIGHEST) + params["bv"]
    q = q.reshape(B, N, num_heads, hd).transpose(0, 2, 1, 3)
    k = k.reshape(B, N, num_heads, hd).transpose(0, 2, 1, 3)
    v = v.reshape(B, N, num_heads, hd).transpose(0, 2, 1, 3)
    attn = jnp.einsum("bhqd,bhkd->bhqk", q, k, precision=_HIGHEST) * (hd ** -0.5)
    mask2d = mask.reshape(B, 1, N, 1) * mask.reshape(B, 1, 1, N)
    attn = jnp.where(mask2d == 0, -1000.0, attn)
    attn = jax.nn.softmax(attn, axis=-1)
    o = jnp.einsum("bhqk,bhkd->bhqd", attn, v, precision=_HIGHEST)
    o = o.transpose(0, 2, 1, 3).reshape(B, N, D)
    o = jnp.einsum("bnd,de->bne", o, params["wo"], precision=_HIGHEST) + params["bo"]
    x1 = x + o
    z = ln(x1, params["ln2_w"], params["ln2_b"])
    h = jnp.einsum("bnd,dm->bnm", z, params["w1"], precision=_HIGHEST) + params["b1"]
    h = jax.nn.gelu(h, approximate=False)
    h = jnp.einsum("bnm,md->bnd", h, params["w2"], precision=_HIGHEST) + params["b2"]
    return x1 + h


if __name__ == "__main__":
    # Small shapes consistent with the module: dim=128, mlp_dim=256, heads=4,
    # batch=2, seq=16 (lane-dense D, sublane-aligned N).
    B, N, D, M, H = 2, 16, 128, 256, 4

    key = jax.random.PRNGKey(0)
    ks = jax.random.split(key, 18)

    def rnd(k, shape, std=0.05):
        return std * jax.random.normal(k, shape, dtype=jnp.float32)

    params = {
        "ln1_w": 1.0 + rnd(ks[0], (1, D), 0.1),
        "ln1_b": rnd(ks[1], (1, D), 0.1),
        "wq": rnd(ks[2], (D, D)), "bq": rnd(ks[3], (1, D)),
        "wk": rnd(ks[4], (D, D)), "bk": rnd(ks[5], (1, D)),
        "wv": rnd(ks[6], (D, D)), "bv": rnd(ks[7], (1, D)),
        "wo": rnd(ks[8], (D, D)), "bo": rnd(ks[9], (1, D)),
        "ln2_w": 1.0 + rnd(ks[10], (1, D), 0.1),
        "ln2_b": rnd(ks[11], (1, D), 0.1),
        "w1": rnd(ks[12], (D, M)), "b1": rnd(ks[13], (1, M)),
        "w2": rnd(ks[14], (M, D)), "b2": rnd(ks[15], (1, D)),
    }

    x = jax.random.normal(ks[16], (B, N, D), dtype=jnp.float32)
    lengths = jnp.array([N, N - 5], dtype=jnp.int32)       # 2nd row has 5 masked tokens
    inputs_masks = (jnp.arange(N)[None, :] < lengths[:, None]).astype(jnp.float32)

    out = transformer_block(x, inputs_masks, params, num_heads=H)
    out = jax.block_until_ready(out)

    ref = transformer_block_ref(x, inputs_masks, params, num_heads=H)
    assert out.shape == (B, N, D)
    max_err = float(jnp.max(jnp.abs(out - ref)))
    assert jnp.allclose(out, ref, atol=1e-3, rtol=1e-3), f"mismatch vs reference: {max_err}"

    print("KERNEL_OK")
</pallas_src>

<mosaic_0001>
module attributes {stable_mosaic.version = 11 : i64} {
  func.func @_transformer_block_kernel(%arg0: i32, %arg1: memref<1x16x128xf32, #tpu.memory_space<vmem>>, %arg2: memref<1x1x16xf32, #tpu.memory_space<vmem>>, %arg3: memref<1x16x1xf32, #tpu.memory_space<vmem>>, %arg4: memref<1x128xf32, #tpu.memory_space<vmem>>, %arg5: memref<1x128xf32, #tpu.memory_space<vmem>>, %arg6: memref<128x128xf32, #tpu.memory_space<vmem>>, %arg7: memref<1x128xf32, #tpu.memory_space<vmem>>, %arg8: memref<128x128xf32, #tpu.memory_space<vmem>>, %arg9: memref<1x128xf32, #tpu.memory_space<vmem>>, %arg10: memref<128x128xf32, #tpu.memory_space<vmem>>, %arg11: memref<1x128xf32, #tpu.memory_space<vmem>>, %arg12: memref<128x128xf32, #tpu.memory_space<vmem>>, %arg13: memref<1x128xf32, #tpu.memory_space<vmem>>, %arg14: memref<1x128xf32, #tpu.memory_space<vmem>>, %arg15: memref<1x128xf32, #tpu.memory_space<vmem>>, %arg16: memref<128x256xf32, #tpu.memory_space<vmem>>, %arg17: memref<1x256xf32, #tpu.memory_space<vmem>>, %arg18: memref<256x128xf32, #tpu.memory_space<vmem>>, %arg19: memref<1x128xf32, #tpu.memory_space<vmem>>, %arg20: memref<1x16x128xf32, #tpu.memory_space<vmem>>) attributes {dimension_semantics = [#tpu.dimension_semantics<parallel>], iteration_bounds = array<i64: 2>, scalar_prefetch = 0 : i64, scratch_operands = 0 : i64, tpu.core_type = #tpu.core_type<tc>, window_params = [{transform_indices = @transform_0, window_bounds = array<i64: 1, 16, 128>}, {transform_indices = @transform_1, window_bounds = array<i64: 1, 1, 16>}, {transform_indices = @transform_2, window_bounds = array<i64: 1, 16, 1>}, {pipeline_mode = #tpu.pipeline_mode<synchronous>, transform_indices = @transform_3, window_bounds = array<i64: 1, 128>}, {pipeline_mode = #tpu.pipeline_mode<synchronous>, transform_indices = @transform_4, window_bounds = array<i64: 1, 128>}, {pipeline_mode = #tpu.pipeline_mode<synchronous>, transform_indices = @transform_5, window_bounds = array<i64: 128, 128>}, {pipeline_mode = #tpu.pipeline_mode<synchronous>, transform_indices = @transform_6, window_bounds = array<i64: 1, 128>}, {pipeline_mode = #tpu.pipeline_mode<synchronous>, transform_indices = @transform_7, window_bounds = array<i64: 128, 128>}, {pipeline_mode = #tpu.pipeline_mode<synchronous>, transform_indices = @transform_8, window_bounds = array<i64: 1, 128>}, {pipeline_mode = #tpu.pipeline_mode<synchronous>, transform_indices = @transform_9, window_bounds = array<i64: 128, 128>}, {pipeline_mode = #tpu.pipeline_mode<synchronous>, transform_indices = @transform_10, window_bounds = array<i64: 1, 128>}, {pipeline_mode = #tpu.pipeline_mode<synchronous>, transform_indices = @transform_11, window_bounds = array<i64: 128, 128>}, {pipeline_mode = #tpu.pipeline_mode<synchronous>, transform_indices = @transform_12, window_bounds = array<i64: 1, 128>}, {pipeline_mode = #tpu.pipeline_mode<synchronous>, transform_indices = @transform_13, window_bounds = array<i64: 1, 128>}, {pipeline_mode = #tpu.pipeline_mode<synchronous>, transform_indices = @transform_14, window_bounds = array<i64: 1, 128>}, {pipeline_mode = #tpu.pipeline_mode<synchronous>, transform_indices = @transform_15, window_bounds = array<i64: 128, 256>}, {pipeline_mode = #tpu.pipeline_mode<synchronous>, transform_indices = @transform_16, window_bounds = array<i64: 1, 256>}, {pipeline_mode = #tpu.pipeline_mode<synchronous>, transform_indices = @transform_17, window_bounds = array<i64: 256, 128>}, {pipeline_mode = #tpu.pipeline_mode<synchronous>, transform_indices = @transform_18, window_bounds = array<i64: 1, 128>}, {transform_indices = @transform_19, window_bounds = array<i64: 1, 16, 128>}]} {
    %c0 = arith.constant 0 : index
    %c0_0 = arith.constant 0 : index
    %c0_1 = arith.constant 0 : index
    %0 = vector.load %arg1[%c0, %c0_0, %c0_1] : memref<1x16x128xf32, #tpu.memory_space<vmem>>, vector<1x16x128xf32>
    %1 = vector.shape_cast %0 : vector<1x16x128xf32> to vector<16x128xf32>
    %c0_2 = arith.constant 0 : index
    %c0_3 = arith.constant 0 : index
    %c0_4 = arith.constant 0 : index
    %2 = vector.load %arg2[%c0_2, %c0_3, %c0_4] : memref<1x1x16xf32, #tpu.memory_space<vmem>>, vector<1x1x16xf32>
    %3 = vector.shape_cast %2 : vector<1x1x16xf32> to vector<1x16xf32>
    %c0_5 = arith.constant 0 : index
    %c0_6 = arith.constant 0 : index
    %c0_7 = arith.constant 0 : index
    %4 = vector.load %arg3[%c0_5, %c0_6, %c0_7] : memref<1x16x1xf32, #tpu.memory_space<vmem>>, vector<1x16x1xf32>
    %5 = vector.shape_cast %4 : vector<1x16x1xf32> to vector<16x1xf32>
    %6 = vector.broadcast %5 : vector<16x1xf32> to vector<16x16xf32>
    %7 = vector.broadcast %3 : vector<1x16xf32> to vector<16x16xf32>
    %8 = arith.mulf %6, %7 : vector<16x16xf32>
    %c0_8 = arith.constant 0 : index
    %c0_9 = arith.constant 0 : index
    %9 = vector.load %arg4[%c0_8, %c0_9] : memref<1x128xf32, #tpu.memory_space<vmem>>, vector<1x128xf32>
    %c0_10 = arith.constant 0 : index
    %c0_11 = arith.constant 0 : index
    %10 = vector.load %arg5[%c0_10, %c0_11] : memref<1x128xf32, #tpu.memory_space<vmem>>, vector<1x128xf32>
    %cst = arith.constant dense<0.000000e+00> : vector<16xf32>
    %11 = vector.multi_reduction <add>, %1, %cst [1] : vector<16x128xf32> to vector<16xf32>
    %12 = vector.shape_cast %11 : vector<16xf32> to vector<16x1xf32>
    %cst_12 = arith.constant 1.280000e+02 : f32
    %13 = vector.broadcast %cst_12 : f32 to vector<16x1xf32>
    %14 = arith.divf %12, %13 : vector<16x1xf32>
    %15 = vector.broadcast %14 : vector<16x1xf32> to vector<16x128xf32>
    %16 = arith.subf %1, %15 : vector<16x128xf32>
    %17 = arith.mulf %16, %16 : vector<16x128xf32>
    %cst_13 = arith.constant dense<0.000000e+00> : vector<16xf32>
    %18 = vector.multi_reduction <add>, %17, %cst_13 [1] : vector<16x128xf32> to vector<16xf32>
    %19 = vector.shape_cast %18 : vector<16xf32> to vector<16x1xf32>
    %cst_14 = arith.constant 1.280000e+02 : f32
    %20 = vector.broadcast %cst_14 : f32 to vector<16x1xf32>
    %21 = arith.divf %19, %20 : vector<16x1xf32>
    %cst_15 = arith.constant 9.99999997E-7 : f32
    %22 = vector.broadcast %cst_15 : f32 to vector<16x1xf32>
    %23 = arith.addf %21, %22 : vector<16x1xf32>
    %24 = math.rsqrt %23 : vector<16x1xf32>
    %25 = vector.broadcast %24 : vector<16x1xf32> to vector<16x128xf32>
    %26 = arith.mulf %16, %25 : vector<16x128xf32>
    %27 = vector.broadcast %9 : vector<1x128xf32> to vector<16x128xf32>
    %28 = arith.mulf %26, %27 : vector<16x128xf32>
    %29 = vector.broadcast %10 : vector<1x128xf32> to vector<16x128xf32>
    %30 = arith.addf %28, %29 : vector<16x128xf32>
    %c0_16 = arith.constant 0 : index
    %c0_17 = arith.constant 0 : index
    %31 = vector.load %arg6[%c0_16, %c0_17] : memref<128x128xf32, #tpu.memory_space<vmem>>, vector<128x128xf32>
    %cst_18 = arith.constant dense<0.000000e+00> : vector<16x128xf32>
    %32 = tpu.matmul %30, %31, %cst_18 {dimension_numbers = #tpu.dot_dimension_numbers<[1], [0], [0], [1], [0, 0, 1, 1], [], []>, precision = #tpu.contract_precision<fp32>} : vector<16x128xf32>, vector<128x128xf32>, vector<16x128xf32> -> vector<16x128xf32>
    %c0_19 = arith.constant 0 : index
    %c0_20 = arith.constant 0 : index
    %33 = vector.load %arg7[%c0_19, %c0_20] : memref<1x128xf32, #tpu.memory_space<vmem>>, vector<1x128xf32>
    %34 = vector.broadcast %33 : vector<1x128xf32> to vector<16x128xf32>
    %35 = arith.addf %32, %34 : vector<16x128xf32>
    %c0_21 = arith.constant 0 : index
    %c0_22 = arith.constant 0 : index
    %36 = vector.load %arg8[%c0_21, %c0_22] : memref<128x128xf32, #tpu.memory_space<vmem>>, vector<128x128xf32>
    %cst_23 = arith.constant dense<0.000000e+00> : vector<16x128xf32>
    %37 = tpu.matmul %30, %36, %cst_23 {dimension_numbers = #tpu.dot_dimension_numbers<[1], [0], [0], [1], [0, 0, 1, 1], [], []>, precision = #tpu.contract_precision<fp32>} : vector<16x128xf32>, vector<128x128xf32>, vector<16x128xf32> -> vector<16x128xf32>
    %c0_24 = arith.constant 0 : index
    %c0_25 = arith.constant 0 : index
    %38 = vector.load %arg9[%c0_24, %c0_25] : memref<1x128xf32, #tpu.memory_space<vmem>>, vector<1x128xf32>
    %39 = vector.broadcast %38 : vector<1x128xf32> to vector<16x128xf32>
    %40 = arith.addf %37, %39 : vector<16x128xf32>
    %c0_26 = arith.constant 0 : index
    %c0_27 = arith.constant 0 : index
    %41 = vector.load %arg10[%c0_26, %c0_27] : memref<128x128xf32, #tpu.memory_space<vmem>>, vector<128x128xf32>
    %cst_28 = arith.constant dense<0.000000e+00> : vector<16x128xf32>
    %42 = tpu.matmul %30, %41, %cst_28 {dimension_numbers = #tpu.dot_dimension_numbers<[1], [0], [0], [1], [0, 0, 1, 1], [], []>, precision = #tpu.contract_precision<fp32>} : vector<16x128xf32>, vector<128x128xf32>, vector<16x128xf32> -> vector<16x128xf32>
    %c0_29 = arith.constant 0 : index
    %c0_30 = arith.constant 0 : index
    %43 = vector.load %arg11[%c0_29, %c0_30] : memref<1x128xf32, #tpu.memory_space<vmem>>, vector<1x128xf32>
    %44 = vector.broadcast %43 : vector<1x128xf32> to vector<16x128xf32>
    %45 = arith.addf %42, %44 : vector<16x128xf32>
    %c0_31 = arith.constant 0 : index
    %c0_32 = arith.constant 0 : index
    %46 = vector.load %arg12[%c0_31, %c0_32] : memref<128x128xf32, #tpu.memory_space<vmem>>, vector<128x128xf32>
    %cst_33 = arith.constant 0.000000e+00 : f32
    %47 = vector.broadcast %cst_33 : f32 to vector<16x128xf32>
    %48 = vector.extract_strided_slice %35 {offsets = [0, 0], sizes = [16, 32], strides = [1, 1]} : vector<16x128xf32> to vector<16x32xf32>
    %49 = vector.extract_strided_slice %40 {offsets = [0, 0], sizes = [16, 32], strides = [1, 1]} : vector<16x128xf32> to vector<16x32xf32>
    %50 = vector.extract_strided_slice %45 {offsets = [0, 0], sizes = [16, 32], strides = [1, 1]} : vector<16x128xf32> to vector<16x32xf32>
    %cst_34 = arith.constant dense<0.000000e+00> : vector<16x16xf32>
    %51 = tpu.matmul %48, %49, %cst_34 {dimension_numbers = #tpu.dot_dimension_numbers<[1], [1], [0], [0], [0, 0, 1, 0], [], []>, precision = #tpu.contract_precision<fp32>} : vector<16x32xf32>, vector<16x32xf32>, vector<16x16xf32> -> vector<16x16xf32>
    %cst_35 = arith.constant 0.176776692 : f32
    %52 = vector.broadcast %cst_35 : f32 to vector<16x16xf32>
    %53 = arith.mulf %51, %52 : vector<16x16xf32>
    %cst_36 = arith.constant 0.000000e+00 : f32
    %54 = vector.broadcast %cst_36 : f32 to vector<16x16xf32>
    %55 = arith.cmpf oeq, %8, %54 : vector<16x16xf32>
    %cst_37 = arith.constant -1.000000e+03 : f32
    %56 = vector.broadcast %cst_37 : f32 to vector<16x16xf32>
    %57 = arith.select %55, %56, %53 : vector<16x16xi1>, vector<16x16xf32>
    %cst_38 = arith.constant dense<0xFF800000> : vector<16xf32>
    %58 = vector.multi_reduction <maximumf>, %57, %cst_38 [1] : vector<16x16xf32> to vector<16xf32>
    %59 = vector.shape_cast %58 : vector<16xf32> to vector<16x1xf32>
    %60 = vector.broadcast %59 : vector<16x1xf32> to vector<16x16xf32>
    %61 = arith.subf %57, %60 : vector<16x16xf32>
    %62 = math.exp %61 : vector<16x16xf32>
    %cst_39 = arith.constant dense<0.000000e+00> : vector<16xf32>
    %63 = vector.multi_reduction <add>, %62, %cst_39 [1] : vector<16x16xf32> to vector<16xf32>
    %64 = vector.shape_cast %63 : vector<16xf32> to vector<16x1xf32>
    %65 = vector.broadcast %64 : vector<16x1xf32> to vector<16x16xf32>
    %66 = arith.divf %62, %65 : vector<16x16xf32>
    %cst_40 = arith.constant dense<0.000000e+00> : vector<16x32xf32>
    %67 = tpu.matmul %66, %50, %cst_40 {dimension_numbers = #tpu.dot_dimension_numbers<[1], [0], [0], [1], [0, 0, 1, 1], [], []>, precision = #tpu.contract_precision<fp32>} : vector<16x16xf32>, vector<16x32xf32>, vector<16x32xf32> -> vector<16x32xf32>
    %68 = vector.extract_strided_slice %46 {offsets = [0, 0], sizes = [32, 128], strides = [1, 1]} : vector<128x128xf32> to vector<32x128xf32>
    %cst_41 = arith.constant dense<0.000000e+00> : vector<16x128xf32>
    %69 = tpu.matmul %67, %68, %cst_41 {dimension_numbers = #tpu.dot_dimension_numbers<[1], [0], [0], [1], [0, 0, 1, 1], [], []>, precision = #tpu.contract_precision<fp32>} : vector<16x32xf32>, vector<32x128xf32>, vector<16x128xf32> -> vector<16x128xf32>
    %70 = arith.addf %47, %69 : vector<16x128xf32>
    %71 = vector.extract_strided_slice %35 {offsets = [0, 32], sizes = [16, 32], strides = [1, 1]} : vector<16x128xf32> to vector<16x32xf32>
    %72 = vector.extract_strided_slice %40 {offsets = [0, 32], sizes = [16, 32], strides = [1, 1]} : vector<16x128xf32> to vector<16x32xf32>
    %73 = vector.extract_strided_slice %45 {offsets = [0, 32], sizes = [16, 32], strides = [1, 1]} : vector<16x128xf32> to vector<16x32xf32>
    %cst_42 = arith.constant dense<0.000000e+00> : vector<16x16xf32>
    %74 = tpu.matmul %71, %72, %cst_42 {dimension_numbers = #tpu.dot_dimension_numbers<[1], [1], [0], [0], [0, 0, 1, 0], [], []>, precision = #tpu.contract_precision<fp32>} : vector<16x32xf32>, vector<16x32xf32>, vector<16x16xf32> -> vector<16x16xf32>
    %cst_43 = arith.constant 0.176776692 : f32
    %75 = vector.broadcast %cst_43 : f32 to vector<16x16xf32>
    %76 = arith.mulf %74, %75 : vector<16x16xf32>
    %cst_44 = arith.constant 0.000000e+00 : f32
    %77 = vector.broadcast %cst_44 : f32 to vector<16x16xf32>
    %78 = arith.cmpf oeq, %8, %77 : vector<16x16xf32>
    %cst_45 = arith.constant -1.000000e+03 : f32
    %79 = vector.broadcast %cst_45 : f32 to vector<16x16xf32>
    %80 = arith.select %78, %79, %76 : vector<16x16xi1>, vector<16x16xf32>
    %cst_46 = arith.constant dense<0xFF800000> : vector<16xf32>
    %81 = vector.multi_reduction <maximumf>, %80, %cst_46 [1] : vector<16x16xf32> to vector<16xf32>
    %82 = vector.shape_cast %81 : vector<16xf32> to vector<16x1xf32>
    %83 = vector.broadcast %82 : vector<16x1xf32> to vector<16x16xf32>
    %84 = arith.subf %80, %83 : vector<16x16xf32>
    %85 = math.exp %84 : vector<16x16xf32>
    %cst_47 = arith.constant dense<0.000000e+00> : vector<16xf32>
    %86 = vector.multi_reduction <add>, %85, %cst_47 [1] : vector<16x16xf32> to vector<16xf32>
    %87 = vector.shape_cast %86 : vector<16xf32> to vector<16x1xf32>
    %88 = vector.broadcast %87 : vector<16x1xf32> to vector<16x16xf32>
    %89 = arith.divf %85, %88 : vector<16x16xf32>
    %cst_48 = arith.constant dense<0.000000e+00> : vector<16x32xf32>
    %90 = tpu.matmul %89, %73, %cst_48 {dimension_numbers = #tpu.dot_dimension_numbers<[1], [0], [0], [1], [0, 0, 1, 1], [], []>, precision = #tpu.contract_precision<fp32>} : vector<16x16xf32>, vector<16x32xf32>, vector<16x32xf32> -> vector<16x32xf32>
    %91 = vector.extract_strided_slice %46 {offsets = [32, 0], sizes = [32, 128], strides = [1, 1]} : vector<128x128xf32> to vector<32x128xf32>
    %cst_49 = arith.constant dense<0.000000e+00> : vector<16x128xf32>
    %92 = tpu.matmul %90, %91, %cst_49 {dimension_numbers = #tpu.dot_dimension_numbers<[1], [0], [0], [1], [0, 0, 1, 1], [], []>, precision = #tpu.contract_precision<fp32>} : vector<16x32xf32>, vector<32x128xf32>, vector<16x128xf32> -> vector<16x128xf32>
    %93 = arith.addf %70, %92 : vector<16x128xf32>
    %94 = vector.extract_strided_slice %35 {offsets = [0, 64], sizes = [16, 32], strides = [1, 1]} : vector<16x128xf32> to vector<16x32xf32>
    %95 = vector.extract_strided_slice %40 {offsets = [0, 64], sizes = [16, 32], strides = [1, 1]} : vector<16x128xf32> to vector<16x32xf32>
    %96 = vector.extract_strided_slice %45 {offsets = [0, 64], sizes = [16, 32], strides = [1, 1]} : vector<16x128xf32> to vector<16x32xf32>
    %cst_50 = arith.constant dense<0.000000e+00> : vector<16x16xf32>
    %97 = tpu.matmul %94, %95, %cst_50 {dimension_numbers = #tpu.dot_dimension_numbers<[1], [1], [0], [0], [0, 0, 1, 0], [], []>, precision = #tpu.contract_precision<fp32>} : vector<16x32xf32>, vector<16x32xf32>, vector<16x16xf32> -> vector<16x16xf32>
    %cst_51 = arith.constant 0.176776692 : f32
    %98 = vector.broadcast %cst_51 : f32 to vector<16x16xf32>
    %99 = arith.mulf %97, %98 : vector<16x16xf32>
    %cst_52 = arith.constant 0.000000e+00 : f32
    %100 = vector.broadcast %cst_52 : f32 to vector<16x16xf32>
    %101 = arith.cmpf oeq, %8, %100 : vector<16x16xf32>
    %cst_53 = arith.constant -1.000000e+03 : f32
    %102 = vector.broadcast %cst_53 : f32 to vector<16x16xf32>
    %103 = arith.select %101, %102, %99 : vector<16x16xi1>, vector<16x16xf32>
    %cst_54 = arith.constant dense<0xFF800000> : vector<16xf32>
    %104 = vector.multi_reduction <maximumf>, %103, %cst_54 [1] : vector<16x16xf32> to vector<16xf32>
    %105 = vector.shape_cast %104 : vector<16xf32> to vector<16x1xf32>
    %106 = vector.broadcast %105 : vector<16x1xf32> to vector<16x16xf32>
    %107 = arith.subf %103, %106 : vector<16x16xf32>
    %108 = math.exp %107 : vector<16x16xf32>
    %cst_55 = arith.constant dense<0.000000e+00> : vector<16xf32>
    %109 = vector.multi_reduction <add>, %108, %cst_55 [1] : vector<16x16xf32> to vector<16xf32>
    %110 = vector.shape_cast %109 : vector<16xf32> to vector<16x1xf32>
    %111 = vector.broadcast %110 : vector<16x1xf32> to vector<16x16xf32>
    %112 = arith.divf %108, %111 : vector<16x16xf32>
    %cst_56 = arith.constant dense<0.000000e+00> : vector<16x32xf32>
    %113 = tpu.matmul %112, %96, %cst_56 {dimension_numbers = #tpu.dot_dimension_numbers<[1], [0], [0], [1], [0, 0, 1, 1], [], []>, precision = #tpu.contract_precision<fp32>} : vector<16x16xf32>, vector<16x32xf32>, vector<16x32xf32> -> vector<16x32xf32>
    %114 = vector.extract_strided_slice %46 {offsets = [64, 0], sizes = [32, 128], strides = [1, 1]} : vector<128x128xf32> to vector<32x128xf32>
    %cst_57 = arith.constant dense<0.000000e+00> : vector<16x128xf32>
    %115 = tpu.matmul %113, %114, %cst_57 {dimension_numbers = #tpu.dot_dimension_numbers<[1], [0], [0], [1], [0, 0, 1, 1], [], []>, precision = #tpu.contract_precision<fp32>} : vector<16x32xf32>, vector<32x128xf32>, vector<16x128xf32> -> vector<16x128xf32>
    %116 = arith.addf %93, %115 : vector<16x128xf32>
    %117 = vector.extract_strided_slice %35 {offsets = [0, 96], sizes = [16, 32], strides = [1, 1]} : vector<16x128xf32> to vector<16x32xf32>
    %118 = vector.extract_strided_slice %40 {offsets = [0, 96], sizes = [16, 32], strides = [1, 1]} : vector<16x128xf32> to vector<16x32xf32>
    %119 = vector.extract_strided_slice %45 {offsets = [0, 96], sizes = [16, 32], strides = [1, 1]} : vector<16x128xf32> to vector<16x32xf32>
    %cst_58 = arith.constant dense<0.000000e+00> : vector<16x16xf32>
    %120 = tpu.matmul %117, %118, %cst_58 {dimension_numbers = #tpu.dot_dimension_numbers<[1], [1], [0], [0], [0, 0, 1, 0], [], []>, precision = #tpu.contract_precision<fp32>} : vector<16x32xf32>, vector<16x32xf32>, vector<16x16xf32> -> vector<16x16xf32>
    %cst_59 = arith.constant 0.176776692 : f32
    %121 = vector.broadcast %cst_59 : f32 to vector<16x16xf32>
    %122 = arith.mulf %120, %121 : vector<16x16xf32>
    %cst_60 = arith.constant 0.000000e+00 : f32
    %123 = vector.broadcast %cst_60 : f32 to vector<16x16xf32>
    %124 = arith.cmpf oeq, %8, %123 : vector<16x16xf32>
    %cst_61 = arith.constant -1.000000e+03 : f32
    %125 = vector.broadcast %cst_61 : f32 to vector<16x16xf32>
    %126 = arith.select %124, %125, %122 : vector<16x16xi1>, vector<16x16xf32>
    %cst_62 = arith.constant dense<0xFF800000> : vector<16xf32>
    %127 = vector.multi_reduction <maximumf>, %126, %cst_62 [1] : vector<16x16xf32> to vector<16xf32>
    %128 = vector.shape_cast %127 : vector<16xf32> to vector<16x1xf32>
    %129 = vector.broadcast %128 : vector<16x1xf32> to vector<16x16xf32>
    %130 = arith.subf %126, %129 : vector<16x16xf32>
    %131 = math.exp %130 : vector<16x16xf32>
    %cst_63 = arith.constant dense<0.000000e+00> : vector<16xf32>
    %132 = vector.multi_reduction <add>, %131, %cst_63 [1] : vector<16x16xf32> to vector<16xf32>
    %133 = vector.shape_cast %132 : vector<16xf32> to vector<16x1xf32>
    %134 = vector.broadcast %133 : vector<16x1xf32> to vector<16x16xf32>
    %135 = arith.divf %131, %134 : vector<16x16xf32>
    %cst_64 = arith.constant dense<0.000000e+00> : vector<16x32xf32>
    %136 = tpu.matmul %135, %119, %cst_64 {dimension_numbers = #tpu.dot_dimension_numbers<[1], [0], [0], [1], [0, 0, 1, 1], [], []>, precision = #tpu.contract_precision<fp32>} : vector<16x16xf32>, vector<16x32xf32>, vector<16x32xf32> -> vector<16x32xf32>
    %137 = vector.extract_strided_slice %46 {offsets = [96, 0], sizes = [32, 128], strides = [1, 1]} : vector<128x128xf32> to vector<32x128xf32>
    %cst_65 = arith.constant dense<0.000000e+00> : vector<16x128xf32>
    %138 = tpu.matmul %136, %137, %cst_65 {dimension_numbers = #tpu.dot_dimension_numbers<[1], [0], [0], [1], [0, 0, 1, 1], [], []>, precision = #tpu.contract_precision<fp32>} : vector<16x32xf32>, vector<32x128xf32>, vector<16x128xf32> -> vector<16x128xf32>
    %139 = arith.addf %116, %138 : vector<16x128xf32>
    %c0_66 = arith.constant 0 : index
    %c0_67 = arith.constant 0 : index
    %140 = vector.load %arg13[%c0_66, %c0_67] : memref<1x128xf32, #tpu.memory_space<vmem>>, vector<1x128xf32>
    %141 = vector.broadcast %140 : vector<1x128xf32> to vector<16x128xf32>
    %142 = arith.addf %139, %141 : vector<16x128xf32>
    %143 = arith.addf %1, %142 : vector<16x128xf32>
    %c0_68 = arith.constant 0 : index
    %c0_69 = arith.constant 0 : index
    %144 = vector.load %arg14[%c0_68, %c0_69] : memref<1x128xf32, #tpu.memory_space<vmem>>, vector<1x128xf32>
    %c0_70 = arith.constant 0 : index
    %c0_71 = arith.constant 0 : index
    %145 = vector.load %arg15[%c0_70, %c0_71] : memref<1x128xf32, #tpu.memory_space<vmem>>, vector<1x128xf32>
    %cst_72 = arith.constant dense<0.000000e+00> : vector<16xf32>
    %146 = vector.multi_reduction <add>, %143, %cst_72 [1] : vector<16x128xf32> to vector<16xf32>
    %147 = vector.shape_cast %146 : vector<16xf32> to vector<16x1xf32>
    %cst_73 = arith.constant 1.280000e+02 : f32
    %148 = vector.broadcast %cst_73 : f32 to vector<16x1xf32>
    %149 = arith.divf %147, %148 : vector<16x1xf32>
    %150 = vector.broadcast %149 : vector<16x1xf32> to vector<16x128xf32>
    %151 = arith.subf %143, %150 : vector<16x128xf32>
    %152 = arith.mulf %151, %151 : vector<16x128xf32>
    %cst_74 = arith.constant dense<0.000000e+00> : vector<16xf32>
    %153 = vector.multi_reduction <add>, %152, %cst_74 [1] : vector<16x128xf32> to vector<16xf32>
    %154 = vector.shape_cast %153 : vector<16xf32> to vector<16x1xf32>
    %cst_75 = arith.constant 1.280000e+02 : f32
    %155 = vector.broadcast %cst_75 : f32 to vector<16x1xf32>
    %156 = arith.divf %154, %155 : vector<16x1xf32>
    %cst_76 = arith.constant 9.99999997E-7 : f32
    %157 = vector.broadcast %cst_76 : f32 to vector<16x1xf32>
    %158 = arith.addf %156, %157 : vector<16x1xf32>
    %159 = math.rsqrt %158 : vector<16x1xf32>
    %160 = vector.broadcast %159 : vector<16x1xf32> to vector<16x128xf32>
    %161 = arith.mulf %151, %160 : vector<16x128xf32>
    %162 = vector.broadcast %144 : vector<1x128xf32> to vector<16x128xf32>
    %163 = arith.mulf %161, %162 : vector<16x128xf32>
    %164 = vector.broadcast %145 : vector<1x128xf32> to vector<16x128xf32>
    %165 = arith.addf %163, %164 : vector<16x128xf32>
    %c0_77 = arith.constant 0 : index
    %c0_78 = arith.constant 0 : index
    %166 = vector.load %arg16[%c0_77, %c0_78] : memref<128x256xf32, #tpu.memory_space<vmem>>, vector<128x256xf32>
    %cst_79 = arith.constant dense<0.000000e+00> : vector<16x256xf32>
    %167 = tpu.matmul %165, %166, %cst_79 {dimension_numbers = #tpu.dot_dimension_numbers<[1], [0], [0], [1], [0, 0, 1, 1], [], []>, precision = #tpu.contract_precision<fp32>} : vector<16x128xf32>, vector<128x256xf32>, vector<16x256xf32> -> vector<16x256xf32>
    %c0_80 = arith.constant 0 : index
    %c0_81 = arith.constant 0 : index
    %168 = vector.load %arg17[%c0_80, %c0_81] : memref<1x256xf32, #tpu.memory_space<vmem>>, vector<1x256xf32>
    %169 = vector.broadcast %168 : vector<1x256xf32> to vector<16x256xf32>
    %170 = arith.addf %167, %169 : vector<16x256xf32>
    %cst_82 = arith.constant 5.000000e-01 : f32
    %171 = vector.broadcast %cst_82 : f32 to vector<16x256xf32>
    %172 = arith.mulf %171, %170 : vector<16x256xf32>
    %cst_83 = arith.constant 0.707106769 : f32
    %173 = vector.broadcast %cst_83 : f32 to vector<16x256xf32>
    %174 = arith.mulf %170, %173 : vector<16x256xf32>
    %175 = math.absf %174 : vector<16x256xf32>
    %cst_84 = arith.constant 0.327591091 : f32
    %176 = vector.broadcast %cst_84 : f32 to vector<16x256xf32>
    %177 = arith.mulf %176, %175 : vector<16x256xf32>
    %cst_85 = arith.constant 1.000000e+00 : f32
    %178 = vector.broadcast %cst_85 : f32 to vector<16x256xf32>
    %179 = arith.addf %178, %177 : vector<16x256xf32>
    %cst_86 = arith.constant 1.000000e+00 : f32
    %180 = vector.broadcast %cst_86 : f32 to vector<16x256xf32>
    %181 = arith.divf %180, %179 : vector<16x256xf32>
    %cst_87 = arith.constant 1.06140542 : f32
    %182 = vector.broadcast %cst_87 : f32 to vector<16x256xf32>
    %183 = arith.mulf %182, %181 : vector<16x256xf32>
    %cst_88 = arith.constant -1.45315206 : f32
    %184 = vector.broadcast %cst_88 : f32 to vector<16x256xf32>
    %185 = arith.addf %183, %184 : vector<16x256xf32>
    %186 = arith.mulf %185, %181 : vector<16x256xf32>
    %cst_89 = arith.constant 1.42141378 : f32
    %187 = vector.broadcast %cst_89 : f32 to vector<16x256xf32>
    %188 = arith.addf %186, %187 : vector<16x256xf32>
    %189 = arith.mulf %188, %181 : vector<16x256xf32>
    %cst_90 = arith.constant -0.284496725 : f32
    %190 = vector.broadcast %cst_90 : f32 to vector<16x256xf32>
    %191 = arith.addf %189, %190 : vector<16x256xf32>
    %192 = arith.mulf %191, %181 : vector<16x256xf32>
    %cst_91 = arith.constant 0.254829586 : f32
    %193 = vector.broadcast %cst_91 : f32 to vector<16x256xf32>
    %194 = arith.addf %192, %193 : vector<16x256xf32>
    %195 = arith.mulf %194, %181 : vector<16x256xf32>
    %cst_92 = arith.constant 0.000000e+00 : f32
    %196 = vector.broadcast %cst_92 : f32 to vector<16x256xf32>
    %197 = arith.subf %196, %175 : vector<16x256xf32>
    %198 = arith.mulf %197, %175 : vector<16x256xf32>
    %199 = math.exp %198 : vector<16x256xf32>
    %200 = arith.mulf %195, %199 : vector<16x256xf32>
    %cst_93 = arith.constant 1.000000e+00 : f32
    %201 = vector.broadcast %cst_93 : f32 to vector<16x256xf32>
    %202 = arith.subf %201, %200 : vector<16x256xf32>
    %cst_94 = arith.constant 0.000000e+00 : f32
    %203 = vector.broadcast %cst_94 : f32 to vector<16x256xf32>
    %204 = arith.cmpf oge, %174, %203 : vector<16x256xf32>
    %cst_95 = arith.constant 0.000000e+00 : f32
    %205 = vector.broadcast %cst_95 : f32 to vector<16x256xf32>
    %206 = arith.subf %205, %202 : vector<16x256xf32>
    %207 = arith.select %204, %202, %206 : vector<16x256xi1>, vector<16x256xf32>
    %cst_96 = arith.constant 1.000000e+00 : f32
    %208 = vector.broadcast %cst_96 : f32 to vector<16x256xf32>
    %209 = arith.addf %208, %207 : vector<16x256xf32>
    %210 = arith.mulf %172, %209 : vector<16x256xf32>
    %c0_97 = arith.constant 0 : index
    %c0_98 = arith.constant 0 : index
    %211 = vector.load %arg18[%c0_97, %c0_98] : memref<256x128xf32, #tpu.memory_space<vmem>>, vector<256x128xf32>
    %cst_99 = arith.constant dense<0.000000e+00> : vector<16x128xf32>
    %212 = tpu.matmul %210, %211, %cst_99 {dimension_numbers = #tpu.dot_dimension_numbers<[1], [0], [0], [1], [0, 0, 1, 1], [], []>, precision = #tpu.contract_precision<fp32>} : vector<16x256xf32>, vector<256x128xf32>, vector<16x128xf32> -> vector<16x128xf32>
    %c0_100 = arith.constant 0 : index
    %c0_101 = arith.constant 0 : index
    %213 = vector.load %arg19[%c0_100, %c0_101] : memref<1x128xf32, #tpu.memory_space<vmem>>, vector<1x128xf32>
    %214 = vector.broadcast %213 : vector<1x128xf32> to vector<16x128xf32>
    %215 = arith.addf %212, %214 : vector<16x128xf32>
    %216 = arith.addf %143, %215 : vector<16x128xf32>
    %c0_102 = arith.constant 0 : index
    %c0_103 = arith.constant 0 : index
    %c0_104 = arith.constant 0 : index
    %217 = vector.load %arg20[%c0_102, %c0_103, %c0_104] : memref<1x16x128xf32, #tpu.memory_space<vmem>>, vector<1x16x128xf32>
    %218 = vector.shape_cast %217 : vector<1x16x128xf32> to vector<16x128xf32>
    %219 = vector.shape_cast %216 : vector<16x128xf32> to vector<1x16x128xf32>
    tpu.vector_store %arg20[%c0_102, %c0_103, %c0_104], %219 {strides = array<i32>} : memref<1x16x128xf32, #tpu.memory_space<vmem>>, vector<1x16x128xf32>,
    return
  }
  func.func @transform_0(%arg0: i32) -> (i32, i32, i32) {
    %c0_i32 = arith.constant 0 : i32
    %c0_i32_0 = arith.constant 0 : i32
    %c0_i32_1 = arith.constant 0 : i32
    return %arg0, %c0_i32, %c0_i32_0 : i32, i32, i32
  }
  func.func @transform_1(%arg0: i32) -> (i32, i32, i32) {
    %c0_i32 = arith.constant 0 : i32
    %c0_i32_0 = arith.constant 0 : i32
    %c0_i32_1 = arith.constant 0 : i32
    return %arg0, %c0_i32, %c0_i32_0 : i32, i32, i32
  }
  func.func @transform_2(%arg0: i32) -> (i32, i32, i32) {
    %c0_i32 = arith.constant 0 : i32
    %c0_i32_0 = arith.constant 0 : i32
    %c0_i32_1 = arith.constant 0 : i32
    return %arg0, %c0_i32, %c0_i32_0 : i32, i32, i32
  }
  func.func @transform_3(%arg0: i32) -> (i32, i32) {
    %c0_i32 = arith.constant 0 : i32
    %c0_i32_0 = arith.constant 0 : i32
    %c0_i32_1 = arith.constant 0 : i32
    return %c0_i32, %c0_i32_0 : i32, i32
  }
  func.func @transform_4(%arg0: i32) -> (i32, i32) {
    %c0_i32 = arith.constant 0 : i32
    %c0_i32_0 = arith.constant 0 : i32
    %c0_i32_1 = arith.constant 0 : i32
    return %c0_i32, %c0_i32_0 : i32, i32
  }
  func.func @transform_5(%arg0: i32) -> (i32, i32) {
    %c0_i32 = arith.constant 0 : i32
    %c0_i32_0 = arith.constant 0 : i32
    %c0_i32_1 = arith.constant 0 : i32
    return %c0_i32, %c0_i32_0 : i32, i32
  }
  func.func @transform_6(%arg0: i32) -> (i32, i32) {
    %c0_i32 = arith.constant 0 : i32
    %c0_i32_0 = arith.constant 0 : i32
    %c0_i32_1 = arith.constant 0 : i32
    return %c0_i32, %c0_i32_0 : i32, i32
  }
  func.func @transform_7(%arg0: i32) -> (i32, i32) {
    %c0_i32 = arith.constant 0 : i32
    %c0_i32_0 = arith.constant 0 : i32
    %c0_i32_1 = arith.constant 0 : i32
    return %c0_i32, %c0_i32_0 : i32, i32
  }
  func.func @transform_8(%arg0: i32) -> (i32, i32) {
    %c0_i32 = arith.constant 0 : i32
    %c0_i32_0 = arith.constant 0 : i32
    %c0_i32_1 = arith.constant 0 : i32
    return %c0_i32, %c0_i32_0 : i32, i32
  }
  func.func @transform_9(%arg0: i32) -> (i32, i32) {
    %c0_i32 = arith.constant 0 : i32
    %c0_i32_0 = arith.constant 0 : i32
    %c0_i32_1 = arith.constant 0 : i32
    return %c0_i32, %c0_i32_0 : i32, i32
  }
  func.func @transform_10(%arg0: i32) -> (i32, i32) {
    %c0_i32 = arith.constant 0 : i32
    %c0_i32_0 = arith.constant 0 : i32
    %c0_i32_1 = arith.constant 0 : i32
    return %c0_i32, %c0_i32_0 : i32, i32
  }
  func.func @transform_11(%arg0: i32) -> (i32, i32) {
    %c0_i32 = arith.constant 0 : i32
    %c0_i32_0 = arith.constant 0 : i32
    %c0_i32_1 = arith.constant 0 : i32
    return %c0_i32, %c0_i32_0 : i32, i32
  }
  func.func @transform_12(%arg0: i32) -> (i32, i32) {
    %c0_i32 = arith.constant 0 : i32
    %c0_i32_0 = arith.constant 0 : i32
    %c0_i32_1 = arith.constant 0 : i32
    return %c0_i32, %c0_i32_0 : i32, i32
  }
  func.func @transform_13(%arg0: i32) -> (i32, i32) {
    %c0_i32 = arith.constant 0 : i32
    %c0_i32_0 = arith.constant 0 : i32
    %c0_i32_1 = arith.constant 0 : i32
    return %c0_i32, %c0_i32_0 : i32, i32
  }
  func.func @transform_14(%arg0: i32) -> (i32, i32) {
    %c0_i32 = arith.constant 0 : i32
    %c0_i32_0 = arith.constant 0 : i32
    %c0_i32_1 = arith.constant 0 : i32
    return %c0_i32, %c0_i32_0 : i32, i32
  }
  func.func @transform_15(%arg0: i32) -> (i32, i32) {
    %c0_i32 = arith.constant 0 : i32
    %c0_i32_0 = arith.constant 0 : i32
    %c0_i32_1 = arith.constant 0 : i32
    return %c0_i32, %c0_i32_0 : i32, i32
  }
  func.func @transform_16(%arg0: i32) -> (i32, i32) {
    %c0_i32 = arith.constant 0 : i32
    %c0_i32_0 = arith.constant 0 : i32
    %c0_i32_1 = arith.constant 0 : i32
    return %c0_i32, %c0_i32_0 : i32, i32
  }
  func.func @transform_17(%arg0: i32) -> (i32, i32) {
    %c0_i32 = arith.constant 0 : i32
    %c0_i32_0 = arith.constant 0 : i32
    %c0_i32_1 = arith.constant 0 : i32
    return %c0_i32, %c0_i32_0 : i32, i32
  }
  func.func @transform_18(%arg0: i32) -> (i32, i32) {
    %c0_i32 = arith.constant 0 : i32
    %c0_i32_0 = arith.constant 0 : i32
    %c0_i32_1 = arith.constant 0 : i32
    return %c0_i32, %c0_i32_0 : i32, i32
  }
  func.func @transform_19(%arg0: i32) -> (i32, i32, i32) {
    %c0_i32 = arith.constant 0 : i32
    %c0_i32_0 = arith.constant 0 : i32
    %c0_i32_1 = arith.constant 0 : i32
    return %arg0, %c0_i32, %c0_i32_0 : i32, i32, i32
  }
}

</mosaic_0001>

<bundles_post_ra>
// kernel: tpu_custom_call.1
= control target key start
LH: loop header
LB: loop body
LE: loop exit
PB: predicated region body
PF: predicated region fallthrough
CT: control target
= control target key end

     0   :  { %s9982_s0 = inlined_call_operand.vmem [shape: f32[2,16,128], index: 0, kind: input, shape index: {}]   ;;  %s9983_s1 = inlined_call_operand.vmem [shape: f32[2,1,16], index: 1, kind: input, shape index: {}]   ;;  %s9984_s2 = inlined_call_operand.vmem [shape: f32[2,16,1], index: 2, kind: input, shape index: {}]   ;;  %s9985_s3 = inlined_call_operand.hbm [shape: f32[1,128], index: 3, kind: input, shape index: {}]   ;;  %s9986_s4 = inlined_call_operand.vmem [shape: f32[1,128], index: 4, kind: input, shape index: {}]   ;;  %s9987_s5 = inlined_call_operand.hbm [shape: f32[128,128], index: 5, kind: input, shape index: {}]   ;;  %s9988_s6 = inlined_call_operand.vmem [shape: f32[1,128], index: 6, kind: input, shape index: {}]   ;;  %s9989_s7 = inlined_call_operand.hbm [shape: f32[128,128], index: 7, kind: input, shape index: {}]   ;;  %s9990_s8 = inlined_call_operand.vmem [shape: f32[1,128], index: 8, kind: input, shape index: {}]   ;;  %s9991_s9 = inlined_call_operand.hbm [shape: f32[128,128], index: 9, kind: input, shape index: {}]   ;;  %s9992_s10 = inlined_call_operand.vmem [shape: f32[1,128], index: 10, kind: input, shape index: {}]   ;;  %s9993_s11 = inlined_call_operand.hbm [shape: f32[128,128], index: 11, kind: input, shape index: {}]   ;;  %s9994_s12 = inlined_call_operand.vmem [shape: f32[1,128], index: 12, kind: input, shape index: {}]   ;;  %s9995_s13 = inlined_call_operand.vmem [shape: f32[1,128], index: 13, kind: input, shape index: {}]   ;;  %s9996_s14 = inlined_call_operand.vmem [shape: f32[1,128], index: 14, kind: input, shape index: {}]   ;;  %s9997_s15 = inlined_call_operand.hbm [shape: f32[128,256], index: 15, kind: input, shape index: {}]   ;;  %s9998_s16 = inlined_call_operand.vmem [shape: f32[1,256], index: 16, kind: input, shape index: {}]   ;;  %s9999_s17 = inlined_call_operand.hbm [shape: f32[256,128], index: 17, kind: input, shape index: {}]   ;;  %s10000_s18 = inlined_call_operand.vmem [shape: f32[1,128], index: 18, kind: input, shape index: {}]   ;;  %s10001_s19 = inlined_call_operand.hbm [shape: f32[2,16,128], index: 19, kind: output, shape index: {}]  }
   0x1   :  { %10049 = sst [smem:[#allocation32_spill]] %s9982_s0 }
   0x2   :  { %10050 = sst [smem:[#allocation33_spill]] %s9983_s1 }
   0x3   :  { %10051 = sst [smem:[#allocation34_spill]] %s9984_s2 }
   0x4   :  { %10052 = sst [smem:[#allocation35_spill]] %s9985_s3 }
   0x5   :  { %10053 = sst [smem:[#allocation36_spill]] %s9987_s5 }
   0x6   :  { %10054 = sst [smem:[#allocation37_spill]] %s9991_s9 }
   0x7   :  { %10055 = sst [smem:[#allocation38_spill]] %s9997_s15 }
   0x8   :  { %10056 = sst [smem:[#allocation39_spill]] %s10000_s18 }
   0x9   :  { %10057 = sst [smem:[#allocation40_spill]] %s10001_s19 }
   0xa   :  { %24 = vsyncpa [#allocation3], 0 }
   0xb   :  { %25 = vsyncpa [#allocation6], 0 }
   0xc   :  { %26 = vsyncpa [#allocation9], 0 }
   0xd   :  { %27 = vsyncpa [#allocation12], 0 }
   0xe   :  { %28 = vsyncpa [#allocation4], 0 }
   0xf   :  { %30 = vsyncpa [#allocation4 + $0x1], 0  ;;  %s7334_s0 = smov 0   ;;  %s7336_s30 = smov 0  }
  0x10   :  { %s7338_s20 = smov 0   ;;  %s7340_s21 = smov 0  }
  0x11 LB: > { %10058 = sst [smem:[#allocation20_spill]] %s7202_s0  ;;  %s7355_s1 = sadd.s32 4294967295, %s7214_s21   ;;  %s7214_s21 = sphi %s7340_s21, %s10122_s21   ;;  %s7210_s20 = sphi %s7338_s20, %s10125_s20   ;;  %s7206_s30 = sphi %s7336_s30, %s10124_s30   ;;  %s7202_s0 = sphi %s7334_s0, %s10123_s0  }
  0x12   : > { %10059 = sst [smem:[#allocation21_spill]] %s7206_s30  ;;  %s6702_s22 = sadd.s32 4294967294, %s7214_s21  }
  0x13   : > { %10060 = sst [smem:[#allocation22_spill]] %s7210_s20  ;;  %s7359_s2 = sadd.s32 1, %s7214_s21  }
  0x14   : > { %10061 = sst [smem:[#allocation23_spill]] %s7214_s21  ;;  %s457_s23 = sadd.s32 1, %s7210_s20 }
  0x15   : > { %10062 = sst [smem:[#allocation24_spill]] %s7359_s2  ;;  %s454_s24 = ssub.s32 %s7214_s21, %s7359_s2 }
  0x16   : > { %p467_p0 = scmp.ne.s32.totalorder %s7210_s20, %s7206_s30  ;;  %p455_p1 = scmp.eq.s32.totalorder %s454_s24, 0 }
  0x17   : > { %p468_p2 = scmp.eq.s32.totalorder %s7355_s1, 1  ;;  %p473_p3 = scmp.ne.s32.totalorder %s7206_s30, %s7202_s0 }
  0x18   : > { %p474_p4 = scmp.eq.s32.totalorder %s6702_s22, 1  ;;  %p6703_p7 = scmp.ge.s32.totalorder %s7214_s21, 1 }
  0x19   : > { %s7370_s25 = scalar_select %p455_p1, %s7210_s20, %s457_s23  }
  0x1a   : > { %p7372_p5 = por %p468_p2, %p467_p0  ;;  %p7376_p6 = por %p474_p4, %p473_p3 }
  0x1b   : > { %10063 = sst [smem:[#allocation25_spill]] %s7370_s25  ;;  %p481_p8 = scmp.lt.s32.totalorder %s7214_s21, 3 }
  0x1c   : > { %s10064_s3 = scalar_select %p7372_p5, 1, 0 }
  0x1d   : > { %s10066_s26 = scalar_select %p7376_p6, 1, 0 }
  0x1e   : > { %10065 = sst [smem:[#allocation26_spill]] %s10064_s3  ;;  %p6789_p9 = scmp.eq.s32.totalorder %s7355_s1, 0 }
  0x1f   : > { %10067 = sst [smem:[#allocation27_spill]] %s10066_s26  ;;  %p7383_p10 = pnand %p6703_p7, %p481_p8 }
  0x20   : > { %s10069_s5 = sld [smem:[#allocation36_spill]]  ;;  %s7216_s23 = smov [#allocation5]  }
  0x21   : > { %p6763_p11 = pneg %p7383_p10  ;;  %s509_s24 = sshll.u32 %s7216_s23, 4  ;;  %s510_s24 = int_to_ptr.vmem [resolvable:$true] %s509_s24 }
  0x22   : > { %s10071_s9 = sld [smem:[#allocation37_spill]]  ;;  %s7217_s28 = smov 128  }
  0x23   : > { %p7394_p12 = pnand %p6789_p9, %p6763_p11  ;;  %s7218_s29 = smov 8  }
  0x24   : > { %s7219_s23 = smov [#allocation8]   ;;  %s10072_s15 = sld [smem:[#allocation38_spill]] }
  0x25   : > { %s7220_s20 = smov [#allocation11]   ;;  %s7222_s30 = smov 16  }
  0x26   : > { %s507_s22 = sshll.u32 %s10069_s5, 4  ;;  %s543_s5 = sshll.u32 %s7219_s23, 4  ;;  %s508_s22 = int_to_ptr.hbm [resolvable:$true] %s507_s22  ;;  %s544_s5 = int_to_ptr.vmem [resolvable:$true] %s543_s5 }
  0x27   : > { %6769 = dma.hbm_to_vmem [thread:$0]  (!%p7394_p12), %s508_s22, 2048, %s510_s24, [#allocation6], %s7217_s28, %s7217_s28, %s7218_s29  }
  0x28   : > { %s541_s26 = sshll.u32 %s10071_s9, 4  ;;  %s583_s2 = sshll.u32 %s7220_s20, 4  ;;  %s542_s26 = int_to_ptr.hbm [resolvable:$true] %s541_s26  ;;  %s584_s2 = int_to_ptr.vmem [resolvable:$true] %s583_s2 }
  0x29   : > { %6775 = dma.hbm_to_vmem [thread:$0]  (!%p7394_p12), %s542_s26, 2048, %s544_s5, [#allocation9], %s7217_s28, %s7217_s28, %s7218_s29  }
  0x2a   : > { %s581_s3 = sshll.u32 %s10072_s15, 4  ;;  %s10073_s22 = sld [smem:[#allocation35_spill]]  ;;  %s582_s3 = int_to_ptr.hbm [resolvable:$true] %s581_s3 }
  0x2b   : > { %s7221_s23 = smov 256   ;;  %s7223_s0 = smov [#allocation2]  }
  0x2c   : > { %6781 = dma.hbm_to_vmem [thread:$0]  (!%p7394_p12), %s582_s3, 4096, %s584_s2, [#allocation12], %s7221_s23, %s7221_s23, %s7222_s30  }
  0x2d   : > { %s495_s21 = sshll.u32 %s7223_s0, 4  ;;  %s524_s5 = sshll.u32 %s9989_s7, 4  ;;  %s496_s21 = int_to_ptr.vmem [resolvable:$true] %s495_s21  ;;  %s525_s5 = int_to_ptr.hbm [resolvable:$true] %s524_s5 }
  0x2e   : > { %s558_s19 = sshll.u32 %s9993_s11, 4  ;;  %s7224_s20 = smov [#allocation7]   ;;  %s559_s19 = int_to_ptr.hbm [resolvable:$true] %s558_s19 }
  0x2f   : > { %s7225_s15 = smov [#allocation10]   ;;  %s598_s2 = sshll.u32 %s9999_s17, 4  ;;  %s599_s2 = int_to_ptr.hbm [resolvable:$true] %s598_s2 }
  0x30   : > { %s493_s24 = sshll.u32 %s10073_s22, 4  ;;  %s526_s22 = sshll.u32 %s7224_s20, 4  ;;  %s494_s24 = int_to_ptr.hbm [resolvable:$true] %s493_s24  ;;  %s527_s22 = int_to_ptr.vmem [resolvable:$true] %s526_s22 }
  0x31   : > { %6766 = dma.hbm_to_vmem [thread:$0]  (!%p7394_p12), %s494_s24, 16, %s496_s21, [#allocation3]  }
  0x32   : > { %6772 = dma.hbm_to_vmem [thread:$0]  (!%p7394_p12), %s525_s5, 2048, %s527_s22, [#allocation6], %s7217_s28, %s7217_s28, %s7218_s29  }
  0x33   : > { %s560_s18 = sshll.u32 %s7225_s15, 4  ;;  %s7226_s24 = smov [#allocation13]   ;;  %s561_s18 = int_to_ptr.vmem [resolvable:$true] %s560_s18 }
  0x34   : > { %6778 = dma.hbm_to_vmem [thread:$0]  (!%p7394_p12), %s559_s19, 2048, %s561_s18, [#allocation9], %s7217_s28, %s7217_s28, %s7218_s29  }
  0x35   : > { %s600_s23 = sshll.u32 %s7226_s24, 4  ;;  %641 = sbr.rel (%p7383_p10) target bundleno = 3676 (0xe5c), region = 96  ;;  %s601_s23 = int_to_ptr.vmem [resolvable:$true] %s600_s23 }
  0x36   : > { %6784 = dma.hbm_to_vmem [thread:$0]  (!%p7394_p12), %s599_s2, 4096, %s601_s23, [#allocation12], %s7217_s28, %s7217_s28, %s7218_s29  }
  0x3a   : > { %7181 = dma.done.wait (%p6789_p9), [#allocation3], 16  }
  0x3b   : > { %7183 = vsyncadd (%p6789_p9), [#allocation3], 4294967280 }
  0x3c   : > { %7185 = dma.done.wait (%p6789_p9), [#allocation6], 4096  }
  0x3d   : > { %7187 = vsyncadd (%p6789_p9), [#allocation6], 4294963200 }
  0x3e   : > { %7189 = dma.done.wait (%p6789_p9), [#allocation9], 4096  }
  0x3f   : > { %7191 = vsyncadd (%p6789_p9), [#allocation9], 4294963200 }
  0x40   : > { %7193 = dma.done.wait (%p6789_p9), [#allocation12], 8192  }
  0x41   : > { %7195 = vsyncadd (%p6789_p9), [#allocation12], 4294959104  ;;  %p736_p13 = scmp.lt.s32.totalorder %s7355_s1, 1  ;;  %s10074_s0 = sld [smem:[#allocation32_spill]]  ;;  %v7227_v2 = vmov 128.0   ;;  %v843_v5 = vld [vmem:[#allocation5 + $0x78] sm:$0xff] }
  0x42   : > { %6866 = vrcp.f32 %v7227_v2  ;;  %v842_v6 = vld [vmem:[#allocation5 + $0x70] sm:$0xff]  ;;  %v841_v7 = vld [vmem:[#allocation5 + $0x68] sm:$0xff]  ;;  %v7486_v8 = vand.u32 4294901760, %v843_v5  ;;  %v840_v11 = vld [vmem:[#allocation5 + $0x60] sm:$0xff]  ;;  %vm2020_vm7 = vcmask 261120   ;;  %s10080_s2 = sld [smem:[#allocation33_spill]] }
  0x43   : > { %s7465_s25 = scalar_select %p736_p13, %s7355_s1, 1  ;;  %v7488_v9 = vand.u32 4294901760, %v842_v6  ;;  %v7490_v10 = vand.u32 4294901760, %v841_v7  ;;  %v839_v12 = vld [vmem:[#allocation5 + $0x58] sm:$0xff]  ;;  %v838_v13 = vld [vmem:[#allocation5 + $0x50] sm:$0xff]  ;;  %v7492_v15 = vand.u32 4294901760, %v840_v11 }
  0x44   : > { %v7494_v16 = vand.u32 4294901760, %v839_v12  ;;  %v7496_v17 = vand.u32 4294901760, %v838_v13  ;;  %v837_v18 = vld [vmem:[#allocation5 + $0x48] sm:$0xff]  ;;  %v836_v19 = vld [vmem:[#allocation5 + $0x40] sm:$0xff]  ;;  %v7499_v20 = vsub.f32 %v843_v5, %v7486_v8  ;;  %1062 = vmatpush.msra.mxu3 %v7486_v8  ;;  %849 = vmatpush.msra.mxu0 %v7486_v8  ;;  %v835_v40 = vld [vmem:[#allocation5 + $0x38] sm:$0xff]  ;;  %s10081_s29 = sld [smem:[#allocation34_spill]] }
  0x45   : > { %s6730_s27 = sshll.u32 %s7465_s25, 4  ;;  %v7502_v21 = vsub.f32 %v842_v6, %v7488_v9  ;;  %v7505_v22 = vsub.f32 %v841_v7, %v7490_v10  ;;  %v7509_v23 = vand.u32 4294901760, %v837_v18  ;;  %v7512_v24 = vsub.f32 %v840_v11, %v7492_v15  ;;  %v834_v41 = vld [vmem:[#allocation5 + $0x30] sm:$0xff]  ;;  %v833_v42 = vld [vmem:[#allocation5 + $0x28] sm:$0xff]  ;;  %v832_v49 = vld [vmem:[#allocation5 + $0x20] sm:$0xff]  ;;  %s7230_s26 = smov 64  }
  0x46   : > { %v7515_v25 = vsub.f32 %v839_v12, %v7494_v16  ;;  %v7518_v26 = vsub.f32 %v838_v13, %v7496_v17  ;;  %v7520_v27 = vand.u32 4294901760, %v836_v19  ;;  %v899_v28 = vand.u32 4294901760, %v7499_v20  ;;  %1004 = vmatpush.msra.mxu2 %v7499_v20  ;;  %1064 = vmatpush.msra.mxu3 %v7488_v9  ;;  %v831_v56 = vld [vmem:[#allocation5 + $0x18] sm:$0xff]  ;;  %v830_v63 = vld [vmem:[#allocation5 + $0x10] sm:$0xff]  ;;  %v829_v7 = vld [vmem:[#allocation5 + $0x8] sm:$0xff]  ;;  %s7231_s9 = smov 32  }
  0x47   : > { %s7473_s21 = scalar_lea.vmem %s10074_s0, %s6730_s27  ;;  %v905_v29 = vand.u32 4294901760, %v7502_v21  ;;  %v911_v30 = vand.u32 4294901760, %v7505_v22  ;;  %v917_v32 = vand.u32 4294901760, %v7512_v24  ;;  %851 = vmatpush.msra.mxu0 %v7488_v9  ;;  %v7532_v34 = vsub.f32 %v837_v18, %v7509_v23  ;;  %s10113_s28 = sld [smem:[#allocation39_spill]] }
  0x48   : > { %v7476_v0 = vld [vmem:[%s7473_s21] sm:$0xff]  ;;  %v7480_v1 = vld [vmem:[%s7473_s21 + $0x8] sm:$0xff]  ;;  %v7483_v3 = vpop.eup %6866  ;;  %v923_v33 = vand.u32 4294901760, %v7515_v25  ;;  %v900_v35 = vsub.f32 %v7499_v20, %v899_v28  ;;  %1007 = vmatpush.msra.mxu2 %v7502_v21  ;;  %1066 = vmatpush.msra.mxu3 %v7490_v10  ;;  %v929_v38 = vand.u32 4294901760, %v7518_v26  ;;  %v7548_v39 = vsub.f32 %v836_v19, %v7520_v27  ;;  %s743_s24 = scalar_lea.vmem %s10080_s2, %s7465_s25  ;;  %s7229_s25 = smov 96  }
  0x49   : > { %771 = vadd.xlane.f32.xlu0 %v7476_v0  ;;  %v776_v4 = vmul.f32 128.0, %v7483_v3  ;;  %v906_v36 = vsub.f32 %v7502_v21, %v905_v29  ;;  %v912_v37 = vsub.f32 %v7505_v22, %v911_v30  ;;  %853 = vmatpush.msra.mxu0 %v7490_v10  ;;  %v918_v45 = vsub.f32 %v7512_v24, %v917_v32  ;;  %s6732_s5 = sshll.u32 %s7355_s1, 4  ;;  %s10116_s19 = sld [smem:[#allocation40_spill]] }
  0x4a   : > { %v901_v43 = vand.u32 4294901760, %v900_v35  ;;  %1010 = vmatpush.msra.mxu2 %v7505_v22  ;;  %1068 = vmatpush.msra.mxu3 %v7492_v15  ;;  %vm780_vm0 = vweird.f32 %v7483_v3  ;;  %v924_v47 = vsub.f32 %v7515_v25, %v923_v33  ;;  %v935_v48 = vand.u32 4294901760, %v7532_v34  ;;  %v828_v35 = vld [vmem:[#allocation5] sm:$0xff]  ;;  %s748_s0 = scalar_lea.vmem %s10081_s29, %s6730_s27  ;;  %s10114_s29 = sld [smem:[#allocation21_spill]] }
  0x4b   : > { %v777_v14 = vsub.f32 1.0, %v776_v4  ;;  %v907_v44 = vand.u32 4294901760, %v906_v36  ;;  %855 = vmatpush.msra.mxu0 %v7492_v15  ;;  %v913_v50 = vand.u32 4294901760, %v912_v37  ;;  %v7563_v51 = vand.u32 4294901760, %v835_v40 }
  0x4c   : > { %902 = vmatpush.msra.mxu1 %v901_v43  ;;  %1013 = vmatpush.msra.mxu2 %v7512_v24  ;;  %v7565_v52 = vand.u32 4294901760, %v834_v41  ;;  %v7567_v53 = vand.u32 4294901760, %v833_v42  ;;  %v930_v54 = vsub.f32 %v7518_v26, %v929_v38  ;;  %v941_v55 = vand.u32 4294901760, %v7548_v39 }
  0x4d   : > { %v778_v31 = vmul.f32 %v7483_v3, %v777_v14  ;;  %1070 = vmatpush.msra.mxu3 %v7494_v16  ;;  %857 = vmatpush.msra.mxu0 %v7494_v16  ;;  %v919_v57 = vand.u32 4294901760, %v918_v45  ;;  %v7577_v58 = vsub.f32 %v835_v40, %v7563_v51  ;;  %v7582_v60 = vand.u32 4294901760, %v832_v49 }
  0x4e   : > { %908 = vmatpush.msra.mxu1 %v907_v44  ;;  %1016 = vmatpush.msra.mxu2 %v7515_v25  ;;  %v7580_v59 = vsub.f32 %v834_v41, %v7565_v52  ;;  %v936_v62 = vsub.f32 %v7532_v34, %v935_v48  ;;  %v925_v2 = vand.u32 4294901760, %v924_v47  ;;  %v7597_v5 = vsub.f32 %v833_v42, %v7567_v53 }
  0x4f   : > { %v779_v46 = vadd.f32 %v7483_v3, %v778_v31  ;;  %1072 = vmatpush.msra.mxu3 %v7496_v17  ;;  %859 = vmatpush.msra.mxu0 %v7496_v17  ;;  %v947_v4 = vand.u32 4294901760, %v7577_v58  ;;  %v942_v6 = vsub.f32 %v7548_v39, %v941_v55  ;;  %v931_v12 = vand.u32 4294901760, %v930_v54  ;;  %s6546_s20 = scalar_lea.hbm %s10116_s19, %s6732_s5  ;;  %s7156_s23 = scalar_lea.hbm %s10116_s19, 32 }
  0x50   : > { %914 = vmatpush.msra.mxu1 %v913_v50  ;;  %1019 = vmatpush.msra.mxu2 %v7518_v26  ;;  %v953_v13 = vand.u32 4294901760, %v7580_v59  ;;  %v7609_v14 = vsub.f32 %v832_v49, %v7582_v60  ;;  %v7611_v18 = vand.u32 4294901760, %v830_v63  ;;  %v937_v31 = vand.u32 4294901760, %v936_v62  ;;  %s6549_s15 = sshll.u32 %s6546_s20, 4  ;;  %s6550_s15 = int_to_ptr.hbm [resolvable:$true] %s6549_s15 }
  0x51   : > { %773 = vadd.xlane.f32.xlu0 %v7480_v1  ;;  %v7587_v61 = vsel %vm780_vm0, %v7483_v3, %v779_v46  ;;  %v7599_v3 = vand.u32 4294901760, %v831_v56  ;;  %1074 = vmatpush.msra.mxu3 %v7509_v23  ;;  %v948_v36 = vsub.f32 %v7577_v58, %v947_v4  ;;  %v959_v37 = vand.u32 4294901760, %v7597_v5  ;;  %s7150_s18 = sshra.s32 %s6550_s15, 4  ;;  %s7151_s18 = int_to_ptr.hbm [resolvable:$true] %s7150_s18 }
  0x52   : > { %861 = vmatpush.msra.mxu0 %v7509_v23  ;;  %920 = vmatpush.msra.mxu1 %v919_v57  ;;  %v7624_v41 = vand.u32 4294901760, %v829_v7  ;;  %v943_v43 = vand.u32 4294901760, %v942_v6  ;;  %v954_v44 = vsub.f32 %v7580_v59, %v953_v13  ;;  %v965_v45 = vand.u32 4294901760, %v7609_v14  ;;  %s7152_s30 = scalar_lea.hbm %s7151_s18, 16  ;;  %p7157_p3 = scmp.lt.s32.totalorder %s7151_s18, %s10116_s19 }
  0x53   : > { %1022 = vmatpush.msra.mxu2 %v7532_v34  ;;  %1076 = vmatpush.msra.mxu3 %v7520_v27  ;;  %v7622_v40 = vsub.f32 %v831_v56, %v7599_v3  ;;  %v7637_v46 = vsub.f32 %v830_v63, %v7611_v18  ;;  %v7639_v47 = vand.u32 4294901760, %v828_v35  ;;  %v949_v49 = vand.u32 4294901760, %v948_v36  ;;  %p7153_p0 = scmp.ne.s32.totalorder %s7151_s18, %s7152_s30  ;;  %p7158_p4 = scmp.lt.s32.totalorder %s7156_s23, %s7152_s30 }
  0x54   : > { %863 = vmatpush.msra.mxu0 %v7520_v27  ;;  %926 = vmatpush.msra.mxu1 %v925_v2  ;;  %v960_v50 = vsub.f32 %v7597_v5, %v959_v37  ;;  %v7651_v56 = vsub.f32 %v829_v7, %v7624_v41  ;;  %v955_v62 = vand.u32 4294901760, %v954_v44  ;;  %v966_v63 = vsub.f32 %v7609_v14, %v965_v45 }
  0x55   : > { %1025 = vmatpush.msra.mxu2 %v7548_v39  ;;  %1078 = vmatpush.msra.mxu3 %v7563_v51  ;;  %v971_v54 = vand.u32 4294901760, %v7622_v40  ;;  %v977_v2 = vand.u32 4294901760, %v7637_v46  ;;  %v7660_v6 = vsub.f32 %v828_v35, %v7639_v47  ;;  %vm2229_vm9 = vcmask 130048   ;;  %p7154_p1 = pnand %p7153_p0, %p7372_p5  ;;  %p7159_p7 = por %p7158_p4, %p7157_p3 }
  0x56   : > { %865 = vmatpush.msra.mxu0 %v7563_v51  ;;  %932 = vmatpush.msra.mxu1 %v931_v12  ;;  %v967_v35 = vand.u32 4294901760, %v966_v63  ;;  %v1226_v63 = vld [vmem:[#allocation7 + $0x30] sm:$0xff] }
  0x57   : > { %1028 = vmatpush.msra.mxu2 %v7577_v58  ;;  %1080 = vmatpush.msra.mxu3 %v7565_v52  ;;  %v972_v12 = vsub.f32 %v7622_v40, %v971_v54  ;;  %v978_v36 = vsub.f32 %v7637_v46, %v977_v2  ;;  %p7155_p2 = pneg %p7154_p1 }
  0x58   : > { %867 = vmatpush.msra.mxu0 %v7565_v52  ;;  %938 = vmatpush.msra.mxu1 %v937_v31 }
  0x59   : > { %1031 = vmatpush.msra.mxu2 %v7580_v59  ;;  %1082 = vmatpush.msra.mxu3 %v7567_v53  ;;  %p7160_p8 = pnand %p7159_p7, %p7155_p2 }
  0x5a   : > { %944 = vmatpush.msra.mxu1 %v943_v43  ;;  %869 = vmatpush.msra.mxu0 %v7567_v53  ;;  %v989_v43 = vand.u32 4294901760, %v7660_v6 }
  0x5b   : > { %1034 = vmatpush.msra.mxu2 %v7597_v5  ;;  %1084 = vmatpush.msra.mxu3 %v7582_v60 }
  0x5c   : > { %950 = vmatpush.msra.mxu1 %v949_v49  ;;  %871 = vmatpush.msra.mxu0 %v7582_v60  ;;  %v979_v49 = vand.u32 4294901760, %v978_v36 }
  0x5d   : > { %1037 = vmatpush.msra.mxu2 %v7609_v14  ;;  %1086 = vmatpush.msra.mxu3 %v7599_v3 }
  0x5e   : > { %956 = vmatpush.msra.mxu1 %v955_v62  ;;  %873 = vmatpush.msra.mxu0 %v7599_v3 }
  0x5f   : > { %1040 = vmatpush.msra.mxu2 %v7622_v40  ;;  %1088 = vmatpush.msra.mxu3 %v7611_v18 }
  0x60   : > { %875 = vmatpush.msra.mxu0 %v7611_v18 }
  0x61   : > { %1043 = vmatpush.msra.mxu2 %v7637_v46  ;;  %1090 = vmatpush.msra.mxu3 %v7624_v41 }
  0x62   : > { %877 = vmatpush.msra.mxu0 %v7624_v41 }
  0x63   : > { %1046 = vmatpush.msra.mxu2 %v7651_v56  ;;  %1092 = vmatpush.msra.mxu3 %v7639_v47 }
  0x64   : > { %879 = vmatpush.msra.mxu0 %v7639_v47 }
  0x65   : > { %1049 = vmatpush.msra.mxu2 %v7660_v6 }
  0x66   : > { %1109 = vmatpush.msrb.mxu0 %v899_v28  ;;  %v1231_v28 = vld [vmem:[#allocation7 + $0x58] sm:$0xff] }
  0x68   : > { %1113 = vmatpush.msrb.mxu0 %v905_v29 }
  0x6a   : > { %1117 = vmatpush.msrb.mxu0 %v911_v30 }
  0x6c   : > { %1121 = vmatpush.msrb.mxu0 %v917_v32 }
  0x6e   : > { %1125 = vmatpush.msrb.mxu0 %v923_v33  ;;  %v7768_v33 = vand.u32 4294901760, %v1231_v28 }
  0x70   : > { %1129 = vmatpush.msrb.mxu0 %v929_v38  ;;  %v1230_v38 = vld [vmem:[#allocation7 + $0x50] sm:$0xff] }
  0x72   : > { %1133 = vmatpush.msrb.mxu0 %v935_v48 }
  0x74   : > { %1137 = vmatpush.msrb.mxu0 %v941_v55  ;;  %v1229_v55 = vld [vmem:[#allocation7 + $0x48] sm:$0xff] }
  0x76   : > { %1141 = vmatpush.msrb.mxu0 %v947_v4 }
  0x78   : > { %1145 = vmatpush.msrb.mxu0 %v953_v13 }
  0x7a   : > { %1149 = vmatpush.msrb.mxu0 %v959_v37 }
  0x7c   : > { %1153 = vmatpush.msrb.mxu0 %v965_v45 }
  0x7e   : > { %1157 = vmatpush.msrb.mxu0 %v971_v54 }
  0x80   : > { %1161 = vmatpush.msrb.mxu0 %v977_v2 }
  0xbc   : > { %v772_v11 = vpop.xlane.xlu0 %771 }
  0xbd   : > { %v782_v19 = vmul.f32 %v7587_v61, %v772_v11  ;;  %v961_v11 = vand.u32 4294901760, %v960_v50  ;;  %v990_v50 = vsub.f32 %v7660_v6, %v989_v43 }
  0xbf   : > { %v7627_v42 = vsub.f32 %v7476_v0, %v782_v19  ;;  %v983_v19 = vand.u32 4294901760, %v7651_v56  ;;  %962 = vmatpush.msra.mxu1 %v961_v11  ;;  %v991_v62 = vand.u32 4294901760, %v990_v50 }
  0xc1   : > { %v786_v0 = vmul.f32 %v7627_v42, %v7627_v42  ;;  %968 = vmatpush.msra.mxu1 %v967_v35  ;;  %1165 = vmatpush.msrb.mxu0 %v983_v19 }
  0xc3   : > { %788 = vadd.xlane.f32.xlu1 %v786_v0  ;;  %v984_v0 = vsub.f32 %v7651_v56, %v983_v19  ;;  %1169 = vmatpush.msrb.mxu0 %v989_v43  ;;  %v1225_v19 = vld [vmem:[#allocation7 + $0x28] sm:$0xff] }
  0xc4   : > { %v774_v57 = vpop.xlane.xlu0 %773  ;;  %v7825_v43 = vand.u32 4294901760, %v1225_v19 }
  0xc5   : > { %v783_v7 = vmul.f32 %v7587_v61, %v774_v57  ;;  %v985_v57 = vand.u32 4294901760, %v984_v0  ;;  %v1224_v0 = vld [vmem:[#allocation7 + $0x20] sm:$0xff] }
  0xc7   : > { %v7671_v31 = vsub.f32 %v7480_v1, %v783_v7  ;;  %v973_v1 = vand.u32 4294901760, %v972_v12  ;;  %v7817_v7 = vand.u32 4294901760, %v1226_v63 }
  0xc9   : > { %v787_v44 = vmul.f32 %v7671_v31, %v7671_v31  ;;  %974 = vmatpush.msra.mxu1 %v973_v1 }
  0xcb   : > { %790 = vadd.xlane.f32.xlu1 %v787_v44  ;;  %980 = vmatpush.msra.mxu1 %v979_v49  ;;  %v7828_v44 = vsub.f32 %v1226_v63, %v7817_v7 }
  0xcd   : > { %986 = vmatpush.msra.mxu1 %v985_v57  ;;  %v1345_v50 = vand.u32 4294901760, %v7828_v44  ;;  %v7838_v57 = vand.u32 4294901760, %v1224_v0 }
  0xcf   : > { %992 = vmatpush.msra.mxu1 %v991_v62  ;;  %v7841_v62 = vsub.f32 %v1225_v19, %v7825_v43 }
  0xd1   : > { %1180 = vmatpush.msrb.mxu1 %v7486_v8  ;;  %v1235_v8 = vld [vmem:[#allocation7 + $0x78] sm:$0xff] }
  0xd3   : > { %1182 = vmatpush.msrb.mxu1 %v7488_v9  ;;  %v7738_v9 = vand.u32 4294901760, %v1235_v8 }
  0xd5   : > { %1184 = vmatpush.msrb.mxu1 %v7490_v10  ;;  %v1234_v10 = vld [vmem:[#allocation7 + $0x70] sm:$0xff]  ;;  %1241 = vmatpush.msrb.mxu2 %v7738_v9 }
  0xd7   : > { %1186 = vmatpush.msrb.mxu1 %v7492_v15  ;;  %v7741_v15 = vand.u32 4294901760, %v1234_v10 }
  0xd9   : > { %1188 = vmatpush.msrb.mxu1 %v7494_v16  ;;  %v7744_v16 = vsub.f32 %v1235_v8, %v7738_v9  ;;  %1243 = vmatpush.msrb.mxu2 %v7741_v15  ;;  %v7751_v22 = vsub.f32 %v1234_v10, %v7741_v15  ;;  %v1223_v10 = vld [vmem:[#allocation7 + $0x18] sm:$0xff] }
  0xdb   : > { %1190 = vmatpush.msrb.mxu1 %v7496_v17  ;;  %v1233_v17 = vld [vmem:[#allocation7 + $0x68] sm:$0xff]  ;;  %v1291_v20 = vand.u32 4294901760, %v7744_v16  ;;  %v1297_v25 = vand.u32 4294901760, %v7751_v22 }
  0xdc   : > { %v7748_v21 = vand.u32 4294901760, %v1233_v17 }
  0xdd   : > { %1192 = vmatpush.msrb.mxu1 %v7509_v23  ;;  %v1232_v23 = vld [vmem:[#allocation7 + $0x60] sm:$0xff]  ;;  %v1292_v24 = vsub.f32 %v7744_v16, %v1291_v20  ;;  %v1298_v30 = vsub.f32 %v7751_v22, %v1297_v25 }
  0xde   : > { %1245 = vmatpush.msrb.mxu2 %v7748_v21  ;;  %v7758_v26 = vand.u32 4294901760, %v1232_v23 }
  0xdf   : > { %1194 = vmatpush.msrb.mxu1 %v7520_v27  ;;  %v7761_v27 = vsub.f32 %v1233_v17, %v7748_v21  ;;  %v1293_v29 = vand.u32 4294901760, %v1292_v24  ;;  %v1299_v39 = vand.u32 4294901760, %v1298_v30  ;;  %v1351_v24 = vand.u32 4294901760, %v7841_v62  ;;  %v1222_v30 = vld [vmem:[#allocation7 + $0x10] sm:$0xff] }
  0xe0   : > { %1247 = vmatpush.msrb.mxu2 %v7758_v26  ;;  %v7771_v34 = vsub.f32 %v1232_v23, %v7758_v26  ;;  %v1346_v23 = vsub.f32 %v7828_v44, %v1345_v50 }
  0xe1   : > { %1196 = vmatpush.msrb.mxu1 %v7563_v51  ;;  %v1303_v32 = vand.u32 4294901760, %v7761_v27  ;;  %1294 = vmatpush.msrb.mxu3 %v1293_v29  ;;  %v7777_v51 = vand.u32 4294901760, %v1230_v38  ;;  %v7851_v29 = vsub.f32 %v1224_v0, %v7838_v57 }
  0xe2   : > { %1249 = vmatpush.msrb.mxu2 %v7768_v33 }
  0xe3   : > { %1198 = vmatpush.msrb.mxu1 %v7565_v52  ;;  %v1304_v48 = vsub.f32 %v7761_v27, %v1303_v32  ;;  %v7780_v52 = vsub.f32 %v1231_v28, %v7768_v33  ;;  %1300 = vmatpush.msrb.mxu3 %v1299_v39  ;;  %v7788_v4 = vsub.f32 %v1230_v38, %v7777_v51  ;;  %v7848_v28 = vand.u32 4294901760, %v1223_v10 }
  0xe4   : > { %1251 = vmatpush.msrb.mxu2 %v7777_v51  ;;  %v1347_v38 = vand.u32 4294901760, %v1346_v23  ;;  %v1352_v39 = vsub.f32 %v7841_v62, %v1351_v24 }
  0xe5   : > { %1200 = vmatpush.msrb.mxu1 %v7567_v53  ;;  %v1309_v53 = vand.u32 4294901760, %v7771_v34  ;;  %v1305_v58 = vand.u32 4294901760, %v1304_v48  ;;  %v1315_v59 = vand.u32 4294901760, %v7780_v52  ;;  %v1321_v14 = vand.u32 4294901760, %v7788_v4 }
  0xe6   : > { %v7857_v48 = vand.u32 4294901760, %v1222_v30 }
  0xe7   : > { %1202 = vmatpush.msrb.mxu1 %v7582_v60  ;;  %v7785_v60 = vand.u32 4294901760, %v1229_v55  ;;  %v1310_v5 = vsub.f32 %v7771_v34, %v1309_v53  ;;  %1306 = vmatpush.msrb.mxu3 %v1305_v58  ;;  %v1316_v13 = vsub.f32 %v7780_v52, %v1315_v59  ;;  %v1322_v46 = vsub.f32 %v7788_v4, %v1321_v14 }
  0xe8   : > { %v1357_v58 = vand.u32 4294901760, %v7851_v29 }
  0xe9   : > { %1204 = vmatpush.msrb.mxu1 %v7599_v3  ;;  %v1228_v3 = vld [vmem:[#allocation7 + $0x40] sm:$0xff]  ;;  %1253 = vmatpush.msrb.mxu2 %v7785_v60  ;;  %v7801_v37 = vsub.f32 %v1229_v55, %v7785_v60  ;;  %v1311_v40 = vand.u32 4294901760, %v1310_v5  ;;  %v1317_v45 = vand.u32 4294901760, %v1316_v13  ;;  %v1323_v2 = vand.u32 4294901760, %v1322_v46  ;;  %v1221_v5 = vld [vmem:[#allocation7 + $0x8] sm:$0xff] }
  0xea   : > { %v7860_v55 = vsub.f32 %v1223_v10, %v7848_v28 }
  0xeb   : > { %1206 = vmatpush.msrb.mxu1 %v7611_v18  ;;  %v7798_v18 = vand.u32 4294901760, %v1228_v3  ;;  %1312 = vmatpush.msrb.mxu3 %v1311_v40  ;;  %v7865_v40 = vand.u32 4294901760, %v1221_v5 }
  0xec   : > { %v10016_v13 = vand.u32 4294901760, %v7860_v55 }
  0xed   : > { %1208 = vmatpush.msrb.mxu1 %v7624_v41  ;;  %v1227_v41 = vld [vmem:[#allocation7 + $0x38] sm:$0xff]  ;;  %1255 = vmatpush.msrb.mxu2 %v7798_v18  ;;  %v7811_v56 = vsub.f32 %v1228_v3, %v7798_v18  ;;  %v1353_v3 = vand.u32 4294901760, %v1352_v39 }
  0xee   : > { %v7808_v54 = vand.u32 4294901760, %v1227_v41  ;;  %1318 = vmatpush.msrb.mxu3 %v1317_v45  ;;  %v1358_v45 = vsub.f32 %v7851_v29, %v1357_v58  ;;  %v1364_v46 = vsub.f32 %v7860_v55, %v10016_v13 }
  0xef   : > { %1210 = vmatpush.msrb.mxu1 %v7639_v47  ;;  %v1327_v47 = vand.u32 4294901760, %v7801_v37  ;;  %v1333_v12 = vand.u32 4294901760, %v7811_v56 }
  0xf0   : > { %1257 = vmatpush.msrb.mxu2 %v7808_v54  ;;  %v7820_v11 = vsub.f32 %v1227_v41, %v7808_v54  ;;  %1324 = vmatpush.msrb.mxu3 %v1323_v2  ;;  %v7868_v41 = vsub.f32 %v1222_v30, %v7857_v48  ;;  %v1220_v2 = vld [vmem:[#allocation7] sm:$0xff] }
  0xf1   : > { %v1328_v6 = vsub.f32 %v7801_v37, %v1327_v47  ;;  %v1334_v1 = vsub.f32 %v7811_v56, %v1333_v12  ;;  %v7878_v19 = vand.u32 4294901760, %v1220_v2 }
  0xf2   : > { %1259 = vmatpush.msrb.mxu2 %v7817_v7  ;;  %v1339_v36 = vand.u32 4294901760, %v7820_v11  ;;  %v10015_v63 = vand.u32 4294901760, %v7868_v41 }
  0xf3   : > { %v1329_v35 = vand.u32 4294901760, %v1328_v6  ;;  %v1335_v8 = vand.u32 4294901760, %v1334_v1  ;;  %v1359_v6 = vand.u32 4294901760, %v1358_v45  ;;  %v1365_v1 = vand.u32 4294901760, %v1364_v46 }
  0xf4   : > { %v1340_v49 = vsub.f32 %v7820_v11, %v1339_v36  ;;  %1261 = vmatpush.msrb.mxu2 %v7825_v43  ;;  %v1370_v0 = vsub.f32 %v7868_v41, %v10015_v63 }
  0xf5   : > { %1330 = vmatpush.msrb.mxu3 %v1329_v35  ;;  %v7881_v35 = vsub.f32 %v1221_v5, %v7865_v40 }
  0xf6   : > { %v1341_v17 = vand.u32 4294901760, %v1340_v49  ;;  %1263 = vmatpush.msrb.mxu2 %v7838_v57  ;;  %v1371_v10 = vand.u32 4294901760, %v1370_v0 }
  0xf7   : > { %1336 = vmatpush.msrb.mxu3 %v1335_v8  ;;  %v10013_v49 = vand.u32 4294901760, %v7881_v35  ;;  %v7889_v8 = vsub.f32 %v1220_v2, %v7878_v19 }
  0xf8   : > { %1265 = vmatpush.msrb.mxu2 %v7848_v28 }
  0xf9   : > { %1342 = vmatpush.msrb.mxu3 %v1341_v17  ;;  %v1376_v17 = vsub.f32 %v7881_v35, %v10013_v49  ;;  %v10014_v23 = vand.u32 4294901760, %v7889_v8 }
  0xfa   : > { %1267 = vmatpush.msrb.mxu2 %v7857_v48 }
  0xfb   : > { %1348 = vmatpush.msrb.mxu3 %v1347_v38  ;;  %v1377_v30 = vand.u32 4294901760, %v1376_v17  ;;  %v1382_v38 = vsub.f32 %v7889_v8, %v10014_v23 }
  0xfc   : > { %1269 = vmatpush.msrb.mxu2 %v7865_v40 }
  0xfd   : > { %1354 = vmatpush.msrb.mxu3 %v1353_v3  ;;  %v1383_v3 = vand.u32 4294901760, %v1382_v38 }
  0xfe   : > { %1271 = vmatpush.msrb.mxu2 %v7878_v19 }
  0xff   : > { %1360 = vmatpush.msrb.mxu3 %v1359_v6 }
 0x101   : > { %1366 = vmatpush.msrb.mxu3 %v1365_v1 }
 0x103   : > { %1372 = vmatpush.msrb.mxu3 %v1371_v10 }
 0x105   : > { %1378 = vmatpush.msrb.mxu3 %v1377_v30  ;;  %v6856_v30 = vld [vmem:[#allocation2] ss:$0 sm:$0xff] }
 0x107   : > { %1384 = vmatpush.msrb.mxu3 %v1383_v3  ;;  %v6857_v3 = vld [vmem:[%s9986_s4] ss:$0 sm:$0xff] }
 0x136   : > { %v789_v39 = vpop.xlane.xlu1 %788 }
 0x137   : > { %v792_v5 = vmul.f32 %v789_v39, %v7587_v61 }
 0x139   : > { %v794_v45 = vadd.f32 1e-06, %v792_v5 }
 0x13b   : > { %6868 = vrsqrt.f32 %v794_v45  ;;  %vm802_vm2 = vweird.f32 %v794_v45 }
 0x13e   : > { %v791_v46 = vpop.xlane.xlu1 %790 }
 0x13f   : > { %v793_v2 = vmul.f32 %v791_v46, %v7587_v61 }
 0x141   : > { %v6869_v6 = vpop.eup %6868  ;;  %v795_v1 = vadd.f32 1e-06, %v793_v2 }
 0x142   : > { %v797_v0 = vmul.f32 %v6869_v6, %v794_v45  ;;  %vm803_vm1 = vweird.f32 %v6869_v6 }
 0x143   : > { %6870 = vrsqrt.f32 %v795_v1  ;;  %vm804_vm3 = vmor %vm802_vm2, %vm803_vm1  ;;  %vm812_vm5 = vweird.f32 %v795_v1 }
 0x144   : > { %v798_v10 = vmul.f32 %v6869_v6, %v797_v0 }
 0x146   : > { %v799_v17 = vmul.f32 0.5, %v798_v10 }
 0x148   : > { %v800_v49 = vsub.f32 1.5, %v799_v17 }
 0x149   : > { %v6871_v23 = vpop.eup %6870 }
 0x14a   : > { %v801_v63 = vmul.f32 %v6869_v6, %v800_v49  ;;  %v807_v39 = vmul.f32 %v6871_v23, %v795_v1  ;;  %vm813_vm4 = vweird.f32 %v6871_v23 }
 0x14b   : > { %vm814_vm6 = vmor %vm812_vm5, %vm813_vm4 }
 0x14c   : > { %v805_v38 = vsel %vm804_vm3, %v6869_v6, %v801_v63  ;;  %v808_v5 = vmul.f32 %v6871_v23, %v807_v39 }
 0x14d   : > { %v816_v46 = vmul.f32 %v805_v38, %v7627_v42 }
 0x14e   : > { %v809_v2 = vmul.f32 0.5, %v808_v5  ;;  %v1619_v5 = vld [vmem:[#allocation8 + $0x38] sm:$0xff] }
 0x14f   : > { %v821_v13 = vmul.f32 %v6856_v30, %v816_v46 }
 0x150   : > { %v810_v0 = vsub.f32 1.5, %v809_v2  ;;  %v1618_v2 = vld [vmem:[#allocation8 + $0x30] sm:$0xff] }
 0x151   : > { %v826_v10 = vadd.f32 %v6857_v3, %v821_v13 }
 0x152   : > { %v811_v17 = vmul.f32 %v6871_v23, %v810_v0  ;;  %v8072_v0 = vand.u32 4294901760, %v1619_v5 }
 0x153   : > { %v7904_v49 = vand.u32 4294901760, %v826_v10 }
 0x154   : > { %v815_v45 = vsel %vm814_vm6, %v6871_v23, %v811_v17 }
 0x155   : > { %v817_v63 = vmul.f32 %v815_v45, %v7671_v31  ;;  %994 = vmatmul.f32.vlgmr.msra.gmra.mxu1 %v7904_v49  ;;  %v7909_v6 = vsub.f32 %v826_v10, %v7904_v49  ;;  %v10078_v10 = vand.u32 4294901760, %v7889_v8 }
 0x156   : > { %1454 = vmatpush.msra.mxu1 %v7738_v9 }
 0x157   : > { %v822_v42 = vmul.f32 %v6856_v30, %v817_v63  ;;  %1052 = vmatmul.f32.vlgmr.msra.gmra.mxu2 %v7909_v6  ;;  %v7914_v13 = vand.u32 4294901760, %v7909_v6 }
 0x158   : > { %1456 = vmatpush.msra.mxu1 %v7741_v15  ;;  %1501 = vmatpush.msra.mxu2 %v1291_v20 }
 0x159   : > { %v827_v23 = vadd.f32 %v6857_v3, %v822_v42  ;;  %1096 = vmatmul.f32.vlgmr.msra.gmra.mxu3 %v7914_v13  ;;  %v883_v31 = vsub.f32 %v7909_v6, %v7914_v13  ;;  %v10077_v3 = vand.u32 4294901760, %v7881_v35  ;;  %v1617_v42 = vld [vmem:[#allocation8 + $0x28] sm:$0xff] }
 0x15a   : > { %1458 = vmatpush.msra.mxu1 %v7748_v21  ;;  %1505 = vmatpush.msra.mxu2 %v1297_v25  ;;  %v1626_v25 = vld [vmem:[#allocation8 + $0x70] sm:$0xff] }
 0x15b   : > { %v7925_v1 = vand.u32 4294901760, %v827_v23  ;;  %1572 = vmatpush.msra.mxu3 %v7738_v9  ;;  %v7928_v39 = vand.u32 4294901760, %v883_v31 }
 0x15c   : > { %1460 = vmatpush.msra.mxu1 %v7758_v26  ;;  %1509 = vmatpush.msra.mxu2 %v1303_v32 }
 0x15d   : > { %1574 = vmatpush.msra.mxu3 %v7741_v15  ;;  %885 = vmatmul.f32.vlgmr.msra.gmra.mxu0 %v7928_v39  ;;  %v7936_v20 = vsub.f32 %v827_v23, %v7925_v1  ;;  %v8085_v23 = vand.u32 4294901760, %v1618_v2 }
 0x15e   : > { %998 = vmatmul.f32.gmra.mxu1 %v7925_v1  ;;  %1396 = vmatpush.msra.mxu0 %v7744_v16 }
 0x15f   : > { %1462 = vmatpush.msra.mxu1 %v7768_v33  ;;  %1513 = vmatpush.msra.mxu2 %v1309_v53  ;;  %v7944_v9 = vand.u32 4294901760, %v7936_v20 }
 0x160   : > { %1576 = vmatpush.msra.mxu3 %v7748_v21  ;;  %1057 = vmatmul.f32.gmra.mxu2 %v7936_v20  ;;  %v1627_v21 = vld [vmem:[#allocation8 + $0x78] sm:$0xff] }
 0x161   : > { %1399 = vmatpush.msra.mxu0 %v7751_v22  ;;  %1464 = vmatpush.msra.mxu1 %v7777_v51  ;;  %v891_v15 = vsub.f32 %v7936_v20, %v7944_v9  ;;  %v7969_v22 = vand.u32 4294901760, %v1627_v21 }
 0x162   : > { %1517 = vmatpush.msra.mxu2 %v1315_v59  ;;  %1578 = vmatpush.msra.mxu3 %v7758_v26  ;;  %v7978_v26 = vand.u32 4294901760, %v1626_v25 }
 0x163   : > { %1102 = vmatmul.f32.gmra.mxu3 %v7944_v9  ;;  %1402 = vmatpush.msra.mxu0 %v7761_v27  ;;  %v7957_v16 = vand.u32 4294901760, %v891_v15  ;;  %v1625_v27 = vld [vmem:[#allocation8 + $0x68] sm:$0xff]  ;;  %v7983_v32 = vsub.f32 %v1627_v21, %v7969_v22  ;;  %v1616_v15 = vld [vmem:[#allocation8 + $0x20] sm:$0xff]  ;;  %v8093_v21 = vsub.f32 %v1619_v5, %v8072_v0 }
 0x164   : > { %1466 = vmatpush.msra.mxu1 %v7785_v60  ;;  %1521 = vmatpush.msra.mxu2 %v1321_v14 }
 0x165   : > { %1580 = vmatpush.msra.mxu3 %v7768_v33  ;;  %1405 = vmatpush.msra.mxu0 %v7771_v34  ;;  %v1624_v33 = vld [vmem:[#allocation8 + $0x60] sm:$0xff]  ;;  %v7990_v34 = vand.u32 4294901760, %v1625_v27  ;;  %v1683_v53 = vand.u32 4294901760, %v7983_v32 }
 0x166   : > { %1468 = vmatpush.msra.mxu1 %v7798_v18  ;;  %1525 = vmatpush.msra.mxu2 %v1327_v47  ;;  %v8001_v59 = vand.u32 4294901760, %v1624_v33 }
 0x167   : > { %1582 = vmatpush.msra.mxu3 %v7777_v51  ;;  %893 = vmatmul.f32.gmra.mxu0 %v7957_v16  ;;  %v7996_v51 = vsub.f32 %v1626_v25, %v7978_v26  ;;  %v8095_v25 = vand.u32 4294901760, %v1617_v42 }
 0x168   : > { %1212 = vmatmul.f32.vlgmr.msrb.gmra.mxu1 %v7904_v49  ;;  %1408 = vmatpush.msra.mxu0 %v7780_v52  ;;  %v1623_v52 = vld [vmem:[#allocation8 + $0x58] sm:$0xff]  ;;  %v8023_v47 = vsub.f32 %v1624_v33, %v8001_v59 }
 0x169   : > { %1470 = vmatpush.msra.mxu1 %v7808_v54  ;;  %1529 = vmatpush.msra.mxu2 %v1333_v12  ;;  %v1689_v14 = vand.u32 4294901760, %v7996_v51  ;;  %v10075_v12 = vand.u32 4294901760, %v7860_v55  ;;  %v1615_v33 = vld [vmem:[#allocation8 + $0x18] sm:$0xff] }
 0x16a   : > { %1584 = vmatpush.msra.mxu3 %v7785_v60  ;;  %1277 = vmatmul.f32.vlgmr.msrb.gmra.mxu2 %v7928_v39  ;;  %v8009_v60 = vsub.f32 %v1625_v27, %v7990_v34 }
 0x16b   : > { %1411 = vmatpush.msra.mxu0 %v7788_v4  ;;  %1472 = vmatpush.msra.mxu1 %v7817_v7  ;;  %v8011_v4 = vand.u32 4294901760, %v1623_v52 }
 0x16c   : > { %1533 = vmatpush.msra.mxu2 %v1339_v36  ;;  %1586 = vmatpush.msra.mxu3 %v7798_v18  ;;  %v1622_v18 = vld [vmem:[#allocation8 + $0x50] sm:$0xff]  ;;  %v1690_v36 = vsub.f32 %v7996_v51, %v1689_v14 }
 0x16d   : > { %1386 = vmatmul.f32.vlgmr.msrb.gmra.mxu3 %v7904_v49  ;;  %1414 = vmatpush.msra.mxu0 %v7801_v37  ;;  %v1684_v37 = vsub.f32 %v7983_v32, %v1683_v53 }
 0x16e   : > { %1474 = vmatpush.msra.mxu1 %v7825_v43  ;;  %1537 = vmatpush.msra.mxu2 %v1345_v50  ;;  %v1701_v50 = vand.u32 4294901760, %v8023_v47 }
 0x16f   : > { %1588 = vmatpush.msra.mxu3 %v7808_v54  ;;  %1417 = vmatpush.msra.mxu0 %v7811_v56  ;;  %v1621_v54 = vld [vmem:[#allocation8 + $0x48] sm:$0xff]  ;;  %v1695_v56 = vand.u32 4294901760, %v8009_v60 }
 0x170   : > { %1476 = vmatpush.msra.mxu1 %v7838_v57  ;;  %1541 = vmatpush.msra.mxu2 %v1351_v24  ;;  %v8044_v24 = vand.u32 4294901760, %v1621_v54 }
 0x171   : > { %1590 = vmatpush.msra.mxu3 %v7817_v7  ;;  %1171 = vmatmul.f32.vlgmr.msrb.gmra.mxu0 %v7904_v49  ;;  %v8031_v7 = vsub.f32 %v1623_v52, %v8011_v4  ;;  %v8107_v52 = vand.u32 4294901760, %v1616_v15 }
 0x172   : > { %1216 = vmatmul.f32.gmra.mxu1 %v7925_v1  ;;  %1420 = vmatpush.msra.mxu0 %v7820_v11  ;;  %v8033_v11 = vand.u32 4294901760, %v1622_v18  ;;  %v8068_v46 = vsub.f32 %v1621_v54, %v8044_v24  ;;  %v1731_v54 = vand.u32 4294901760, %v8093_v21 }
 0x173   : > { %1478 = vmatpush.msra.mxu1 %v7848_v28  ;;  %1545 = vmatpush.msra.mxu2 %v1357_v58  ;;  %v10076_v58 = vand.u32 4294901760, %v7868_v41 }
 0x174   : > { %1592 = vmatpush.msra.mxu3 %v7825_v43  ;;  %1285 = vmatmul.f32.gmra.mxu2 %v7957_v16  ;;  %v1620_v43 = vld [vmem:[#allocation8 + $0x40] sm:$0xff]  ;;  %v8056_v30 = vsub.f32 %v1622_v18, %v8033_v11  ;;  %v1719_v31 = vand.u32 4294901760, %v8068_v46 }
 0x175   : > { %1423 = vmatpush.msra.mxu0 %v7828_v44  ;;  %1480 = vmatpush.msra.mxu1 %v7857_v48  ;;  %v1685_v44 = vand.u32 4294901760, %v1684_v37  ;;  %v8058_v38 = vand.u32 4294901760, %v1620_v43  ;;  %v1614_v37 = vld [vmem:[#allocation8 + $0x10] sm:$0xff] }
 0x176   : > { %1549 = vmatpush.msra.mxu2 %v10075_v12  ;;  %1594 = vmatpush.msra.mxu3 %v7838_v57  ;;  %v1696_v57 = vsub.f32 %v8009_v60, %v1695_v56  ;;  %v1713_v45 = vand.u32 4294901760, %v8056_v30  ;;  %v1720_v18 = vsub.f32 %v8068_v46, %v1719_v31  ;;  %v8119_v12 = vand.u32 4294901760, %v1615_v33 }
 0x177   : > { %1390 = vmatmul.f32.gmra.mxu3 %v7925_v1  ;;  %1426 = vmatpush.msra.mxu0 %v7841_v62  ;;  %v1707_v62 = vand.u32 4294901760, %v8031_v7  ;;  %v8082_v63 = vsub.f32 %v1620_v43, %v8058_v38  ;;  %v8131_v5 = vand.u32 4294901760, %v1614_v37 }
 0x178   : > { %1482 = vmatpush.msra.mxu1 %v7865_v40  ;;  %1553 = vmatpush.msra.mxu2 %v10076_v58 }
 0x179   : > { %1596 = vmatpush.msra.mxu3 %v7848_v28  ;;  %1429 = vmatpush.msra.mxu0 %v7851_v29  ;;  %v1691_v28 = vand.u32 4294901760, %v1690_v36  ;;  %v1702_v29 = vsub.f32 %v8023_v47, %v1701_v50  ;;  %v1708_v17 = vsub.f32 %v8031_v7, %v1707_v62  ;;  %v1725_v27 = vand.u32 4294901760, %v8082_v63 }
 0x17a   : > { %1484 = vmatpush.msra.mxu1 %v7878_v19  ;;  %1557 = vmatpush.msra.mxu2 %v10077_v3  ;;  %v1612_v3 = vld [vmem:[#allocation8] sm:$0xff] }
 0x17b   : > { %1598 = vmatpush.msra.mxu3 %v7857_v48  ;;  %1175 = vmatmul.f32.gmra.mxu0 %v7925_v1  ;;  %v1697_v48 = vand.u32 4294901760, %v1696_v57  ;;  %v1726_v43 = vsub.f32 %v8082_v63, %v1725_v27  ;;  %v8129_v57 = vsub.f32 %v1616_v15, %v8107_v52  ;;  %v8156_v15 = vand.u32 4294901760, %v1612_v3 }
 0x17c   : > { %1686 = vmatpush.msrb.mxu1 %v1685_v44  ;;  %1432 = vmatpush.msra.mxu0 %v7860_v55  ;;  %v1703_v55 = vand.u32 4294901760, %v1702_v29  ;;  %v1613_v44 = vld [vmem:[#allocation8 + $0x8] sm:$0xff] }
 0x17d   : > { %1488 = vmatmul.f32.vlgmr.msra.gmra.mxu1 %v7914_v13  ;;  %1561 = vmatpush.msra.mxu2 %v10078_v10  ;;  %v8144_v10 = vand.u32 4294901760, %v1613_v44 }
 0x17e   : > { %1600 = vmatpush.msra.mxu3 %v7865_v40  ;;  %1692 = vmatpush.msrb.mxu1 %v1691_v28  ;;  %v1709_v40 = vand.u32 4294901760, %v1708_v17  ;;  %v1732_v28 = vsub.f32 %v8093_v21, %v1731_v54 }
 0x17f   : > { %1788 = vmatpush.msrb.mxu2 %v7983_v32  ;;  %1435 = vmatpush.msra.mxu0 %v7868_v41  ;;  %v1714_v41 = vsub.f32 %v8056_v30, %v1713_v45 }
 0x180   : > { %1563 = vmatmul.f32.vlgmr.msra.gmra.mxu2 %v7904_v49  ;;  %1602 = vmatpush.msra.mxu3 %v7878_v19  ;;  %v8105_v19 = vsub.f32 %v1618_v2, %v8085_v23  ;;  %v8142_v2 = vsub.f32 %v1615_v33, %v8119_v12 }
 0x181   : > { %1698 = vmatpush.msrb.mxu1 %v1697_v48  ;;  %1791 = vmatpush.msrb.mxu2 %v7996_v51  ;;  %v1715_v36 = vand.u32 4294901760, %v1714_v41  ;;  %v1727_v48 = vand.u32 4294901760, %v1726_v43  ;;  %v6858_v51 = vld [vmem:[%s9988_s6] ss:$0 sm:$0xff] }
 0x182   : > { %1846 = vmatpush.msrb.mxu3 %v7969_v22  ;;  %1438 = vmatpush.msra.mxu0 %v7881_v35  ;;  %v8117_v35 = vsub.f32 %v1617_v42, %v8095_v25  ;;  %v1737_v58 = vand.u32 4294901760, %v8105_v19  ;;  %v1749_v42 = vand.u32 4294901760, %v8129_v57  ;;  %v10017_v33 = vand.u32 4294901760, %v8142_v2 }
 0x183   : > { %1604 = vmatmul.f32.vlgmr.msra.gmra.mxu3 %v7904_v49  ;;  %1704 = vmatpush.msrb.mxu1 %v1703_v55  ;;  %v8154_v55 = vsub.f32 %v1614_v37, %v8131_v5 }
 0x184   : > { %1794 = vmatpush.msrb.mxu2 %v8009_v60  ;;  %1848 = vmatpush.msrb.mxu3 %v7978_v26  ;;  %v1743_v29 = vand.u32 4294901760, %v8117_v35  ;;  %v1738_v17 = vsub.f32 %v8105_v19, %v1737_v58 }
 0x185   : > { %1441 = vmatpush.msra.mxu0 %v7889_v8  ;;  %1710 = vmatpush.msrb.mxu1 %v1709_v40  ;;  %v1721_v8 = vand.u32 4294901760, %v1720_v18  ;;  %v1733_v40 = vand.u32 4294901760, %v1732_v28  ;;  %v8166_v18 = vsub.f32 %v1613_v44, %v8144_v10  ;;  %v1761_v43 = vand.u32 4294901760, %v8154_v55 }
 0x186   : > { %1797 = vmatpush.msrb.mxu2 %v8023_v47  ;;  %1850 = vmatpush.msrb.mxu3 %v7990_v34  ;;  %v1744_v41 = vsub.f32 %v8117_v35, %v1743_v29  ;;  %v1739_v37 = vand.u32 4294901760, %v1738_v17  ;;  %v1756_v28 = vsub.f32 %v8142_v2, %v10017_v33 }
 0x187   : > { %1633 = vmatpush.msrb.mxu0 %v7969_v22  ;;  %1494 = vmatmul.f32.gmra.mxu1 %v7944_v9  ;;  %v1762_v17 = vsub.f32 %v8154_v55, %v1761_v43 }
 0x188   : > { %1444 = vmatmul.f32.vlgmr.msra.gmra.mxu0 %v7909_v6  ;;  %1716 = vmatpush.msrb.mxu1 %v1715_v36  ;;  %v1750_v36 = vsub.f32 %v8129_v57, %v1749_v42  ;;  %v1745_v44 = vand.u32 4294901760, %v1744_v41  ;;  %v1757_v41 = vand.u32 4294901760, %v1756_v28 }
 0x189   : > { %1635 = vmatpush.msrb.mxu0 %v7978_v26  ;;  %1800 = vmatpush.msrb.mxu2 %v8031_v7 }
 0x18a   : > { %1852 = vmatpush.msrb.mxu3 %v8001_v59  ;;  %1567 = vmatmul.f32.gmra.mxu2 %v7925_v1 }
 0x18b   : > { %1637 = vmatpush.msrb.mxu0 %v7990_v34  ;;  %1722 = vmatpush.msrb.mxu1 %v1721_v8  ;;  %v8176_v8 = vsub.f32 %v1612_v3, %v8156_v15  ;;  %v1751_v3 = vand.u32 4294901760, %v1750_v36 }
 0x18c   : > { %1803 = vmatpush.msrb.mxu2 %v8056_v30  ;;  %1854 = vmatpush.msrb.mxu3 %v8011_v4 }
 0x18d   : > { %1608 = vmatmul.f32.gmra.mxu3 %v7925_v1  ;;  %1639 = vmatpush.msrb.mxu0 %v8001_v59 }
 0x18e   : > { %1728 = vmatpush.msrb.mxu1 %v1727_v48  ;;  %1806 = vmatpush.msrb.mxu2 %v8068_v46  ;;  %v1767_v48 = vand.u32 4294901760, %v8166_v18 }
 0x18f   : > { %1856 = vmatpush.msrb.mxu3 %v8033_v11  ;;  %1641 = vmatpush.msrb.mxu0 %v8011_v4 }
 0x190   : > { %1734 = vmatpush.msrb.mxu1 %v1733_v40  ;;  %1809 = vmatpush.msrb.mxu2 %v8082_v63  ;;  %v1773_v40 = vand.u32 4294901760, %v8176_v8  ;;  %v1768_v33 = vsub.f32 %v8166_v18, %v1767_v48 }
 0x191   : > { %1858 = vmatpush.msrb.mxu3 %v8044_v24  ;;  %1449 = vmatmul.f32.gmra.mxu0 %v7936_v20 }
 0x192   : > { %1643 = vmatpush.msrb.mxu0 %v8033_v11  ;;  %1740 = vmatpush.msrb.mxu1 %v1739_v37  ;;  %v1763_v37 = vand.u32 4294901760, %v1762_v17  ;;  %v1774_v36 = vsub.f32 %v8176_v8, %v1773_v40 }
 0x193   : > { %1812 = vmatpush.msrb.mxu2 %v8093_v21  ;;  %1860 = vmatpush.msrb.mxu3 %v8058_v38 }
 0x194   : > { %1645 = vmatpush.msrb.mxu0 %v8044_v24  ;;  %1746 = vmatpush.msrb.mxu1 %v1745_v44  ;;  %v1769_v44 = vand.u32 4294901760, %v1768_v33  ;;  %v1775_v28 = vand.u32 4294901760, %v1774_v36 }
 0x195   : > { %1815 = vmatpush.msrb.mxu2 %v8105_v19  ;;  %1862 = vmatpush.msrb.mxu3 %v8072_v0 }
 0x196   : > { %1647 = vmatpush.msrb.mxu0 %v8058_v38  ;;  %1752 = vmatpush.msrb.mxu1 %v1751_v3 }
 0x197   : > { %1818 = vmatpush.msrb.mxu2 %v8117_v35  ;;  %1864 = vmatpush.msrb.mxu3 %v8085_v23 }
 0x198   : > { %1649 = vmatpush.msrb.mxu0 %v8072_v0  ;;  %1758 = vmatpush.msrb.mxu1 %v1757_v41 }
 0x199   : > { %1821 = vmatpush.msrb.mxu2 %v8129_v57  ;;  %1866 = vmatpush.msrb.mxu3 %v8095_v25 }
 0x19a   : > { %1651 = vmatpush.msrb.mxu0 %v8085_v23  ;;  %1764 = vmatpush.msrb.mxu1 %v1763_v37 }
 0x19b   : > { %1824 = vmatpush.msrb.mxu2 %v8142_v2  ;;  %1868 = vmatpush.msrb.mxu3 %v8107_v52 }
 0x19c   : > { %1653 = vmatpush.msrb.mxu0 %v8095_v25  ;;  %1770 = vmatpush.msrb.mxu1 %v1769_v44 }
 0x19d   : > { %1827 = vmatpush.msrb.mxu2 %v8154_v55  ;;  %1870 = vmatpush.msrb.mxu3 %v8119_v12 }
 0x19e   : > { %1655 = vmatpush.msrb.mxu0 %v8107_v52  ;;  %1776 = vmatpush.msrb.mxu1 %v1775_v28 }
 0x19f   : > { %1830 = vmatpush.msrb.mxu2 %v8166_v18  ;;  %1872 = vmatpush.msrb.mxu3 %v8131_v5 }
 0x1a0   : > { %1778 = vmatmul.f32.vlgmr.msrb.gmra.mxu1 %v7904_v49  ;;  %1657 = vmatpush.msrb.mxu0 %v8119_v12 }
 0x1a1   : > { %1964 = vmatpush.msra.mxu1 %v7969_v22  ;;  %1833 = vmatpush.msrb.mxu2 %v8176_v8 }
 0x1a2   : > { %1874 = vmatpush.msrb.mxu3 %v8144_v10  ;;  %1836 = vmatmul.f32.vlgmr.msrb.gmra.mxu2 %v7909_v6  ;;  %v10079_v6 = vand.u32 4294901760, %v8142_v2 }
 0x1a3   : > { %1966 = vmatpush.msra.mxu1 %v7978_v26  ;;  %1659 = vmatpush.msrb.mxu0 %v8131_v5 }
 0x1a4   : > { %1876 = vmatpush.msrb.mxu3 %v8156_v15 }
 0x1a5   : > { %1880 = vmatmul.f32.vlgmr.msrb.gmra.mxu3 %v7914_v13  ;;  %1968 = vmatpush.msra.mxu1 %v7990_v34 }
 0x1a6   : > { %1661 = vmatpush.msrb.mxu0 %v8144_v10 }
 0x1a7   : > { %1970 = vmatpush.msra.mxu1 %v8001_v59 }
 0x1a8   : > { %1663 = vmatpush.msrb.mxu0 %v8156_v15  ;;  %1782 = vmatmul.f32.gmra.mxu1 %v7925_v1 }
 0x1a9   : > { %1669 = vmatmul.f32.vlgmr.msrb.gmra.mxu0 %v7928_v39  ;;  %1972 = vmatpush.msra.mxu1 %v8011_v4 }
 0x1aa   : > { %1893 = vmatpush.msra.mxu0 %v1683_v53  ;;  %1841 = vmatmul.f32.gmra.mxu2 %v7936_v20 }
 0x1ab   : > { %1974 = vmatpush.msra.mxu1 %v8033_v11 }
 0x1ac   : > { %1897 = vmatpush.msra.mxu0 %v1689_v14 }
 0x1ad   : > { %1886 = vmatmul.f32.gmra.mxu3 %v7944_v9  ;;  %1976 = vmatpush.msra.mxu1 %v8044_v24 }
 0x1ae   : > { %1901 = vmatpush.msra.mxu0 %v1695_v56 }
 0x1af   : > { %1978 = vmatpush.msra.mxu1 %v8058_v38 }
 0x1b0   : > { %1905 = vmatpush.msra.mxu0 %v1701_v50 }
 0x1b1   : > { %1677 = vmatmul.f32.gmra.mxu0 %v7957_v16  ;;  %1980 = vmatpush.msra.mxu1 %v8072_v0 }
 0x1b2   : > { %1909 = vmatpush.msra.mxu0 %v1707_v62 }
 0x1b3   : > { %1982 = vmatpush.msra.mxu1 %v8085_v23 }
 0x1b4   : > { %1913 = vmatpush.msra.mxu0 %v1713_v45 }
 0x1b5   : > { %1984 = vmatpush.msra.mxu1 %v8095_v25 }
 0x1b6   : > { %1917 = vmatpush.msra.mxu0 %v1719_v31 }
 0x1b7   : > { %1986 = vmatpush.msra.mxu1 %v8107_v52 }
 0x1b8   : > { %1921 = vmatpush.msra.mxu0 %v1725_v27 }
 0x1b9   : > { %1988 = vmatpush.msra.mxu1 %v8119_v12 }
 0x1ba   : > { %1925 = vmatpush.msra.mxu0 %v1731_v54 }
 0x1bb   : > { %1990 = vmatpush.msra.mxu1 %v8131_v5 }
 0x1bc   : > { %1929 = vmatpush.msra.mxu0 %v1737_v58 }
 0x1bd   : > { %1992 = vmatpush.msra.mxu1 %v8144_v10 }
 0x1be   : > { %1933 = vmatpush.msra.mxu0 %v1743_v29 }
 0x1bf   : > { %1994 = vmatpush.msra.mxu1 %v8156_v15 }
 0x1c0   : > { %1937 = vmatpush.msra.mxu0 %v1749_v42  ;;  %1996 = vmatmul.f32.vlgmr.msra.gmra.mxu1 %v7904_v49 }
 0x1c2   : > { %1941 = vmatpush.msra.mxu0 %v10079_v6 }
 0x1c4   : > { %1945 = vmatpush.msra.mxu0 %v1761_v43 }
 0x1c6   : > { %1949 = vmatpush.msra.mxu0 %v1767_v48 }
 0x1c8   : > { %1953 = vmatpush.msra.mxu0 %v1773_v40  ;;  %2000 = vmatmul.f32.gmra.mxu1 %v7925_v1 }
 0x1c9   : > { %1955 = vmatmul.f32.vlgmr.msra.gmra.mxu0 %v7904_v49 }
 0x1d1   : > { %1959 = vmatmul.f32.gmra.mxu0 %v7925_v1  ;;  %v6859_v1 = vld [vmem:[%s9990_s8] ss:$0 sm:$0xff] }
 0x1d2   : > { %v995_v39 = vpop.f32.mrf.mxu1 }
 0x1da   : > { %v886_v13 = vpop.f32.mrf.mxu0  ;;  %v1053_v20 = vpop.f32.mrf.mxu2 }
 0x1db   : > { %v999_v22 = vpop.f32.mrf.mxu1  ;;  %v887_v60 = vadd.f32 %v6858_v51, %v886_v13 }
 0x1dc   : > { %v1097_v9 = vpop.f32.mrf.mxu3 }
 0x1dd   : > { %v996_v49 = vadd.f32 %v995_v39, %v887_v60 }
 0x1df   : > { %v1054_v56 = vadd.f32 %v1053_v20, %v996_v49 }
 0x1e1   : > { %v1098_v62 = vadd.f32 %v1097_v9, %v1054_v56 }
 0x1e3   : > { %v1058_v26 = vpop.f32.mrf.mxu2 }
 0x1e4   : > { %v894_v16 = vpop.f32.mrf.mxu0 }
 0x1e5   : > { %v1213_v53 = vpop.f32.mrf.mxu1  ;;  %v895_v7 = vadd.f32 %v6858_v51, %v894_v16 }
 0x1e6   : > { %v1103_v32 = vpop.f32.mrf.mxu3 }
 0x1e7   : > { %v1000_v30 = vadd.f32 %v999_v22, %v895_v7 }
 0x1e9   : > { %v1059_v63 = vadd.f32 %v1058_v26, %v1000_v30 }
 0x1eb   : > { %v1104_v52 = vadd.f32 %v1103_v32, %v1059_v63 }
 0x1ed   : > { %v1278_v59 = vpop.f32.mrf.mxu2 }
 0x1ee   : > { %v1172_v34 = vpop.f32.mrf.mxu0  ;;  %v1279_v50 = vadd.f32 %v6859_v1, %v1278_v59 }
 0x1ef   : > { %v1217_v47 = vpop.f32.mrf.mxu1  ;;  %v1173_v46 = vadd.f32 %v1172_v34, %v1098_v62  ;;  %v752_v62 = vld [vmem:[%s748_s0] sm:$0xff] }
 0x1f0   : > { %v1387_v4 = vpop.f32.mrf.mxu3 }
 0x1f1   : > { %v1388_v38 = vadd.f32 %v1387_v4, %v1279_v50  ;;  %v8291_v21 = vadd.f32 %v1213_v53, %v1173_v46  ;;  %v6860_v4 = vld [vmem:[%s9992_s10] ss:$0 sm:$0xff] }
 0x1f3   : > { %v2022_v35 = vsel %vm2020_vm7, %v8291_v21, 0 }
 0x1f4   : > { %v2051_v29 = vand.u32 4294901760, %v2022_v35 }
 0x1f6   : > { %v2052_v43 = vsub.f32 %v2022_v35, %v2051_v29 }
 0x1f7   : > { %v1286_v11 = vpop.f32.mrf.mxu2 }
 0x1f8   : > { %v1176_v14 = vpop.f32.mrf.mxu0  ;;  %v1287_v27 = vadd.f32 %v6859_v1, %v1286_v11  ;;  %v2053_v41 = vand.u32 4294901760, %v2052_v43 }
 0x1f9   : > { %v1177_v12 = vadd.f32 %v1176_v14, %v1104_v52 }
 0x1fa   : > { %v1391_v24 = vpop.f32.mrf.mxu3  ;;  %v1489_v23 = vpop.f32.mrf.mxu1  ;;  %v2054_v6 = vsub.f32 %v2052_v43, %v2053_v41 }
 0x1fb   : > { %v1392_v58 = vadd.f32 %v1391_v24, %v1287_v27  ;;  %v8297_v10 = vadd.f32 %v1217_v47, %v1177_v12  ;;  %v7228_v24 = vmov 0  }
 0x1fc   : > { %v2055_v16 = vand.u32 4294901760, %v2054_v6  ;;  %6854 = vset.pattern.permute.xlu2 %v7228_v24  ;;  %6855 = vset.pattern.permute.xlu0 %v7228_v24 }
 0x1fd   : > { %v2025_v3 = vsel %vm2020_vm7, %v8297_v10, 0  ;;  %756 = vperm.xlu2 %6854, %v752_v62  }
 0x1fe   : > { %v2059_v37 = vand.u32 4294901760, %v2025_v3 }
 0x200   : > { %v2060_v13 = vsub.f32 %v2025_v3, %v2059_v37 }
 0x202   : > { %v2061_v22 = vand.u32 4294901760, %v2060_v13 }
 0x203   : > { %v1564_v25 = vpop.f32.mrf.mxu2 }
 0x204   : > { %v1495_v42 = vpop.f32.mrf.mxu1  ;;  %v2062_v34 = vsub.f32 %v2060_v13, %v2061_v22 }
 0x205   : > { %v1445_v0 = vpop.f32.mrf.mxu0 }
 0x206   : > { %v1446_v45 = vadd.f32 %v1445_v0, %v1388_v38  ;;  %v1605_v54 = vpop.f32.mrf.mxu3  ;;  %v2063_v53 = vand.u32 4294901760, %v2062_v34 }
 0x208   : > { %v1490_v31 = vadd.f32 %v1489_v23, %v1446_v45  ;;  %v753_v23 = vld [vmem:[%s748_s0 + $0x8] sm:$0xff]  ;;  %s733_s0 = sand.u32 1, %s10114_s29  }
 0x209   : > { %761 = vperm.xlu2 %6854, %v753_v23   ;;  %s6720_s27 = sshll.u32 %s733_s0, 4  ;;  %s6535_s1 = scalar_lea.sflag [#allocation4], %s733_s0 }
 0x20a   : > { %v1565_v19 = vadd.f32 %v1564_v25, %v1490_v31 }
 0x20c   : > { %v8295_v57 = vadd.f32 %v1605_v54, %v1565_v19 }
 0x20d   : > { %v1568_v33 = vpop.f32.mrf.mxu2 }
 0x20e   : > { %v1450_v5 = vpop.f32.mrf.mxu0  ;;  %v2028_v15 = vsel %vm2020_vm7, %v8295_v57, 0 }
 0x20f   : > { %v1451_v2 = vadd.f32 %v1450_v5, %v1392_v58  ;;  %v2049_v48 = vand.u32 4294901760, %v2028_v15 }
 0x210   : > { %v1609_v8 = vpop.f32.mrf.mxu3 }
 0x211   : > { %v1496_v55 = vadd.f32 %v1495_v42, %v1451_v2  ;;  %v2089_v44 = vsub.f32 %v2028_v15, %v2049_v48 }
 0x213   : > { %v1569_v18 = vadd.f32 %v1568_v33, %v1496_v55  ;;  %v2090_v20 = vand.u32 4294901760, %v2089_v44 }
 0x215   : > { %v8303_v17 = vadd.f32 %v1609_v8, %v1569_v18  ;;  %v2091_v32 = vsub.f32 %v2089_v44, %v2090_v20 }
 0x217   : > { %v2031_v40 = vsel %vm2020_vm7, %v8303_v17, 0  ;;  %v2092_v51 = vand.u32 4294901760, %v2091_v32 }
 0x218   : > { %v2047_v36 = vand.u32 4294901760, %v2031_v40 }
 0x21a   : > { %2048 = vmatpush.xpose.msra.mxu2 %v2047_v36  ;;  %v2083_v28 = vsub.f32 %v2031_v40, %v2047_v36  ;;  %2211 = vmatpush.xpose.msrb.mxu1 %v2047_v36 }
 0x21c   : > { %v2084_v39 = vand.u32 4294901760, %v2083_v28 }
 0x21d   : > { %v1779_v59 = vpop.f32.mrf.mxu1 }
 0x21e   : > { %2050 = vmatpush.xpose.msra.mxu2 %v2049_v48  ;;  %2182 = vmatpush.xpose.msrb.mxu0 %v2084_v39  ;;  %v2085_v9 = vsub.f32 %v2083_v28, %v2084_v39 }
 0x21f   : > { %2213 = vmatpush.xpose.msrb.mxu1 %v2049_v48 }
 0x220   : > { %v2086_v26 = vand.u32 4294901760, %v2085_v9 }
 0x221   : > { %2056 = vmatmul.f32.vlgmr.msra.gmra.mxu2 %v2055_v16 }
 0x222   : > { %2119 = vmatpush.xpose.msrb.mxu2 %v2083_v28  ;;  %2215 = vmatmul.f32.vlgmr.msrb.gmra.mxu1 %v2051_v29 }
 0x223   : > { %2087 = vmatpush.xpose.msra.mxu3 %v2086_v26  ;;  %2186 = vmatpush.xpose.msrb.mxu0 %v2090_v20 }
 0x225   : > { %v1783_v14 = vpop.f32.mrf.mxu1  ;;  %v1837_v47 = vpop.f32.mrf.mxu2 }
 0x226   : > { %2122 = vmatpush.xpose.msrb.mxu2 %v2089_v44  ;;  %2188 = vmatmul.f32.vlgmr.msrb.gmra.mxu0 %v2051_v29  ;;  %v1670_v60 = vpop.f32.mrf.mxu0 }
 0x227   : > { %2093 = vmatpush.xpose.msra.mxu3 %v2092_v51  ;;  %v1671_v49 = vadd.f32 %v6860_v4, %v1670_v60 }
 0x228   : > { %v1881_v50 = vpop.f32.mrf.mxu3 }
 0x229   : > { %2064 = vmatmul.f32.gmra.mxu2 %v2063_v53  ;;  %v1780_v1 = vadd.f32 %v1779_v59, %v1671_v49 }
 0x22a   : > { %2095 = vmatmul.f32.vlgmr.msra.gmra.mxu3 %v2051_v29  ;;  %2219 = vmatmul.f32.gmra.mxu1 %v2059_v37 }
 0x22b   : > { %2149 = vmatpush.xpose.msrb.mxu3 %v2047_v36  ;;  %v1838_v7 = vadd.f32 %v1837_v47, %v1780_v1  ;;  %v6861_v36 = vld [vmem:[%s743_s24] ss:$0 sm:$0xff] }
 0x22d   : > { %v1882_v30 = vadd.f32 %v1881_v50, %v1838_v7  ;;  %v1842_v63 = vpop.f32.mrf.mxu2 }
 0x22e   : > { %2192 = vmatmul.f32.gmra.mxu0 %v2059_v37  ;;  %v1678_v56 = vpop.f32.mrf.mxu0 }
 0x22f   : > { %2151 = vmatpush.xpose.msrb.mxu3 %v2049_v48  ;;  %v1679_v11 = vadd.f32 %v6860_v4, %v1678_v56 }
 0x230   : > { %v1887_v27 = vpop.f32.mrf.mxu3 }
 0x231   : > { %2125 = vmatmul.f32.vlgmr.msrb.gmra.mxu2 %v2052_v43  ;;  %v1784_v38 = vadd.f32 %v1783_v14, %v1679_v11 }
 0x232   : > { %2099 = vmatmul.f32.gmra.mxu3 %v2059_v37 }
 0x233   : > { %v1843_v31 = vadd.f32 %v1842_v63, %v1784_v38 }
 0x235   : > { %v1888_v19 = vadd.f32 %v1887_v27, %v1843_v31 }
 0x239   : > { %2130 = vmatmul.f32.gmra.mxu2 %v2060_v13 }
 0x23a   : > { %2155 = vmatmul.f32.vlgmr.msrb.gmra.mxu3 %v2053_v41 }
 0x23d   : > { %v1997_v46 = vpop.f32.mrf.mxu1 }
 0x242   : > { %2161 = vmatmul.f32.gmra.mxu3 %v2061_v22 }
 0x245   : > { %v2001_v12 = vpop.f32.mrf.mxu1 }
 0x246   : > { %v1956_v0 = vpop.f32.mrf.mxu0 }
 0x247   : > { %v1957_v45 = vadd.f32 %v1956_v0, %v1882_v30 }
 0x249   : > { %v8319_v25 = vadd.f32 %v1997_v46, %v1957_v45 }
 0x24b   : > { %v2300_v52 = vand.u32 4294901760, %v8319_v25 }
 0x24d   : > { %v2340_v5 = vsub.f32 %v8319_v25, %v2300_v52 }
 0x24e   : > { %v1960_v54 = vpop.f32.mrf.mxu0 }
 0x24f   : > { %v1961_v35 = vadd.f32 %v1960_v54, %v1888_v19  ;;  %v2341_v42 = vand.u32 4294901760, %v2340_v5 }
 0x251   : > { %v8322_v58 = vadd.f32 %v2001_v12, %v1961_v35  ;;  %v2342_v33 = vsub.f32 %v2340_v5, %v2341_v42 }
 0x253   : > { %v2298_v29 = vand.u32 4294901760, %v8322_v58  ;;  %v2343_v43 = vand.u32 4294901760, %v2342_v33 }
 0x255   : > { %2299 = vmatpush.msra.mxu2 %v2298_v29  ;;  %2400 = vmatpush.msra.mxu1 %v2298_v29  ;;  %v2334_v2 = vsub.f32 %v8322_v58, %v2298_v29 }
 0x257   : > { %2301 = vmatpush.msra.mxu2 %v2300_v52  ;;  %2370 = vmatpush.msra.mxu0 %v2334_v2  ;;  %v2335_v55 = vand.u32 4294901760, %v2334_v2  ;;  %v757_v28 = vpop.permute.xlu2 %756 }
 0x258   : > { %2402 = vmatpush.msra.mxu1 %v2300_v52  ;;  %v8332_v9 = vmul.f32 %v6861_v36, %v757_v28 }
 0x259   : > { %2373 = vmatpush.msra.mxu0 %v2340_v5  ;;  %2433 = vmatpush.msrb.mxu2 %v2335_v55  ;;  %v2336_v15 = vsub.f32 %v2334_v2, %v2335_v55 }
 0x25a   : > { %vm2225_vm8 = vcmp.eq.f32.partialorder %v8332_v9, 0.0 }
 0x25b   : > { %2437 = vmatpush.msrb.mxu2 %v2341_v42  ;;  %v2337_v18 = vand.u32 4294901760, %v2336_v15 }
 0x25d   : > { %2338 = vmatpush.msra.mxu3 %v2337_v18 }
 0x25f   : > { %2344 = vmatpush.msra.mxu3 %v2343_v43 }
 0x261   : > { %2462 = vmatpush.msrb.mxu3 %v2298_v29 }
 0x263   : > { %2464 = vmatpush.msrb.mxu3 %v2300_v52  ;;  %v762_v59 = vpop.permute.xlu2 %761 }
 0x264   : > { %v8338_v56 = vmul.f32 %v6861_v36, %v762_v59 }
 0x266   : > { %vm2226_vm10 = vcmp.eq.f32.partialorder %v8338_v56, 0.0 }
 0x29f   : > { %v2216_v20 = vpop.f32.mrf.mxu1 }
 0x2a3   : > { %v2189_v6 = vpop.f32.mrf.mxu0 }
 0x2a4   : > { %v2057_v8 = vpop.f32.mrf.mxu2 }
 0x2a7   : > { %v2220_v47 = vpop.f32.mrf.mxu1 }
 0x2ab   : > { %v2193_v49 = vpop.f32.mrf.mxu0 }
 0x2ac   : > { %v2065_v48 = vpop.f32.mrf.mxu2 }
 0x2ad   : > { %v2096_v3 = vpop.f32.mrf.mxu3 }
 0x2ae   : > { %v2097_v37 = vadd.f32 %v2096_v3, %v2057_v8 }
 0x2b4   : > { %v2126_v41 = vpop.f32.mrf.mxu2 }
 0x2b5   : > { %v2100_v40 = vpop.f32.mrf.mxu3  ;;  %v2127_v44 = vadd.f32 %v2126_v41, %v2097_v37 }
 0x2b6   : > { %v2101_v26 = vadd.f32 %v2100_v40, %v2065_v48 }
 0x2bc   : > { %v2131_v22 = vpop.f32.mrf.mxu2 }
 0x2bd   : > { %v2156_v13 = vpop.f32.mrf.mxu3  ;;  %v2132_v34 = vadd.f32 %v2131_v22, %v2101_v26 }
 0x2be   : > { %v2157_v39 = vadd.f32 %v2156_v13, %v2127_v44 }
 0x2c0   : > { %v2190_v16 = vadd.f32 %v2189_v6, %v2157_v39 }
 0x2c2   : > { %v2217_v32 = vadd.f32 %v2216_v20, %v2190_v16 }
 0x2c4   : > { %v2223_v51 = vmul.f32 0.17677669, %v2217_v32 }
 0x2c5   : > { %v2162_v53 = vpop.f32.mrf.mxu3 }
 0x2c6   : > { %v2163_v60 = vadd.f32 %v2162_v53, %v2132_v34  ;;  %v2227_v4 = vsel %vm2225_vm8, -1000.0, %v2223_v51 }
 0x2c7   : > { %v2230_v14 = vsel %vm2229_vm9, %v2227_v4, -inf }
 0x2c8   : > { %v2194_v1 = vadd.f32 %v2193_v49, %v2163_v60  ;;  %2231 = vmax.xlane.f32.xlu0 %v2230_v14 }
 0x2ca   : > { %v2221_v7 = vadd.f32 %v2220_v47, %v2194_v1 }
 0x2cc   : > { %v2224_v11 = vmul.f32 0.17677669, %v2221_v7 }
 0x2ce   : > { %v2228_v50 = vsel %vm2226_vm10, -1000.0, %v2224_v11 }
 0x2cf   : > { %v2233_v24 = vsel %vm2229_vm9, %v2228_v50, -inf }
 0x2d0   : > { %2234 = vmax.xlane.f32.xlu1 %v2233_v24 }
 0x2e9   : > { %2480 = vrot.lane.b32.xlu1 %v8303_v17, %s7229_s25 }
 0x2f1   : > { %2474 = vrot.lane.b32.xlu1 %v8291_v21, %s7229_s25 }
 0x33b   : > { %v2232_v62 = vpop.xlane.xlu0 %2231 }
 0x33c   : > { %v2236_v30 = vsub.f32 %v2227_v4, %v2232_v62 }
 0x33e   : > { %v2238_v38 = vmul.f32 1.442695, %v2236_v30 }
 0x340   : > { %6872 = vpow2.f32 %v2238_v38 }
 0x343   : > { %v2235_v46 = vpop.xlane.xlu1 %2234 }
 0x344   : > { %v2237_v0 = vsub.f32 %v2228_v50, %v2235_v46 }
 0x346   : > { %v6873_v45 = vpop.eup %6872  ;;  %v2240_v63 = vmul.f32 1.442695, %v2237_v0 }
 0x347   : > { %v2242_v23 = vsel %vm2229_vm9, %v6873_v45, 0.0 }
 0x348   : > { %6874 = vpow2.f32 %v2240_v63  ;;  %2243 = vadd.xlane.f32.xlu2 %v2242_v23 }
 0x34e   : > { %v6875_v31 = vpop.eup %6874 }
 0x34f   : > { %v2245_v27 = vsel %vm2229_vm9, %v6875_v31, 0.0 }
 0x350   : > { %2246 = vadd.xlane.f32.xlu0 %v2245_v27 }
 0x35b   : > { %v2481_v19 = vpop.permute.xlu1 %2480 }
 0x35c   : > { %v2488_v52 = vsel %vm2020_vm7, %v2481_v19, 0 }
 0x35d   : > { %v8351_v54 = vand.u32 4294901760, %v2488_v52 }
 0x35f   : > { %v8354_v35 = vsub.f32 %v2488_v52, %v8351_v54  ;;  %2505 = vmatpush.xpose.msrb.mxu0 %v8351_v54 }
 0x361   : > { %v2541_v12 = vand.u32 4294901760, %v8354_v35 }
 0x363   : > { %v2542_v5 = vsub.f32 %v8354_v35, %v2541_v12  ;;  %v2475_v44 = vpop.permute.xlu1 %2474 }
 0x364   : > { %2478 = vrot.lane.b32.xlu0 %v8295_v57, %s7229_s25  ;;  %v2482_v22 = vsel %vm2020_vm7, %v2475_v44, 0 }
 0x365   : > { %v2543_v29 = vand.u32 4294901760, %v2542_v5  ;;  %v2508_v53 = vand.u32 4294901760, %v2482_v22 }
 0x367   : > { %2544 = vmatpush.xpose.msrb.mxu1 %v2543_v29  ;;  %v2509_v47 = vsub.f32 %v2482_v22, %v2508_v53 }
 0x369   : > { %v2510_v46 = vand.u32 4294901760, %v2509_v47 }
 0x36b   : > { %v2511_v27 = vsub.f32 %v2509_v47, %v2510_v46 }
 0x36c   : > { %2476 = vrot.lane.b32.xlu0 %v8297_v10, %s7229_s25 }
 0x3bb   : > { %v2244_v2 = vpop.xlane.xlu2 %2243 }
 0x3bc   : > { %6876 = vrcp.f32 %v2244_v2  ;;  %v2259_v18 = vand.u32 2147483648, %v2244_v2  ;;  %v2257_v8 = vand.u32 2147483647, %v2244_v2  ;;  %vm2253_vm12 = vweird.f32 %v2244_v2 }
 0x3be   : > { %v2260_v40 = vor.u32 1.1754944e-38, %v2259_v18  ;;  %vm2258_vm14 = vcmp.eq.f32.partialorder %v2257_v8, 8.507059e+37 }
 0x3c2   : > { %v6877_v42 = vpop.eup %6876 }
 0x3c3   : > { %v2249_v55 = vmul.f32 %v6877_v42, %v2244_v2  ;;  %v2247_v15 = vpop.xlane.xlu0 %2246  ;;  %vm2254_vm11 = vweird.f32 %v6877_v42 }
 0x3c4   : > { %6878 = vrcp.f32 %v2247_v15  ;;  %vm2255_vm13 = vmor %vm2253_vm12, %vm2254_vm11  ;;  %v2274_v13 = vand.u32 2147483648, %v2247_v15  ;;  %v2272_v20 = vand.u32 2147483647, %v2247_v15  ;;  %vm2268_vm0 = vweird.f32 %v2247_v15 }
 0x3c5   : > { %v2250_v33 = vsub.f32 1.0, %v2249_v55 }
 0x3c6   : > { %v2275_v34 = vor.u32 1.1754944e-38, %v2274_v13  ;;  %vm2273_vm2 = vcmp.eq.f32.partialorder %v2272_v20, 8.507059e+37 }
 0x3c7   : > { %v2251_v43 = vmul.f32 %v6877_v42, %v2250_v33 }
 0x3c9   : > { %v2252_v48 = vadd.f32 %v6877_v42, %v2251_v43 }
 0x3ca   : > { %v6879_v3 = vpop.eup %6878 }
 0x3cb   : > { %v2256_v41 = vsel %vm2255_vm13, %v6877_v42, %v2252_v48  ;;  %v2264_v37 = vmul.f32 %v6879_v3, %v2247_v15  ;;  %vm2269_vm15 = vweird.f32 %v6879_v3 }
 0x3cc   : > { %v2261_v36 = vsel %vm2258_vm14, %v2260_v40, %v2256_v41  ;;  %vm2270_vm1 = vmor %vm2268_vm0, %vm2269_vm15 }
 0x3cd   : > { %v2265_v28 = vsub.f32 1.0, %v2264_v37  ;;  %v2262_v6 = vmul.f32 %v6873_v45, %v2261_v36 }
 0x3cf   : > { %v2266_v39 = vmul.f32 %v6879_v3, %v2265_v28  ;;  %v2279_v16 = vsel %vm2229_vm9, %v2262_v6, 0 }
 0x3d0   : > { %v2302_v26 = vand.u32 4294901760, %v2279_v16 }
 0x3d1   : > { %v2267_v32 = vadd.f32 %v6879_v3, %v2266_v39 }
 0x3d2   : > { %2346 = vmatmul.f32.vlgmr.msra.gmra.mxu3 %v2302_v26  ;;  %v2303_v51 = vsub.f32 %v2279_v16, %v2302_v26 }
 0x3d3   : > { %v2271_v59 = vsel %vm2270_vm1, %v6879_v3, %v2267_v32  ;;  %2606 = vmatpush.xpose.msra.mxu3 %v8351_v54 }
 0x3d4   : > { %v2276_v60 = vsel %vm2273_vm2, %v2275_v34, %v2271_v59  ;;  %2376 = vmatmul.f32.vlgmr.msra.gmra.mxu0 %v2303_v51  ;;  %v2304_v4 = vand.u32 4294901760, %v2303_v51 }
 0x3d5   : > { %v2277_v49 = vmul.f32 %v6875_v31, %v2276_v60 }
 0x3d6   : > { %2406 = vmatmul.f32.vlgmr.msra.gmra.mxu1 %v2304_v4  ;;  %v2479_v14 = vpop.permute.xlu0 %2478  ;;  %v2305_v1 = vsub.f32 %v2303_v51, %v2304_v4 }
 0x3d7   : > { %v2486_v7 = vsel %vm2020_vm7, %v2479_v14, 0  ;;  %v2282_v11 = vsel %vm2229_vm9, %v2277_v49, 0 }
 0x3d8   : > { %v2506_v50 = vand.u32 4294901760, %v2486_v7  ;;  %v2306_v24 = vand.u32 4294901760, %v2305_v1  ;;  %v2310_v62 = vand.u32 4294901760, %v2282_v11 }
 0x3da   : > { %v2546_v30 = vsub.f32 %v2486_v7, %v2506_v50  ;;  %2307 = vmatmul.f32.vlgmr.msra.gmra.mxu2 %v2306_v24  ;;  %2350 = vmatmul.f32.gmra.mxu3 %v2310_v62  ;;  %v2311_v38 = vsub.f32 %v2282_v11, %v2310_v62 }
 0x3db   : > { %2507 = vmatpush.xpose.msrb.mxu0 %v2506_v50  ;;  %2576 = vmatpush.xpose.msra.mxu2 %v8354_v35  ;;  %v2512_v35 = vand.u32 4294901760, %v2511_v27 }
 0x3dc   : > { %2608 = vmatpush.xpose.msra.mxu3 %v2506_v50  ;;  %v2312_v0 = vand.u32 4294901760, %v2311_v38  ;;  %v2547_v45 = vand.u32 4294901760, %v2546_v30  ;;  %2381 = vmatmul.f32.gmra.mxu0 %v2311_v38 }
 0x3de   : > { %2412 = vmatmul.f32.gmra.mxu1 %v2312_v0  ;;  %v2477_v63 = vpop.permute.xlu0 %2476  ;;  %v2313_v23 = vsub.f32 %v2311_v38, %v2312_v0  ;;  %v2548_v31 = vsub.f32 %v2546_v30, %v2547_v45 }
 0x3df   : > { %2639 = vmatpush.xpose.msra.mxu0 %v2541_v12  ;;  %v2484_v19 = vsel %vm2020_vm7, %v2477_v63, 0  ;;  %2579 = vmatpush.xpose.msra.mxu2 %v2546_v30 }
 0x3e0   : > { %v2516_v52 = vand.u32 4294901760, %v2484_v19  ;;  %v2314_v5 = vand.u32 4294901760, %v2313_v23  ;;  %v2549_v29 = vand.u32 4294901760, %v2548_v31 }
 0x3e2   : > { %v2517_v2 = vsub.f32 %v2484_v19, %v2516_v52  ;;  %2315 = vmatmul.f32.gmra.mxu2 %v2314_v5  ;;  %2466 = vmatmul.f32.vlgmr.msrb.gmra.mxu3 %v2302_v26 }
 0x3e3   : > { %2643 = vmatpush.xpose.msra.mxu0 %v2547_v45  ;;  %2550 = vmatpush.xpose.msrb.mxu1 %v2549_v29 }
 0x3e4   : > { %v2518_v12 = vand.u32 4294901760, %v2517_v2  ;;  %2513 = vmatmul.f32.vlgmr.msrb.gmra.mxu0 %v2512_v35 }
 0x3e6   : > { %2552 = vmatmul.f32.vlgmr.msrb.gmra.mxu1 %v2508_v53  ;;  %v2519_v42 = vsub.f32 %v2517_v2, %v2518_v12 }
 0x3e7   : > { %2668 = vmatpush.xpose.msra.mxu1 %v8351_v54 }
 0x3e8   : > { %v2520_v55 = vand.u32 4294901760, %v2519_v42 }
 0x3ea   : > { %2439 = vmatmul.f32.vlgmr.msrb.gmra.mxu2 %v2302_v26  ;;  %2470 = vmatmul.f32.gmra.mxu3 %v2310_v62 }
 0x3eb   : > { %2670 = vmatpush.xpose.msra.mxu1 %v2506_v50 }
 0x3ec   : > { %2521 = vmatmul.f32.gmra.mxu0 %v2520_v55 }
 0x3ee   : > { %2556 = vmatmul.f32.gmra.mxu1 %v2516_v52 }
 0x3f2   : > { %2443 = vmatmul.f32.gmra.mxu2 %v2310_v62  ;;  %2612 = vmatmul.f32.vlgmr.msra.gmra.mxu3 %v2510_v46 }
 0x3f4   : > { %2645 = vmatmul.f32.vlgmr.msra.gmra.mxu0 %v2508_v53 }
 0x3f6   : > { %2672 = vmatmul.f32.vlgmr.msra.gmra.mxu1 %v2508_v53 }
 0x3fa   : > { %2582 = vmatmul.f32.vlgmr.msra.gmra.mxu2 %v2509_v47  ;;  %2618 = vmatmul.f32.gmra.mxu3 %v2518_v12 }
 0x3fc   : > { %2649 = vmatmul.f32.gmra.mxu0 %v2516_v52 }
 0x3fe   : > { %2676 = vmatmul.f32.gmra.mxu1 %v2516_v52 }
 0x402   : > { %2587 = vmatmul.f32.gmra.mxu2 %v2517_v2 }
 0x451   : > { %v8377_v15 = vpop.f32.mrf.mxu0 }
 0x453   : > { %v8379_v33 = vpop.f32.mrf.mxu1 }
 0x455   : > { %v8375_v54 = vpop.f32.mrf.mxu3 }
 0x459   : > { %v8385_v8 = vpop.f32.mrf.mxu0 }
 0x45b   : > { %v8387_v48 = vpop.f32.mrf.mxu1 }
 0x45d   : > { %v8381_v18 = vpop.f32.mrf.mxu2  ;;  %v8383_v43 = vpop.f32.mrf.mxu3 }
 0x461   : > { %v2514_v41 = vpop.f32.mrf.mxu0 }
 0x463   : > { %v2553_v37 = vpop.f32.mrf.mxu1 }
 0x464   : > { %v2554_v39 = vadd.f32 %v2553_v37, %v2514_v41 }
 0x465   : > { %v8389_v3 = vpop.f32.mrf.mxu2  ;;  %v8391_v40 = vpop.f32.mrf.mxu3 }
 0x469   : > { %v2522_v28 = vpop.f32.mrf.mxu0 }
 0x46b   : > { %v2557_v13 = vpop.f32.mrf.mxu1 }
 0x46c   : > { %v2558_v53 = vadd.f32 %v2557_v13, %v2522_v28 }
 0x46d   : > { %v8393_v36 = vpop.f32.mrf.mxu2  ;;  %v8395_v44 = vpop.f32.mrf.mxu3 }
 0x471   : > { %v2646_v26 = vpop.f32.mrf.mxu0 }
 0x473   : > { %v2673_v34 = vpop.f32.mrf.mxu1 }
 0x475   : > { %v8397_v6 = vpop.f32.mrf.mxu2  ;;  %v2613_v20 = vpop.f32.mrf.mxu3 }
 0x479   : > { %v2650_v7 = vpop.f32.mrf.mxu0 }
 0x47b   : > { %v2677_v24 = vpop.f32.mrf.mxu1 }
 0x47d   : > { %v2583_v16 = vpop.f32.mrf.mxu2  ;;  %v2619_v14 = vpop.f32.mrf.mxu3 }
 0x47e   : > { %v2584_v22 = vadd.f32 %v2583_v16, %v2554_v39 }
 0x480   : > { %v2614_v32 = vadd.f32 %v2613_v20, %v2584_v22 }
 0x482   : > { %v2647_v51 = vadd.f32 %v2646_v26, %v2614_v32 }
 0x484   : > { %v2674_v59 = vadd.f32 %v2673_v34, %v2647_v51 }
 0x485   : > { %v2588_v60 = vpop.f32.mrf.mxu2 }
 0x486   : > { %v2589_v4 = vadd.f32 %v2588_v60, %v2558_v53  ;;  %v2680_v49 = vmul.f32 0.17677669, %v2674_v59 }
 0x488   : > { %v2620_v1 = vadd.f32 %v2619_v14, %v2589_v4  ;;  %v2682_v47 = vsel %vm2225_vm8, -1000.0, %v2680_v49 }
 0x489   : > { %v2684_v11 = vsel %vm2229_vm9, %v2682_v47, -inf }
 0x48a   : > { %v2651_v50 = vadd.f32 %v2650_v7, %v2620_v1  ;;  %2685 = vmax.xlane.f32.xlu1 %v2684_v11 }
 0x48c   : > { %v2678_v62 = vadd.f32 %v2677_v24, %v2651_v50 }
 0x48e   : > { %v2681_v30 = vmul.f32 0.17677669, %v2678_v62 }
 0x490   : > { %v2683_v38 = vsel %vm2226_vm10, -1000.0, %v2681_v30 }
 0x491   : > { %v2687_v46 = vsel %vm2229_vm9, %v2683_v38, -inf }
 0x492   : > { %2688 = vmax.xlane.f32.xlu2 %v2687_v46 }
 0x4a3   : > { %3386 = vrot.lane.b32.xlu1 %v8303_v17, %s7230_s26 }
 0x4aa   : > { %2736 = vrot.lane.b32.xlu2 %v8322_v58, %s7229_s25 }
 0x4fd   : > { %v2686_v0 = vpop.xlane.xlu1 %2685 }
 0x4fe   : > { %v2690_v45 = vsub.f32 %v2682_v47, %v2686_v0 }
 0x500   : > { %v2692_v63 = vmul.f32 1.442695, %v2690_v45 }
 0x502   : > { %6880 = vpow2.f32 %v2692_v63 }
 0x505   : > { %v2689_v23 = vpop.xlane.xlu2 %2688 }
 0x506   : > { %v2691_v31 = vsub.f32 %v2683_v38, %v2689_v23 }
 0x508   : > { %v6881_v27 = vpop.eup %6880  ;;  %v2694_v19 = vmul.f32 1.442695, %v2691_v31 }
 0x509   : > { %v2696_v52 = vsel %vm2229_vm9, %v6881_v27, 0.0 }
 0x50a   : > { %6882 = vpow2.f32 %v2694_v19  ;;  %2697 = vadd.xlane.f32.xlu0 %v2696_v52 }
 0x50d   : > { %v2737_v5 = vpop.permute.xlu2 %2736 }
 0x50e   : > { %v8410_v29 = vand.u32 4294901760, %v2737_v5 }
 0x510   : > { %v8412_v2 = vpop.eup %6882  ;;  %v2796_v35 = vsub.f32 %v2737_v5, %v8410_v29  ;;  %2761 = vmatpush.msrb.mxu2 %v8410_v29  ;;  %2862 = vmatpush.msrb.mxu1 %v8410_v29 }
 0x511   : > { %v2699_v12 = vsel %vm2229_vm9, %v8412_v2, 0.0 }
 0x512   : > { %v2797_v42 = vand.u32 4294901760, %v2796_v35  ;;  %2700 = vadd.xlane.f32.xlu2 %v2699_v12  ;;  %2832 = vmatpush.msrb.mxu0 %v2796_v35 }
 0x514   : > { %v2798_v55 = vsub.f32 %v2796_v35, %v2797_v42 }
 0x516   : > { %v2799_v41 = vand.u32 4294901760, %v2798_v55 }
 0x518   : > { %2800 = vmatpush.msrb.mxu3 %v2799_v41 }
 0x51e   : > { %3384 = vrot.lane.b32.xlu0 %v8295_v57, %s7230_s26 }
 0x52a   : > { %2734 = vrot.lane.b32.xlu2 %v8319_v25, %s7229_s25  ;;  %s735_s25 = scalar_lea.vmem [#allocation14], %s6720_s27 }
 0x52b   : > { %s6547_s22 = sshll.u32 %s735_s25, 4  ;;  %s6548_s22 = int_to_ptr.vmem [resolvable:$true] %s6547_s22 }
 0x532   : > { %3380 = vrot.lane.b32.xlu2 %v8291_v21, %s7230_s26 }
 0x53a   : > { %3382 = vrot.lane.b32.xlu2 %v8297_v10, %s7230_s26 }
 0x57d   : > { %v2698_v37 = vpop.xlane.xlu0 %2697 }
 0x57e   : > { %6884 = vrcp.f32 %v2698_v37  ;;  %v2713_v16 = vand.u32 2147483648, %v2698_v37  ;;  %v2711_v26 = vand.u32 2147483647, %v2698_v37  ;;  %vm2707_vm4 = vweird.f32 %v2698_v37 }
 0x580   : > { %v2714_v51 = vor.u32 1.1754944e-38, %v2713_v16  ;;  %vm2712_vm6 = vcmp.eq.f32.partialorder %v2711_v26, 8.507059e+37 }
 0x584   : > { %v6885_v28 = vpop.eup %6884 }
 0x585   : > { %v2703_v13 = vmul.f32 %v6885_v28, %v2698_v37  ;;  %v2701_v39 = vpop.xlane.xlu2 %2700  ;;  %vm2708_vm3 = vweird.f32 %v6885_v28 }
 0x586   : > { %6886 = vrcp.f32 %v2701_v39  ;;  %vm2709_vm5 = vmor %vm2707_vm4, %vm2708_vm3  ;;  %v2728_v11 = vand.u32 2147483648, %v2701_v39  ;;  %v2726_v24 = vand.u32 2147483647, %v2701_v39  ;;  %vm2722_vm12 = vweird.f32 %v2701_v39 }
 0x587   : > { %v2704_v20 = vsub.f32 1.0, %v2703_v13 }
 0x588   : > { %v2729_v45 = vor.u32 1.1754944e-38, %v2728_v11  ;;  %vm2727_vm14 = vcmp.eq.f32.partialorder %v2726_v24, 8.507059e+37  ;;  %v2007_v24 = vld [vmem:[#allocation10 + $0x18] sm:$0xff] }
 0x589   : > { %v2705_v22 = vmul.f32 %v6885_v28, %v2704_v20  ;;  %v2009_v20 = vld [vmem:[#allocation10 + $0x28] sm:$0xff] }
 0x58a   : > { %v2958_v26 = vand.u32 4294901760, %v2009_v20 }
 0x58b   : > { %v2706_v32 = vadd.f32 %v6885_v28, %v2705_v22 }
 0x58c   : > { %v6887_v34 = vpop.eup %6886 }
 0x58d   : > { %v2710_v53 = vsel %vm2709_vm5, %v6885_v28, %v2706_v32  ;;  %v2718_v59 = vmul.f32 %v6887_v34, %v2701_v39  ;;  %v2735_v60 = vpop.permute.xlu2 %2734  ;;  %vm2723_vm11 = vweird.f32 %v6887_v34  ;;  %v2010_v28 = vld [vmem:[#allocation10 + $0x30] sm:$0xff]  ;;  %v2008_v32 = vld [vmem:[#allocation10 + $0x20] sm:$0xff] }
 0x58e   : > { %v2715_v4 = vsel %vm2712_vm6, %v2714_v51, %v2710_v53  ;;  %v2762_v49 = vand.u32 4294901760, %v2735_v60  ;;  %vm2724_vm13 = vmor %vm2722_vm12, %vm2723_vm11  ;;  %v2956_v39 = vand.u32 4294901760, %v2010_v28  ;;  %v3004_v53 = vsub.f32 %v2009_v20, %v2958_v26 }
 0x58f   : > { %v2719_v14 = vsub.f32 1.0, %v2718_v59  ;;  %v2716_v1 = vmul.f32 %v6881_v27, %v2715_v4  ;;  %v2960_v59 = vand.u32 4294901760, %v2008_v32 }
 0x590   : > { %v2802_v47 = vsub.f32 %v2735_v60, %v2762_v49  ;;  %2763 = vmatpush.msrb.mxu2 %v2762_v49  ;;  %2864 = vmatpush.msrb.mxu1 %v2762_v49  ;;  %v2998_v22 = vsub.f32 %v2010_v28, %v2956_v39 }
 0x591   : > { %v2720_v7 = vmul.f32 %v6887_v34, %v2719_v14  ;;  %v2741_v50 = vsel %vm2229_vm9, %v2716_v1, 0  ;;  %v3010_v14 = vsub.f32 %v2008_v32, %v2960_v59 }
 0x592   : > { %2895 = vmatpush.msra.mxu2 %v2797_v42  ;;  %2835 = vmatpush.msrb.mxu0 %v2802_v47  ;;  %v2803_v62 = vand.u32 4294901760, %v2802_v47  ;;  %v2764_v30 = vand.u32 4294901760, %v2741_v50  ;;  %v2999_v51 = vand.u32 4294901760, %v2998_v22 }
 0x593   : > { %v2721_v38 = vadd.f32 %v6887_v34, %v2720_v7  ;;  %v3011_v7 = vand.u32 4294901760, %v3010_v14 }
 0x594   : > { %2899 = vmatpush.msra.mxu2 %v2803_v62  ;;  %v2765_v46 = vsub.f32 %v2741_v50, %v2764_v30  ;;  %v2804_v0 = vsub.f32 %v2802_v47, %v2803_v62  ;;  %v3000_v4 = vsub.f32 %v2998_v22, %v2999_v51  ;;  %v8431_v62 = vand.u32 4294901760, %v2007_v24 }
 0x595   : > { %v2725_v63 = vsel %vm2724_vm13, %v6887_v34, %v2721_v38  ;;  %v3012_v50 = vsub.f32 %v3010_v14, %v3011_v7  ;;  %v2006_v38 = vld [vmem:[#allocation10 + $0x10] sm:$0xff] }
 0x596   : > { %2838 = vmatmul.f32.vlgmr.msrb.gmra.mxu0 %v2765_v46  ;;  %v2805_v23 = vand.u32 4294901760, %v2804_v0  ;;  %v2766_v31 = vand.u32 4294901760, %v2765_v46  ;;  %v2730_v27 = vsel %vm2727_vm14, %v2729_v45, %v2725_v63  ;;  %v3001_v1 = vand.u32 4294901760, %v3000_v4  ;;  %v2005_v45 = vld [vmem:[#allocation10 + $0x8] sm:$0xff] }
 0x597   : > { %v2731_v52 = vmul.f32 %v8412_v2, %v2730_v27  ;;  %v2011_v2 = vld [vmem:[#allocation10 + $0x38] sm:$0xff]  ;;  %v8437_v0 = vand.u32 4294901760, %v2006_v38 }
 0x598   : > { %2806 = vmatpush.msrb.mxu3 %v2805_v23  ;;  %2868 = vmatmul.f32.vlgmr.msrb.gmra.mxu1 %v2766_v31  ;;  %v2767_v19 = vsub.f32 %v2765_v46, %v2766_v31  ;;  %v8435_v46 = vsub.f32 %v2007_v24, %v8431_v62  ;;  %v8441_v23 = vand.u32 4294901760, %v2005_v45 }
 0x599   : > { %2808 = vmatmul.f32.vlgmr.msrb.gmra.mxu3 %v2764_v30  ;;  %v2744_v35 = vsel %vm2229_vm9, %v2731_v52, 0  ;;  %v8444_v31 = vsub.f32 %v2006_v38, %v8437_v0 }
 0x59a   : > { %2924 = vmatpush.msra.mxu3 %v8410_v29  ;;  %v2768_v5 = vand.u32 4294901760, %v2767_v19  ;;  %v2772_v12 = vand.u32 4294901760, %v2744_v35  ;;  %v2954_v29 = vand.u32 4294901760, %v2011_v2  ;;  %v3215_v63 = vand.u32 4294901760, %v8435_v46  ;;  %v2004_v19 = vld [vmem:[#allocation10] sm:$0xff] }
 0x59c   : > { %2926 = vmatpush.msra.mxu3 %v2762_v49  ;;  %2769 = vmatmul.f32.vlgmr.msrb.gmra.mxu2 %v2768_v5  ;;  %v2773_v42 = vsub.f32 %v2744_v35, %v2772_v12  ;;  %v2992_v13 = vsub.f32 %v2011_v2, %v2954_v29  ;;  %v3005_v49 = vand.u32 4294901760, %v3004_v53  ;;  %v3216_v52 = vsub.f32 %v8435_v46, %v3215_v63 }
 0x59d   : > { %2955 = vmatpush.msra.mxu0 %v2954_v29  ;;  %v3221_v5 = vand.u32 4294901760, %v8444_v31  ;;  %v8451_v35 = vand.u32 4294901760, %v2004_v19 }
 0x59e   : > { %2843 = vmatmul.f32.gmra.mxu0 %v2773_v42  ;;  %v2774_v55 = vand.u32 4294901760, %v2773_v42  ;;  %3072 = vmatpush.msrb.mxu3 %v2954_v29  ;;  %v2993_v16 = vand.u32 4294901760, %v2992_v13  ;;  %v3006_v47 = vsub.f32 %v3004_v53, %v3005_v49 }
 0x59f   : > { %3038 = vmatpush.msrb.mxu2 %v2992_v13  ;;  %2957 = vmatpush.msra.mxu0 %v2956_v39  ;;  %v8462_v2 = vsub.f32 %v2004_v19, %v8451_v35 }
 0x5a0   : > { %2874 = vmatmul.f32.gmra.mxu1 %v2774_v55  ;;  %v2775_v41 = vsub.f32 %v2773_v42, %v2774_v55  ;;  %3074 = vmatpush.msrb.mxu3 %v2956_v39  ;;  %v2994_v34 = vsub.f32 %v2992_v13, %v2993_v16  ;;  %v3007_v11 = vand.u32 4294901760, %v3006_v47  ;;  %v3217_v55 = vand.u32 4294901760, %v3216_v52 }
 0x5a1   : > { %2812 = vmatmul.f32.gmra.mxu3 %v2772_v12  ;;  %3041 = vmatpush.msrb.mxu2 %v2998_v22  ;;  %v3233_v13 = vand.u32 4294901760, %v8462_v2 }
 0x5a2   : > { %v2776_v37 = vand.u32 4294901760, %v2775_v41  ;;  %3076 = vmatpush.msrb.mxu3 %v2958_v26  ;;  %2959 = vmatpush.msra.mxu0 %v2958_v26  ;;  %v2995_v60 = vand.u32 4294901760, %v2994_v34  ;;  %v3222_v41 = vsub.f32 %v8444_v31, %v3221_v5 }
 0x5a3   : > { %3044 = vmatpush.msrb.mxu2 %v3004_v53 }
 0x5a4   : > { %2777 = vmatmul.f32.gmra.mxu2 %v2776_v37  ;;  %3078 = vmatpush.msrb.mxu3 %v2960_v59 }
 0x5a5   : > { %2961 = vmatpush.msra.mxu0 %v2960_v59  ;;  %2996 = vmatpush.msra.mxu1 %v2995_v60 }
 0x5a6   : > { %3047 = vmatpush.msrb.mxu2 %v3010_v14 }
 0x5a7   : > { %3107 = vmatpush.msrb.mxu0 %v2993_v16  ;;  %3002 = vmatpush.msra.mxu1 %v3001_v1  ;;  %v3234_v16 = vsub.f32 %v8462_v2, %v3233_v13 }
 0x5a9   : > { %2928 = vmatmul.f32.vlgmr.msra.gmra.mxu3 %v2764_v30  ;;  %3111 = vmatpush.msrb.mxu0 %v2999_v51  ;;  %v3235_v22 = vand.u32 4294901760, %v3234_v16 }
 0x5aa   : > { %3008 = vmatpush.msra.mxu1 %v3007_v11  ;;  %3218 = vmatpush.msra.mxu3 %v3217_v55  ;;  %v3387_v11 = vpop.permute.xlu1 %3386 }
 0x5ab   : > { %3115 = vmatpush.msrb.mxu0 %v3005_v49 }
 0x5ac   : > { %2901 = vmatmul.f32.vlgmr.msra.gmra.mxu2 %v2764_v30  ;;  %v3013_v30 = vand.u32 4294901760, %v3012_v50 }
 0x5ad   : > { %3177 = vmatpush.msra.mxu2 %v8431_v62  ;;  %3119 = vmatpush.msrb.mxu0 %v3011_v7 }
 0x5ae   : > { %3014 = vmatpush.msra.mxu1 %v3013_v30 }
 0x5af   : > { %3179 = vmatpush.msra.mxu2 %v8437_v0 }
 0x5b0   : > { %3142 = vmatpush.msrb.mxu1 %v2954_v29  ;;  %v3223_v29 = vand.u32 4294901760, %v3222_v41 }
 0x5b1   : > { %2932 = vmatmul.f32.gmra.mxu3 %v2772_v12  ;;  %3181 = vmatpush.msra.mxu2 %v8441_v23 }
 0x5b2   : > { %3144 = vmatpush.msrb.mxu1 %v2956_v39  ;;  %v2348_v39 = vadd.f32 %v8375_v54, %v8381_v18  ;;  %3224 = vmatpush.msra.mxu3 %v3223_v29 }
 0x5b3   : > { %3183 = vmatpush.msra.mxu2 %v8451_v35 }
 0x5b4   : > { %2905 = vmatmul.f32.gmra.mxu2 %v2772_v12  ;;  %v8454_v12 = vsub.f32 %v2005_v45, %v8441_v23  ;;  %3146 = vmatpush.msrb.mxu1 %v2958_v26  ;;  %v2378_v32 = vadd.f32 %v8377_v15, %v2348_v39 }
 0x5b6   : > { %v3227_v37 = vand.u32 4294901760, %v8454_v12  ;;  %3148 = vmatpush.msrb.mxu1 %v2960_v59  ;;  %v2352_v59 = vadd.f32 %v8383_v43, %v8389_v3  ;;  %v2408_v54 = vadd.f32 %v8379_v33, %v2378_v32  ;;  %v3394_v33 = vsel %vm2020_vm7, %v3387_v11, 0 }
 0x5b8   : > { %v3228_v28 = vsub.f32 %v8454_v12, %v3227_v37  ;;  %v2441_v4 = vadd.f32 %v8393_v36, %v2408_v54  ;;  %v2383_v49 = vadd.f32 %v8385_v8, %v2352_v59  ;;  %v3385_v8 = vpop.permute.xlu0 %3384 }
 0x5ba   : > { %v3229_v20 = vand.u32 4294901760, %v3228_v28  ;;  %v2468_v15 = vadd.f32 %v8391_v40, %v2441_v4  ;;  %v2414_v30 = vadd.f32 %v8387_v48, %v2383_v49  ;;  %v8487_v40 = vand.u32 4294901760, %v3394_v33 }
 0x5bb   : > { %v3392_v48 = vsel %vm2020_vm7, %v3385_v8, 0 }
 0x5bc   : > { %3230 = vmatpush.msra.mxu3 %v3229_v20  ;;  %v3159_v38 = vsel %vm2020_vm7, %v2468_v15, 0  ;;  %v2445_v36 = vadd.f32 %v8397_v6, %v2414_v30  ;;  %v8497_v20 = vsub.f32 %v3394_v33, %v8487_v40  ;;  %v8499_v16 = vand.u32 4294901760, %v3392_v48 }
 0x5be   : > { %3236 = vmatpush.msra.mxu3 %v3235_v22  ;;  %v2472_v6 = vadd.f32 %v8395_v44, %v2445_v36  ;;  %v8515_v59 = vsub.f32 %v3392_v48, %v8499_v16 }
 0x5c0   : > { %v3162_v32 = vsel %vm2020_vm7, %v2472_v6, 0  ;;  %v3453_v4 = vand.u32 4294901760, %v8515_v59 }
 0x613   : > { %v2839_v51 = vpop.f32.mrf.mxu0 }
 0x615   : > { %v2869_v60 = vpop.f32.mrf.mxu1 }
 0x61b   : > { %v2844_v24 = vpop.f32.mrf.mxu0 }
 0x61c   : > { %v2809_v27 = vpop.f32.mrf.mxu3 }
 0x61f   : > { %v2770_v42 = vpop.f32.mrf.mxu2 }
 0x620   : > { %v2810_v34 = vadd.f32 %v2809_v27, %v2770_v42  ;;  %v2875_v27 = vpop.f32.mrf.mxu1  ;;  %v8489_v42 = vand.u32 4294901760, %v3159_v38 }
 0x622   : > { %v2840_v18 = vadd.f32 %v2839_v51, %v2810_v34 }
 0x624   : > { %v2813_v26 = vpop.f32.mrf.mxu3  ;;  %v2870_v1 = vadd.f32 %v2869_v60, %v2840_v18  ;;  %v3192_v18 = vand.u32 4294901760, %v3162_v32 }
 0x626   : > { %v3193_v49 = vsub.f32 %v3162_v32, %v3192_v18 }
 0x627   : > { %v2778_v53 = vpop.f32.mrf.mxu2 }
 0x628   : > { %v2814_v14 = vadd.f32 %v2813_v26, %v2778_v53  ;;  %v8505_v26 = vsub.f32 %v3159_v38, %v8489_v42 }
 0x62a   : > { %v2845_v43 = vadd.f32 %v2844_v24, %v2814_v14  ;;  %v3186_v54 = vand.u32 4294901760, %v8505_v26 }
 0x62c   : > { %v2929_v47 = vpop.f32.mrf.mxu3  ;;  %v2876_v52 = vadd.f32 %v2875_v27, %v2845_v43 }
 0x62f   : > { %v2902_v7 = vpop.f32.mrf.mxu2 }
 0x630   : > { %v2903_v50 = vadd.f32 %v2902_v7, %v2870_v1  ;;  %v3454_v1 = vsub.f32 %v8515_v59, %v3453_v4 }
 0x632   : > { %v2930_v3 = vadd.f32 %v2929_v47, %v2903_v50 }
 0x634   : > { %v2937_v45 = vsel %vm2020_vm7, %v2930_v3, 0  ;;  %v2933_v28 = vpop.f32.mrf.mxu3 }
 0x635   : > { %v8485_v19 = vand.u32 4294901760, %v2937_v45 }
 0x637   : > { %v2963_v55 = vsub.f32 %v2937_v45, %v8485_v19  ;;  %v2906_v41 = vpop.f32.mrf.mxu2  ;;  %3016 = vmatmul.f32.vlgmr.msra.gmra.mxu1 %v8485_v19 }
 0x638   : > { %v2907_v29 = vadd.f32 %v2906_v41, %v2876_v52  ;;  %3294 = vmatpush.msra.mxu1 %v8431_v62 }
 0x639   : > { %3050 = vmatmul.f32.vlgmr.msrb.gmra.mxu2 %v2963_v55  ;;  %v2964_v39 = vand.u32 4294901760, %v2963_v55 }
 0x63a   : > { %v2934_v22 = vadd.f32 %v2933_v28, %v2907_v29  ;;  %3296 = vmatpush.msra.mxu1 %v8437_v0  ;;  %3329 = vmatpush.msrb.mxu2 %v3215_v63  ;;  %v3447_v63 = vand.u32 4294901760, %v8497_v20 }
 0x63b   : > { %3082 = vmatmul.f32.vlgmr.msrb.gmra.mxu3 %v2964_v39  ;;  %v2965_v44 = vsub.f32 %v2963_v55, %v2964_v39 }
 0x63c   : > { %v2940_v34 = vsel %vm2020_vm7, %v2934_v22, 0  ;;  %3298 = vmatpush.msra.mxu1 %v8441_v23  ;;  %3333 = vmatpush.msrb.mxu2 %v3221_v5  ;;  %v3448_v60 = vsub.f32 %v8497_v20, %v3447_v63 }
 0x63d   : > { %v2970_v51 = vand.u32 4294901760, %v2940_v34  ;;  %v2966_v53 = vand.u32 4294901760, %v2965_v44  ;;  %3364 = vmatpush.msrb.mxu3 %v8431_v62 }
 0x63e   : > { %3300 = vmatpush.msra.mxu1 %v8451_v35  ;;  %3337 = vmatpush.msrb.mxu2 %v3227_v37  ;;  %v3187_v37 = vsub.f32 %v8505_v26, %v3186_v54 }
 0x63f   : > { %2967 = vmatmul.f32.vlgmr.msra.gmra.mxu0 %v2966_v53  ;;  %3020 = vmatmul.f32.gmra.mxu1 %v2970_v51  ;;  %v2971_v5 = vsub.f32 %v2940_v34, %v2970_v51 }
 0x640   : > { %3366 = vmatpush.msrb.mxu3 %v8437_v0  ;;  %3260 = vmatpush.msra.mxu0 %v8435_v46  ;;  %v3449_v0 = vand.u32 4294901760, %v3448_v60  ;;  %v3188_v47 = vand.u32 4294901760, %v3187_v37 }
 0x641   : > { %3055 = vmatmul.f32.gmra.mxu2 %v2971_v5  ;;  %v2972_v62 = vand.u32 4294901760, %v2971_v5 }
 0x642   : > { %3341 = vmatpush.msrb.mxu2 %v3233_v13  ;;  %3368 = vmatpush.msrb.mxu3 %v8441_v23  ;;  %v3194_v23 = vand.u32 4294901760, %v3193_v49 }
 0x643   : > { %3088 = vmatmul.f32.gmra.mxu3 %v2972_v62  ;;  %v2973_v14 = vsub.f32 %v2971_v5, %v2972_v62  ;;  %3263 = vmatpush.msra.mxu0 %v8444_v31  ;;  %v3455_v31 = vand.u32 4294901760, %v3454_v1 }
 0x644   : > { %3370 = vmatpush.msrb.mxu3 %v8451_v35  ;;  %v3195_v35 = vsub.f32 %v3193_v49, %v3194_v23 }
 0x645   : > { %v2974_v46 = vand.u32 4294901760, %v2973_v14  ;;  %3266 = vmatpush.msra.mxu0 %v8454_v12 }
 0x646   : > { %v3196_v12 = vand.u32 4294901760, %v3195_v35 }
 0x647   : > { %2975 = vmatmul.f32.gmra.mxu0 %v2974_v46  ;;  %3150 = vmatmul.f32.vlgmr.msrb.gmra.mxu1 %v8485_v19 }
 0x648   : > { %3450 = vmatpush.xpose.msrb.mxu1 %v3449_v0  ;;  %3269 = vmatpush.msra.mxu0 %v8462_v2  ;;  %v3381_v2 = vpop.permute.xlu2 %3380 }
 0x649   : > { %3189 = vmatmul.f32.vlgmr.msra.gmra.mxu2 %v3188_v47  ;;  %v3388_v13 = vsel %vm2020_vm7, %v3381_v2, 0 }
 0x64a   : > { %3482 = vmatpush.xpose.msra.mxu2 %v8497_v20  ;;  %v3414_v7 = vand.u32 4294901760, %v3388_v13 }
 0x64b   : > { %3238 = vmatmul.f32.vlgmr.msra.gmra.mxu3 %v8489_v42 }
 0x64c   : > { %3456 = vmatpush.xpose.msrb.mxu1 %v3455_v31  ;;  %3512 = vmatpush.xpose.msra.mxu3 %v8487_v40  ;;  %v3415_v11 = vsub.f32 %v3388_v13, %v3414_v7 }
 0x64e   : > { %3485 = vmatpush.xpose.msra.mxu2 %v8515_v59  ;;  %v3416_v24 = vand.u32 4294901760, %v3415_v11 }
 0x64f   : > { %3121 = vmatmul.f32.vlgmr.msrb.gmra.mxu0 %v8485_v19  ;;  %3154 = vmatmul.f32.gmra.mxu1 %v2970_v51 }
 0x650   : > { %3411 = vmatpush.xpose.msrb.mxu0 %v8487_v40  ;;  %3514 = vmatpush.xpose.msra.mxu3 %v8499_v16  ;;  %v3383_v15 = vpop.permute.xlu2 %3382  ;;  %v3417_v43 = vsub.f32 %v3415_v11, %v3416_v24 }
 0x651   : > { %3197 = vmatmul.f32.gmra.mxu2 %v3196_v12  ;;  %v3390_v50 = vsel %vm2020_vm7, %v3383_v15, 0 }
 0x652   : > { %v3422_v30 = vand.u32 4294901760, %v3390_v50  ;;  %v3418_v33 = vand.u32 4294901760, %v3417_v43 }
 0x653   : > { %3242 = vmatmul.f32.gmra.mxu3 %v3192_v18 }
 0x654   : > { %3413 = vmatpush.xpose.msrb.mxu0 %v8499_v16  ;;  %v3423_v3 = vsub.f32 %v3390_v50, %v3422_v30 }
 0x656   : > { %v3424_v38 = vand.u32 4294901760, %v3423_v3 }
 0x657   : > { %3125 = vmatmul.f32.gmra.mxu0 %v2970_v51  ;;  %3304 = vmatmul.f32.vlgmr.msra.gmra.mxu1 %v3186_v54 }
 0x658   : > { %3574 = vmatpush.xpose.msra.mxu1 %v8487_v40  ;;  %v3425_v36 = vsub.f32 %v3423_v3, %v3424_v38 }
 0x659   : > { %3343 = vmatmul.f32.vlgmr.msrb.gmra.mxu2 %v8489_v42 }
 0x65a   : > { %v3426_v8 = vand.u32 4294901760, %v3425_v36 }
 0x65b   : > { %3372 = vmatmul.f32.vlgmr.msrb.gmra.mxu3 %v8489_v42 }
 0x65c   : > { %3576 = vmatpush.xpose.msra.mxu1 %v8499_v16 }
 0x65f   : > { %3272 = vmatmul.f32.vlgmr.msra.gmra.mxu0 %v8505_v26  ;;  %3310 = vmatmul.f32.gmra.mxu1 %v3194_v23 }
 0x660   : > { %3545 = vmatpush.xpose.msra.mxu0 %v3447_v63 }
 0x661   : > { %3347 = vmatmul.f32.gmra.mxu2 %v3192_v18 }
 0x663   : > { %3376 = vmatmul.f32.gmra.mxu3 %v3192_v18 }
 0x664   : > { %3549 = vmatpush.xpose.msra.mxu0 %v3453_v4 }
 0x667   : > { %3277 = vmatmul.f32.gmra.mxu0 %v3193_v49  ;;  %3458 = vmatmul.f32.vlgmr.msrb.gmra.mxu1 %v3414_v7 }
 0x669   : > { %3488 = vmatmul.f32.vlgmr.msra.gmra.mxu2 %v3415_v11 }
 0x66b   : > { %3518 = vmatmul.f32.vlgmr.msra.gmra.mxu3 %v3416_v24 }
 0x66f   : > { %3419 = vmatmul.f32.vlgmr.msrb.gmra.mxu0 %v3418_v33  ;;  %3462 = vmatmul.f32.gmra.mxu1 %v3422_v30 }
 0x671   : > { %3493 = vmatmul.f32.gmra.mxu2 %v3423_v3 }
 0x673   : > { %3524 = vmatmul.f32.gmra.mxu3 %v3424_v38 }
 0x677   : > { %3427 = vmatmul.f32.gmra.mxu0 %v3426_v8  ;;  %3578 = vmatmul.f32.vlgmr.msra.gmra.mxu1 %v3414_v7 }
 0x67f   : > { %3551 = vmatmul.f32.vlgmr.msra.gmra.mxu0 %v3414_v7  ;;  %3582 = vmatmul.f32.gmra.mxu1 %v3422_v30 }
 0x687   : > { %3555 = vmatmul.f32.gmra.mxu0 %v3422_v30 }
 0x6b4   : > { %v8550_v45 = vpop.f32.mrf.mxu1 }
 0x6bc   : > { %v8552_v27 = vpop.f32.mrf.mxu0  ;;  %v8554_v19 = vpop.f32.mrf.mxu1 }
 0x6bd   : > { %v8556_v40 = vpop.f32.mrf.mxu2 }
 0x6be   : > { %v8558_v52 = vpop.f32.mrf.mxu3 }
 0x6c4   : > { %v8560_v42 = vpop.f32.mrf.mxu0  ;;  %v8562_v48 = vpop.f32.mrf.mxu1 }
 0x6c5   : > { %v8564_v55 = vpop.f32.mrf.mxu2 }
 0x6c6   : > { %v8566_v41 = vpop.f32.mrf.mxu3 }
 0x6cc   : > { %v8568_v6 = vpop.f32.mrf.mxu0  ;;  %v8570_v29 = vpop.f32.mrf.mxu1 }
 0x6cd   : > { %v8572_v28 = vpop.f32.mrf.mxu2 }
 0x6ce   : > { %v8574_v39 = vpop.f32.mrf.mxu3 }
 0x6d4   : > { %v8576_v20 = vpop.f32.mrf.mxu0  ;;  %v8578_v16 = vpop.f32.mrf.mxu1 }
 0x6d5   : > { %v8580_v22 = vpop.f32.mrf.mxu2 }
 0x6d6   : > { %v8582_v26 = vpop.f32.mrf.mxu3 }
 0x6dc   : > { %v8584_v44 = vpop.f32.mrf.mxu0  ;;  %v8586_v32 = vpop.f32.mrf.mxu1 }
 0x6dd   : > { %v8588_v34 = vpop.f32.mrf.mxu2 }
 0x6de   : > { %v8590_v51 = vpop.f32.mrf.mxu3 }
 0x6e4   : > { %v8592_v53 = vpop.f32.mrf.mxu0  ;;  %v3459_v63 = vpop.f32.mrf.mxu1 }
 0x6e5   : > { %v8594_v59 = vpop.f32.mrf.mxu2 }
 0x6e6   : > { %v8596_v18 = vpop.f32.mrf.mxu3 }
 0x6ec   : > { %v3420_v54 = vpop.f32.mrf.mxu0  ;;  %v3463_v5 = vpop.f32.mrf.mxu1 }
 0x6ed   : > { %v3460_v62 = vadd.f32 %v3459_v63, %v3420_v54  ;;  %v3489_v60 = vpop.f32.mrf.mxu2 }
 0x6ee   : > { %v3519_v49 = vpop.f32.mrf.mxu3 }
 0x6ef   : > { %v3490_v37 = vadd.f32 %v3489_v60, %v3460_v62 }
 0x6f1   : > { %v3520_v14 = vadd.f32 %v3519_v49, %v3490_v37 }
 0x6f4   : > { %v3428_v4 = vpop.f32.mrf.mxu0  ;;  %v3579_v0 = vpop.f32.mrf.mxu1 }
 0x6f5   : > { %v3464_v46 = vadd.f32 %v3463_v5, %v3428_v4  ;;  %v3494_v23 = vpop.f32.mrf.mxu2 }
 0x6f6   : > { %v3525_v2 = vpop.f32.mrf.mxu3 }
 0x6f7   : > { %v3495_v31 = vadd.f32 %v3494_v23, %v3464_v46 }
 0x6f9   : > { %v3526_v13 = vadd.f32 %v3525_v2, %v3495_v31 }
 0x6fc   : > { %v3552_v1 = vpop.f32.mrf.mxu0  ;;  %v3583_v24 = vpop.f32.mrf.mxu1 }
 0x6fd   : > { %v3553_v47 = vadd.f32 %v3552_v1, %v3520_v14 }
 0x6ff   : > { %v3580_v35 = vadd.f32 %v3579_v0, %v3553_v47 }
 0x701   : > { %v3586_v12 = vmul.f32 0.17677669, %v3580_v35 }
 0x703   : > { %v3588_v7 = vsel %vm2225_vm8, -1000.0, %v3586_v12 }
 0x704   : > { %v3556_v15 = vpop.f32.mrf.mxu0  ;;  %v3590_v11 = vsel %vm2229_vm9, %v3588_v7, -inf }
 0x705   : > { %v3557_v50 = vadd.f32 %v3556_v15, %v3526_v13  ;;  %3591 = vmax.xlane.f32.xlu2 %v3590_v11 }
 0x707   : > { %v3584_v30 = vadd.f32 %v3583_v24, %v3557_v50 }
 0x709   : > { %v3587_v43 = vmul.f32 0.17677669, %v3584_v30 }
 0x70b   : > { %v3589_v3 = vsel %vm2226_vm10, -1000.0, %v3587_v43 }
 0x70c   : > { %v3593_v33 = vsel %vm2229_vm9, %v3589_v3, -inf }
 0x70d   : > { %3594 = vmax.xlane.f32.xlu0 %v3593_v33 }
 0x721   : > { %3640 = vrot.lane.b32.xlu0 %v8322_v58, %s7230_s26 }
 0x729   : > { %4068 = vrot.lane.b32.xlu0 %v8295_v57, %s7231_s9 }
 0x731   : > { %4066 = vrot.lane.b32.xlu0 %v8297_v10, %s7231_s9 }
 0x778   : > { %v3592_v38 = vpop.xlane.xlu2 %3591 }
 0x779   : > { %v3596_v36 = vsub.f32 %v3588_v7, %v3592_v38 }
 0x77b   : > { %v3598_v8 = vmul.f32 1.442695, %v3596_v36 }
 0x77d   : > { %6888 = vpow2.f32 %v3598_v8  ;;  %v2015_v8 = vld [vmem:[#allocation10 + $0x58] sm:$0xff] }
 0x780   : > { %v3595_v63 = vpop.xlane.xlu0 %3594 }
 0x781   : > { %v3597_v54 = vsub.f32 %v3589_v3, %v3595_v63 }
 0x783   : > { %v6889_v5 = vpop.eup %6888  ;;  %v3600_v62 = vmul.f32 1.442695, %v3597_v54 }
 0x784   : > { %v3602_v60 = vsel %vm2229_vm9, %v6889_v5, 0.0 }
 0x785   : > { %6890 = vpow2.f32 %v3600_v62  ;;  %3603 = vadd.xlane.f32.xlu1 %v3602_v60 }
 0x78b   : > { %v6891_v4 = vpop.eup %6890 }
 0x78c   : > { %v3605_v37 = vsel %vm2229_vm9, %v6891_v4, 0.0 }
 0x78d   : > { %3606 = vadd.xlane.f32.xlu2 %v3605_v37 }
 0x793   : > { %v3641_v57 = vpop.permute.xlu0 %3640 }
 0x794   : > { %v8612_v49 = vand.u32 4294901760, %v3641_v57 }
 0x796   : > { %v3700_v10 = vsub.f32 %v3641_v57, %v8612_v49  ;;  %3665 = vmatpush.msrb.mxu2 %v8612_v49  ;;  %3766 = vmatpush.msrb.mxu1 %v8612_v49  ;;  %v2014_v57 = vld [vmem:[#allocation10 + $0x50] sm:$0xff] }
 0x798   : > { %v3701_v14 = vand.u32 4294901760, %v3700_v10  ;;  %3736 = vmatpush.msrb.mxu0 %v3700_v10 }
 0x79a   : > { %v3702_v46 = vsub.f32 %v3700_v10, %v3701_v14 }
 0x79c   : > { %v3703_v0 = vand.u32 4294901760, %v3702_v46 }
 0x79e   : > { %3638 = vrot.lane.b32.xlu1 %v8319_v25, %s7230_s26  ;;  %3704 = vmatpush.msrb.mxu3 %v3703_v0 }
 0x7a5   : > { %4070 = vrot.lane.b32.xlu2 %v8303_v17, %s7231_s9 }
 0x7a6   : > { %4064 = vrot.lane.b32.xlu1 %v8291_v21, %s7231_s9 }
 0x7f8   : > { %v3604_v1 = vpop.xlane.xlu1 %3603 }
 0x7f9   : > { %6892 = vrcp.f32 %v3604_v1  ;;  %v3619_v12 = vand.u32 2147483648, %v3604_v1  ;;  %v3617_v13 = vand.u32 2147483647, %v3604_v1  ;;  %vm3613_vm0 = vweird.f32 %v3604_v1 }
 0x7fb   : > { %v3620_v11 = vor.u32 1.1754944e-38, %v3619_v12  ;;  %vm3618_vm2 = vcmp.eq.f32.partialorder %v3617_v13, 8.507059e+37 }
 0x7ff   : > { %v6893_v47 = vpop.eup %6892 }
 0x800   : > { %v3609_v23 = vmul.f32 %v6893_v47, %v3604_v1  ;;  %v3607_v31 = vpop.xlane.xlu2 %3606  ;;  %vm3614_vm15 = vweird.f32 %v6893_v47 }
 0x801   : > { %6894 = vrcp.f32 %v3607_v31  ;;  %vm3615_vm1 = vmor %vm3613_vm0, %vm3614_vm15  ;;  %v3634_v43 = vand.u32 2147483648, %v3607_v31  ;;  %v3632_v38 = vand.u32 2147483647, %v3607_v31  ;;  %vm3628_vm4 = vweird.f32 %v3607_v31 }
 0x802   : > { %v3610_v35 = vsub.f32 1.0, %v3609_v23 }
 0x803   : > { %v3635_v62 = vor.u32 1.1754944e-38, %v3634_v43  ;;  %vm3633_vm6 = vcmp.eq.f32.partialorder %v3632_v38, 8.507059e+37  ;;  %v4069_v43 = vpop.permute.xlu0 %4068 }
 0x804   : > { %v3611_v2 = vmul.f32 %v6893_v47, %v3610_v35 }
 0x806   : > { %v3612_v7 = vadd.f32 %v6893_v47, %v3611_v2 }
 0x807   : > { %v6895_v15 = vpop.eup %6894 }
 0x808   : > { %v3616_v17 = vsel %vm3615_vm1, %v6893_v47, %v3612_v7  ;;  %v3624_v50 = vmul.f32 %v6895_v15, %v3607_v31  ;;  %vm3629_vm3 = vweird.f32 %v6895_v15  ;;  %v2013_v47 = vld [vmem:[#allocation10 + $0x48] sm:$0xff]  ;;  %v8629_v31 = vand.u32 4294901760, %v2014_v57  ;;  %v4071_v13 = vpop.permute.xlu2 %4070 }
 0x809   : > { %v3621_v21 = vsel %vm3618_vm2, %v3620_v11, %v3616_v17  ;;  %vm3630_vm5 = vmor %vm3628_vm4, %vm3629_vm3  ;;  %v2012_v17 = vld [vmem:[#allocation10 + $0x40] sm:$0xff] }
 0x80a   : > { %v3622_v24 = vmul.f32 %v6889_v5, %v3621_v21  ;;  %v3625_v30 = vsub.f32 1.0, %v3624_v50  ;;  %v8627_v5 = vand.u32 4294901760, %v2015_v8 }
 0x80c   : > { %v3645_v3 = vsel %vm2229_vm9, %v3622_v24, 0  ;;  %v3626_v33 = vmul.f32 %v6895_v15, %v3625_v30  ;;  %v8633_v2 = vsub.f32 %v2015_v8, %v8627_v5  ;;  %v3902_v24 = vsub.f32 %v2014_v57, %v8629_v31 }
 0x80d   : > { %v8624_v36 = vand.u32 4294901760, %v3645_v3  ;;  %v8640_v30 = vand.u32 4294901760, %v2012_v17 }
 0x80e   : > { %v3627_v63 = vadd.f32 %v6895_v15, %v3626_v33 }
 0x80f   : > { %v3669_v54 = vsub.f32 %v3645_v3, %v8624_v36 }
 0x810   : > { %v3631_v60 = vsel %vm3630_vm5, %v6895_v15, %v3627_v63  ;;  %v3639_v37 = vpop.permute.xlu1 %3638 }
 0x811   : > { %v3636_v10 = vsel %vm3633_vm6, %v3635_v62, %v3631_v60  ;;  %v3666_v46 = vand.u32 4294901760, %v3639_v37  ;;  %v3670_v0 = vand.u32 4294901760, %v3669_v54  ;;  %v3914_v62 = vsub.f32 %v2012_v17, %v8640_v30 }
 0x812   : > { %v3637_v1 = vmul.f32 %v6891_v4, %v3636_v10  ;;  %v8635_v4 = vand.u32 4294901760, %v2013_v47 }
 0x813   : > { %v3706_v23 = vsub.f32 %v3639_v37, %v3666_v46  ;;  %3667 = vmatpush.msrb.mxu2 %v3666_v46  ;;  %3768 = vmatpush.msrb.mxu1 %v3666_v46  ;;  %v3671_v35 = vsub.f32 %v3669_v54, %v3670_v0 }
 0x814   : > { %3772 = vmatmul.f32.vlgmr.msrb.gmra.mxu1 %v3670_v0  ;;  %v3648_v12 = vsel %vm2229_vm9, %v3637_v1, 0  ;;  %v3908_v38 = vsub.f32 %v2013_v47, %v8635_v4 }
 0x815   : > { %3799 = vmatpush.msra.mxu2 %v3701_v14  ;;  %3739 = vmatpush.msrb.mxu0 %v3706_v23  ;;  %v3672_v7 = vand.u32 4294901760, %v3671_v35  ;;  %v3707_v15 = vand.u32 4294901760, %v3706_v23  ;;  %v3676_v11 = vand.u32 4294901760, %v3648_v12  ;;  %v4078_v14 = vsel %vm2020_vm7, %v4071_v13, 0 }
 0x816   : > { %3742 = vmatmul.f32.vlgmr.msrb.gmra.mxu0 %v3669_v54  ;;  %v8645_v8 = vand.u32 4294901760, %v4078_v14  ;;  %v4076_v54 = vsel %vm2020_vm7, %v4069_v43, 0  ;;  %v3897_v35 = vand.u32 4294901760, %v8633_v2  ;;  %v3903_v13 = vand.u32 4294901760, %v3902_v24 }
 0x817   : > { %3673 = vmatmul.f32.vlgmr.msrb.gmra.mxu2 %v3672_v7  ;;  %v3708_v50 = vsub.f32 %v3706_v23, %v3707_v15  ;;  %v3677_v21 = vsub.f32 %v3648_v12, %v3676_v11  ;;  %3859 = vmatpush.msra.mxu0 %v8627_v5  ;;  %v8651_v37 = vand.u32 4294901760, %v4076_v54  ;;  %v3909_v17 = vand.u32 4294901760, %v3908_v38 }
 0x818   : > { %3803 = vmatpush.msra.mxu2 %v3707_v15  ;;  %v8654_v57 = vsub.f32 %v4078_v14, %v8645_v8  ;;  %v3898_v12 = vsub.f32 %v8633_v2, %v3897_v35  ;;  %v3904_v15 = vsub.f32 %v3902_v24, %v3903_v13  ;;  %v3915_v14 = vand.u32 4294901760, %v3914_v62 }
 0x819   : > { %v3709_v3 = vand.u32 4294901760, %v3708_v50  ;;  %v3678_v33 = vand.u32 4294901760, %v3677_v21  ;;  %3861 = vmatpush.msra.mxu0 %v8629_v31  ;;  %v8660_v10 = vsub.f32 %v4076_v54, %v8651_v37 }
 0x81a   : > { %3942 = vmatpush.msrb.mxu2 %v8633_v2  ;;  %v3899_v7 = vand.u32 4294901760, %v3898_v12  ;;  %v3905_v50 = vand.u32 4294901760, %v3904_v15  ;;  %v3916_v43 = vsub.f32 %v3914_v62, %v3915_v14 }
 0x81b   : > { %3710 = vmatpush.msrb.mxu3 %v3709_v3  ;;  %v3679_v63 = vsub.f32 %v3677_v21, %v3678_v33  ;;  %3863 = vmatpush.msra.mxu0 %v8635_v4 }
 0x81c   : > { %3945 = vmatpush.msrb.mxu2 %v3902_v24  ;;  %3712 = vmatmul.f32.vlgmr.msrb.gmra.mxu3 %v8624_v36 }
 0x81d   : > { %3778 = vmatmul.f32.gmra.mxu1 %v3678_v33  ;;  %3828 = vmatpush.msra.mxu3 %v8612_v49  ;;  %v3680_v60 = vand.u32 4294901760, %v3679_v63  ;;  %v4131_v49 = vand.u32 4294901760, %v8654_v57 }
 0x81e   : > { %3948 = vmatpush.msrb.mxu2 %v3908_v38  ;;  %3747 = vmatmul.f32.gmra.mxu0 %v3677_v21  ;;  %v3910_v21 = vsub.f32 %v3908_v38, %v3909_v17 }
 0x81f   : > { %3830 = vmatpush.msra.mxu3 %v3666_v46  ;;  %3681 = vmatmul.f32.gmra.mxu2 %v3680_v60  ;;  %v4137_v46 = vand.u32 4294901760, %v8660_v10  ;;  %v4132_v0 = vsub.f32 %v8654_v57, %v4131_v49 }
 0x820   : > { %3951 = vmatpush.msrb.mxu2 %v3914_v62  ;;  %3865 = vmatpush.msra.mxu0 %v8640_v30 }
 0x821   : > { %3976 = vmatpush.msrb.mxu3 %v8627_v5  ;;  %v4133_v1 = vand.u32 4294901760, %v4132_v0  ;;  %v4138_v47 = vsub.f32 %v8660_v10, %v4137_v46  ;;  %3900 = vmatpush.msra.mxu1 %v3899_v7 }
 0x822   : > { %4011 = vmatpush.msrb.mxu0 %v3897_v35 }
 0x823   : > { %3978 = vmatpush.msrb.mxu3 %v8629_v31  ;;  %v4139_v23 = vand.u32 4294901760, %v4138_v47  ;;  %3906 = vmatpush.msra.mxu1 %v3905_v50  ;;  %v4065_v47 = vpop.permute.xlu1 %4064 }
 0x824   : > { %3716 = vmatmul.f32.gmra.mxu3 %v3676_v11  ;;  %4015 = vmatpush.msrb.mxu0 %v3903_v13 }
 0x825   : > { %3980 = vmatpush.msrb.mxu3 %v8635_v4 }
 0x826   : > { %4019 = vmatpush.msrb.mxu0 %v3909_v17 }
 0x827   : > { %3805 = vmatmul.f32.vlgmr.msra.gmra.mxu2 %v8624_v36  ;;  %3982 = vmatpush.msrb.mxu3 %v8640_v30 }
 0x828   : > { %4095 = vmatpush.xpose.msra.mxu2 %v8645_v8  ;;  %4023 = vmatpush.msrb.mxu0 %v3915_v14 }
 0x82c   : > { %4097 = vmatpush.xpose.msra.mxu2 %v8651_v37  ;;  %3832 = vmatmul.f32.vlgmr.msra.gmra.mxu3 %v8624_v36  ;;  %v3911_v36 = vand.u32 4294901760, %v3910_v21 }
 0x82d   : > { %4134 = vmatpush.xpose.msra.mxu3 %v4133_v1 }
 0x82e   : > { %3912 = vmatpush.msra.mxu1 %v3911_v36  ;;  %v4067_v36 = vpop.permute.xlu0 %4066 }
 0x82f   : > { %3809 = vmatmul.f32.gmra.mxu2 %v3676_v11 }
 0x831   : > { %4140 = vmatpush.xpose.msra.mxu3 %v4139_v23 }
 0x834   : > { %3836 = vmatmul.f32.gmra.mxu3 %v3676_v11  ;;  %v3917_v11 = vand.u32 4294901760, %v3916_v43 }
 0x836   : > { %3918 = vmatpush.msra.mxu1 %v3917_v11 }
 0x838   : > { %4046 = vmatpush.msrb.mxu1 %v8627_v5 }
 0x83a   : > { %4048 = vmatpush.msrb.mxu1 %v8629_v31 }
 0x83c   : > { %4050 = vmatpush.msrb.mxu1 %v8635_v4  ;;  %v4072_v4 = vsel %vm2020_vm7, %v4065_v47, 0 }
 0x83d   : > { %v4098_v50 = vand.u32 4294901760, %v4072_v4 }
 0x83e   : > { %4052 = vmatpush.msrb.mxu1 %v8640_v30 }
 0x891   : > { %v3773_v62 = vpop.f32.mrf.mxu1 }
 0x893   : > { %v3743_v38 = vpop.f32.mrf.mxu0 }
 0x89a   : > { %v3674_v2 = vpop.f32.mrf.mxu2  ;;  %v3779_v13 = vpop.f32.mrf.mxu1 }
 0x89b   : > { %v3748_v5 = vpop.f32.mrf.mxu0 }
 0x89f   : > { %v3713_v24 = vpop.f32.mrf.mxu3 }
 0x8a0   : > { %v3714_v33 = vadd.f32 %v3713_v24, %v3674_v2  ;;  %v4099_v24 = vsub.f32 %v4072_v4, %v4098_v50 }
 0x8a2   : > { %v3682_v3 = vpop.f32.mrf.mxu2  ;;  %v3744_v54 = vadd.f32 %v3743_v38, %v3714_v33  ;;  %v4074_v33 = vsel %vm2020_vm7, %v4067_v36, 0 }
 0x8a4   : > { %v3774_v1 = vadd.f32 %v3773_v62, %v3744_v54  ;;  %v4106_v62 = vand.u32 4294901760, %v4074_v33 }
 0x8a7   : > { %v3717_v63 = vpop.f32.mrf.mxu3 }
 0x8a8   : > { %v3718_v0 = vadd.f32 %v3717_v63, %v3682_v3 }
 0x8aa   : > { %v3806_v60 = vpop.f32.mrf.mxu2  ;;  %v3749_v31 = vadd.f32 %v3748_v5, %v3718_v0 }
 0x8ab   : > { %v3807_v23 = vadd.f32 %v3806_v60, %v3774_v1  ;;  %v4100_v60 = vand.u32 4294901760, %v4099_v24  ;;  %v4107_v1 = vsub.f32 %v4074_v33, %v4106_v62 }
 0x8ac   : > { %v3780_v17 = vadd.f32 %v3779_v13, %v3749_v31 }
 0x8ad   : > { %v4101_v47 = vsub.f32 %v4099_v24, %v4100_v60  ;;  %v4108_v5 = vand.u32 4294901760, %v4107_v1 }
 0x8af   : > { %v3833_v35 = vpop.f32.mrf.mxu3 }
 0x8b0   : > { %v3834_v12 = vadd.f32 %v3833_v35, %v3807_v23  ;;  %v4109_v35 = vsub.f32 %v4107_v1, %v4108_v5 }
 0x8b2   : > { %v3841_v30 = vsel %vm2020_vm7, %v3834_v12, 0  ;;  %v3810_v15 = vpop.f32.mrf.mxu2 }
 0x8b3   : > { %v3866_v7 = vand.u32 4294901760, %v3841_v30  ;;  %v3811_v14 = vadd.f32 %v3810_v15, %v3780_v17 }
 0x8b5   : > { %v3867_v21 = vsub.f32 %v3841_v30, %v3866_v7  ;;  %3920 = vmatmul.f32.vlgmr.msra.gmra.mxu1 %v3866_v7 }
 0x8b6   : > { %4196 = vmatpush.xpose.msra.mxu1 %v8645_v8 }
 0x8b7   : > { %v3868_v43 = vand.u32 4294901760, %v3867_v21  ;;  %v3837_v11 = vpop.f32.mrf.mxu3  ;;  %3954 = vmatmul.f32.vlgmr.msrb.gmra.mxu2 %v3867_v21 }
 0x8b8   : > { %v3838_v2 = vadd.f32 %v3837_v11, %v3811_v14  ;;  %4229 = vmatpush.xpose.msrb.mxu2 %v4131_v49 }
 0x8b9   : > { %v3869_v3 = vsub.f32 %v3867_v21, %v3868_v43  ;;  %3986 = vmatmul.f32.vlgmr.msrb.gmra.mxu3 %v3868_v43 }
 0x8ba   : > { %v3844_v38 = vsel %vm2020_vm7, %v3838_v2, 0  ;;  %4198 = vmatpush.xpose.msra.mxu1 %v8651_v37  ;;  %4258 = vmatpush.xpose.msrb.mxu3 %v8645_v8 }
 0x8bb   : > { %v3870_v63 = vand.u32 4294901760, %v3869_v3  ;;  %v3874_v54 = vand.u32 4294901760, %v3844_v38 }
 0x8bc   : > { %4233 = vmatpush.xpose.msrb.mxu2 %v4137_v46  ;;  %v4102_v46 = vand.u32 4294901760, %v4101_v47 }
 0x8bd   : > { %3871 = vmatmul.f32.vlgmr.msra.gmra.mxu0 %v3870_v63  ;;  %3924 = vmatmul.f32.gmra.mxu1 %v3874_v54  ;;  %v3875_v49 = vsub.f32 %v3844_v38, %v3874_v54 }
 0x8be   : > { %4166 = vmatpush.xpose.msra.mxu0 %v8654_v57  ;;  %4260 = vmatpush.xpose.msrb.mxu3 %v8651_v37  ;;  %v4110_v57 = vand.u32 4294901760, %v4109_v35 }
 0x8bf   : > { %3959 = vmatmul.f32.gmra.mxu2 %v3875_v49  ;;  %v3876_v0 = vand.u32 4294901760, %v3875_v49 }
 0x8c1   : > { %3992 = vmatmul.f32.gmra.mxu3 %v3876_v0  ;;  %v3877_v8 = vsub.f32 %v3875_v49, %v3876_v0 }
 0x8c2   : > { %4169 = vmatpush.xpose.msra.mxu0 %v8660_v10 }
 0x8c3   : > { %v3878_v23 = vand.u32 4294901760, %v3877_v8 }
 0x8c5   : > { %3879 = vmatmul.f32.gmra.mxu0 %v3878_v23  ;;  %4054 = vmatmul.f32.vlgmr.msrb.gmra.mxu1 %v3866_v7 }
 0x8c7   : > { %4103 = vmatmul.f32.vlgmr.msra.gmra.mxu2 %v4102_v46 }
 0x8c9   : > { %4142 = vmatmul.f32.vlgmr.msra.gmra.mxu3 %v4098_v50 }
 0x8cd   : > { %4025 = vmatmul.f32.vlgmr.msrb.gmra.mxu0 %v3866_v7  ;;  %4058 = vmatmul.f32.gmra.mxu1 %v3874_v54 }
 0x8cf   : > { %4111 = vmatmul.f32.gmra.mxu2 %v4110_v57 }
 0x8d1   : > { %4146 = vmatmul.f32.gmra.mxu3 %v4106_v62 }
 0x8d5   : > { %4029 = vmatmul.f32.gmra.mxu0 %v3874_v54  ;;  %4202 = vmatmul.f32.vlgmr.msra.gmra.mxu1 %v4100_v60 }
 0x8d7   : > { %4235 = vmatmul.f32.vlgmr.msrb.gmra.mxu2 %v4098_v50 }
 0x8d9   : > { %4262 = vmatmul.f32.vlgmr.msrb.gmra.mxu3 %v4098_v50 }
 0x8dd   : > { %4172 = vmatmul.f32.vlgmr.msra.gmra.mxu0 %v4099_v24  ;;  %4208 = vmatmul.f32.gmra.mxu1 %v4108_v5 }
 0x8df   : > { %4239 = vmatmul.f32.gmra.mxu2 %v4106_v62 }
 0x8e1   : > { %4266 = vmatmul.f32.gmra.mxu3 %v4106_v62 }
 0x8e5   : > { %4177 = vmatmul.f32.gmra.mxu0 %v4107_v1 }
 0x932   : > { %v3921_v37 = vpop.f32.mrf.mxu1 }
 0x93a   : > { %v3872_v10 = vpop.f32.mrf.mxu0  ;;  %v3955_v12 = vpop.f32.mrf.mxu2 }
 0x93b   : > { %v3922_v31 = vadd.f32 %v3921_v37, %v3872_v10  ;;  %v3925_v4 = vpop.f32.mrf.mxu1 }
 0x93c   : > { %v3987_v30 = vpop.f32.mrf.mxu3 }
 0x93d   : > { %v3956_v13 = vadd.f32 %v3955_v12, %v3922_v31 }
 0x93f   : > { %v3988_v7 = vadd.f32 %v3987_v30, %v3956_v13 }
 0x942   : > { %v3880_v15 = vpop.f32.mrf.mxu0  ;;  %v3960_v21 = vpop.f32.mrf.mxu2 }
 0x943   : > { %v3926_v17 = vadd.f32 %v3925_v4, %v3880_v15  ;;  %v4055_v43 = vpop.f32.mrf.mxu1 }
 0x944   : > { %v3993_v14 = vpop.f32.mrf.mxu3 }
 0x945   : > { %v3961_v36 = vadd.f32 %v3960_v21, %v3926_v17 }
 0x947   : > { %v3994_v50 = vadd.f32 %v3993_v14, %v3961_v36 }
 0x94a   : > { %v4026_v11 = vpop.f32.mrf.mxu0  ;;  %v4104_v24 = vpop.f32.mrf.mxu2 }
 0x94b   : > { %v4027_v2 = vadd.f32 %v4026_v11, %v3988_v7  ;;  %v4059_v38 = vpop.f32.mrf.mxu1 }
 0x94c   : > { %v4143_v3 = vpop.f32.mrf.mxu3 }
 0x94d   : > { %v8697_v33 = vadd.f32 %v4055_v43, %v4027_v2  ;;  %v4144_v0 = vadd.f32 %v4143_v3, %v4104_v24 }
 0x952   : > { %v4030_v63 = vpop.f32.mrf.mxu0  ;;  %v4112_v62 = vpop.f32.mrf.mxu2 }
 0x953   : > { %v4031_v54 = vadd.f32 %v4030_v63, %v3994_v50  ;;  %v4203_v1 = vpop.f32.mrf.mxu1 }
 0x954   : > { %v4147_v60 = vpop.f32.mrf.mxu3 }
 0x955   : > { %v8699_v49 = vadd.f32 %v4059_v38, %v4031_v54  ;;  %v4148_v57 = vadd.f32 %v4147_v60, %v4112_v62 }
 0x95a   : > { %v4173_v47 = vpop.f32.mrf.mxu0  ;;  %v4236_v23 = vpop.f32.mrf.mxu2 }
 0x95b   : > { %v4174_v8 = vadd.f32 %v4173_v47, %v4144_v0  ;;  %v4209_v4 = vpop.f32.mrf.mxu1 }
 0x95c   : > { %v4263_v46 = vpop.f32.mrf.mxu3 }
 0x95d   : > { %v4204_v5 = vadd.f32 %v4203_v1, %v4174_v8 }
 0x95f   : > { %v4237_v35 = vadd.f32 %v4236_v23, %v4204_v5 }
 0x961   : > { %v4264_v37 = vadd.f32 %v4263_v46, %v4237_v35 }
 0x962   : > { %v4178_v10 = vpop.f32.mrf.mxu0  ;;  %v4240_v7 = vpop.f32.mrf.mxu2 }
 0x963   : > { %v4270_v31 = vmul.f32 0.17677669, %v4264_v37  ;;  %v4179_v12 = vadd.f32 %v4178_v10, %v4148_v57 }
 0x964   : > { %v4267_v21 = vpop.f32.mrf.mxu3 }
 0x965   : > { %v4210_v30 = vadd.f32 %v4209_v4, %v4179_v12  ;;  %v4272_v13 = vsel %vm2225_vm8, -1000.0, %v4270_v31 }
 0x966   : > { %v4274_v15 = vsel %vm2229_vm9, %v4272_v13, -inf }
 0x967   : > { %v4241_v17 = vadd.f32 %v4240_v7, %v4210_v30  ;;  %4275 = vmax.xlane.f32.xlu2 %v4274_v15 }
 0x969   : > { %v4268_v14 = vadd.f32 %v4267_v21, %v4241_v17 }
 0x96b   : > { %v4271_v36 = vmul.f32 0.17677669, %v4268_v14 }
 0x96d   : > { %v4273_v43 = vsel %vm2226_vm10, -1000.0, %v4271_v36 }
 0x96e   : > { %v4277_v50 = vsel %vm2229_vm9, %v4273_v43, -inf }
 0x96f   : > { %4278 = vmax.xlane.f32.xlu1 %v4277_v50 }
 0x988   : > { %4324 = vrot.lane.b32.xlu1 %v8322_v58, %s7231_s9 }
 0x9da   : > { %v4276_v11 = vpop.xlane.xlu2 %4275 }
 0x9db   : > { %v4280_v9 = vsub.f32 %v4272_v13, %v4276_v11 }
 0x9dd   : > { %v4282_v2 = vmul.f32 1.442695, %v4280_v9 }
 0x9df   : > { %6896 = vpow2.f32 %v4282_v2 }
 0x9e2   : > { %v4279_v24 = vpop.xlane.xlu1 %4278 }
 0x9e3   : > { %v4281_v3 = vsub.f32 %v4273_v43, %v4279_v24 }
 0x9e5   : > { %v6897_v38 = vpop.eup %6896  ;;  %v4284_v63 = vmul.f32 1.442695, %v4281_v3 }
 0x9e6   : > { %v4286_v54 = vsel %vm2229_vm9, %v6897_v38, 0.0 }
 0x9e7   : > { %6898 = vpow2.f32 %v4284_v63  ;;  %4287 = vadd.xlane.f32.xlu0 %v4286_v54 }
 0x9ed   : > { %v6899_v56 = vpop.eup %6898 }
 0x9ee   : > { %v4289_v62 = vsel %vm2229_vm9, %v6899_v56, 0.0 }
 0x9ef   : > { %4290 = vadd.xlane.f32.xlu2 %v4289_v62 }
 0x9fa   : > { %v4325_v60 = vpop.permute.xlu1 %4324 }
 0x9fb   : > { %v8711_v0 = vand.u32 4294901760, %v4325_v60  ;;  %4322 = vrot.lane.b32.xlu0 %v8319_v25, %s7231_s9 }
 0x9fd   : > { %v4384_v58 = vsub.f32 %v4325_v60, %v8711_v0  ;;  %4349 = vmatpush.msrb.mxu0 %v8711_v0  ;;  %4450 = vmatpush.msra.mxu3 %v8711_v0 }
 0x9ff   : > { %v4385_v1 = vand.u32 4294901760, %v4384_v58  ;;  %4420 = vmatpush.msra.mxu2 %v4384_v58 }
 0xa01   : > { %v4386_v47 = vsub.f32 %v4384_v58, %v4385_v1 }
 0xa03   : > { %v4387_v8 = vand.u32 4294901760, %v4386_v47 }
 0xa05   : > { %4388 = vmatpush.msrb.mxu1 %v4387_v8 }
 0xa5a   : > { %v4288_v23 = vpop.xlane.xlu0 %4287 }
 0xa5b   : > { %6900 = vrcp.f32 %v4288_v23  ;;  %v4303_v37 = vand.u32 2147483648, %v4288_v23  ;;  %v4301_v10 = vand.u32 2147483647, %v4288_v23  ;;  %vm4297_vm10 = vweird.f32 %v4288_v23 }
 0xa5d   : > { %v4304_v4 = vor.u32 1.1754944e-38, %v4303_v37  ;;  %vm4302_vm12 = vcmp.eq.f32.partialorder %v4301_v10, 8.507059e+37 }
 0xa61   : > { %v6901_v5 = vpop.eup %6900 }
 0xa62   : > { %v4293_v46 = vmul.f32 %v6901_v5, %v4288_v23  ;;  %v4291_v35 = vpop.xlane.xlu2 %4290  ;;  %vm4298_vm8 = vweird.f32 %v6901_v5 }
 0xa63   : > { %6902 = vrcp.f32 %v4291_v35  ;;  %vm4299_vm11 = vmor %vm4297_vm10, %vm4298_vm8  ;;  %v4316_v21 = vand.u32 2147483647, %v4291_v35  ;;  %v4318_v14 = vand.u32 2147483648, %v4291_v35  ;;  %vm4312_vm14 = vweird.f32 %v4291_v35 }
 0xa64   : > { %v4294_v57 = vsub.f32 1.0, %v4293_v46 }
 0xa65   : > { %v4319_v3 = vor.u32 1.1754944e-38, %v4318_v14  ;;  %vm4317_vm0 = vcmp.eq.f32.partialorder %v4316_v21, 8.507059e+37 }
 0xa66   : > { %v4295_v25 = vmul.f32 %v6901_v5, %v4294_v57 }
 0xa68   : > { %v4296_v31 = vadd.f32 %v6901_v5, %v4295_v25 }
 0xa69   : > { %v6903_v12 = vpop.eup %6902 }
 0xa6a   : > { %v4300_v30 = vsel %vm4299_vm11, %v6901_v5, %v4296_v31  ;;  %v4308_v13 = vmul.f32 %v6903_v12, %v4291_v35  ;;  %vm4313_vm13 = vweird.f32 %v6903_v12  ;;  %v2018_v31 = vld [vmem:[#allocation10 + $0x70] sm:$0xff] }
 0xa6b   : > { %v4305_v7 = vsel %vm4302_vm12, %v4304_v4, %v4300_v30  ;;  %vm4314_vm15 = vmor %vm4312_vm14, %vm4313_vm13  ;;  %v4544_v4 = vand.u32 4294901760, %v2018_v31 }
 0xa6c   : > { %v4306_v15 = vmul.f32 %v6897_v38, %v4305_v7  ;;  %v4309_v17 = vsub.f32 1.0, %v4308_v13 }
 0xa6d   : > { %v4323_v36 = vpop.permute.xlu0 %4322  ;;  %v4586_v13 = vsub.f32 %v2018_v31, %v4544_v4 }
 0xa6e   : > { %v4310_v43 = vmul.f32 %v6903_v12, %v4309_v17  ;;  %v4350_v50 = vand.u32 4294901760, %v4323_v36  ;;  %v4329_v11 = vsel %vm2229_vm9, %v4306_v15, 0  ;;  %v2016_v15 = vld [vmem:[#allocation10 + $0x60] sm:$0xff] }
 0xa6f   : > { %v4352_v9 = vand.u32 4294901760, %v4329_v11  ;;  %v4587_v21 = vand.u32 4294901760, %v4586_v13 }
 0xa70   : > { %v4311_v2 = vadd.f32 %v6903_v12, %v4310_v43  ;;  %v4390_v24 = vsub.f32 %v4323_v36, %v4350_v50  ;;  %4351 = vmatpush.msrb.mxu0 %v4350_v50  ;;  %4452 = vmatpush.msra.mxu3 %v4350_v50  ;;  %v4548_v36 = vand.u32 4294901760, %v2016_v15 }
 0xa71   : > { %v4353_v63 = vsub.f32 %v4329_v11, %v4352_v9 }
 0xa72   : > { %4483 = vmatpush.msra.mxu0 %v4385_v1  ;;  %4423 = vmatpush.msra.mxu2 %v4390_v24  ;;  %v4391_v38 = vand.u32 4294901760, %v4390_v24  ;;  %v4315_v54 = vsel %vm4314_vm15, %v6903_v12, %v4311_v2 }
 0xa73   : > { %4426 = vmatmul.f32.vlgmr.msra.gmra.mxu2 %v4353_v63  ;;  %v4354_v62 = vand.u32 4294901760, %v4353_v63  ;;  %v4320_v60 = vsel %vm4317_vm0, %v4319_v3, %v4315_v54 }
 0xa74   : > { %4487 = vmatpush.msra.mxu0 %v4391_v38  ;;  %v4392_v58 = vsub.f32 %v4390_v24, %v4391_v38  ;;  %v4321_v47 = vmul.f32 %v6899_v56, %v4320_v60  ;;  %v2019_v56 = vld [vmem:[#allocation10 + $0x78] sm:$0xff] }
 0xa75   : > { %4456 = vmatmul.f32.vlgmr.msra.gmra.mxu3 %v4354_v62  ;;  %v4355_v8 = vsub.f32 %v4353_v63, %v4354_v62  ;;  %v4542_v10 = vand.u32 4294901760, %v2019_v56 }
 0xa76   : > { %v4393_v23 = vand.u32 4294901760, %v4392_v58  ;;  %v4332_v5 = vsel %vm2229_vm9, %v4321_v47, 0 }
 0xa77   : > { %v4356_v46 = vand.u32 4294901760, %v4355_v8  ;;  %v4360_v35 = vand.u32 4294901760, %v4332_v5  ;;  %v4580_v12 = vsub.f32 %v2019_v56, %v4542_v10  ;;  %4543 = vmatpush.msrb.mxu2 %v4542_v10 }
 0xa78   : > { %4394 = vmatpush.msrb.mxu1 %v4393_v23 }
 0xa79   : > { %4357 = vmatmul.f32.vlgmr.msrb.gmra.mxu0 %v4356_v46  ;;  %4396 = vmatmul.f32.vlgmr.msrb.gmra.mxu1 %v4352_v9  ;;  %v4361_v1 = vsub.f32 %v4332_v5, %v4360_v35  ;;  %v4581_v30 = vand.u32 4294901760, %v4580_v12 }
 0xa7a   : > { %4512 = vmatpush.msra.mxu1 %v8711_v0  ;;  %v2017_v0 = vld [vmem:[#allocation10 + $0x68] sm:$0xff]  ;;  %4626 = vmatpush.msrb.mxu0 %v4580_v12 }
 0xa7b   : > { %4431 = vmatmul.f32.gmra.mxu2 %v4361_v1  ;;  %v4362_v57 = vand.u32 4294901760, %v4361_v1  ;;  %v4546_v7 = vand.u32 4294901760, %v2017_v0  ;;  %v4582_v17 = vsub.f32 %v4580_v12, %v4581_v30 }
 0xa7c   : > { %4514 = vmatpush.msra.mxu1 %v4350_v50  ;;  %4545 = vmatpush.msrb.mxu2 %v4544_v4  ;;  %v4588_v50 = vsub.f32 %v4586_v13, %v4587_v21 }
 0xa7d   : > { %4462 = vmatmul.f32.gmra.mxu3 %v4362_v57  ;;  %v4363_v37 = vsub.f32 %v4361_v1, %v4362_v57  ;;  %v4592_v14 = vsub.f32 %v2017_v0, %v4546_v7  ;;  %4629 = vmatpush.msrb.mxu0 %v4586_v13  ;;  %v4583_v43 = vand.u32 4294901760, %v4582_v17 }
 0xa7e   : > { %4660 = vmatpush.msrb.mxu1 %v4542_v10  ;;  %4547 = vmatpush.msrb.mxu2 %v4546_v7  ;;  %v4589_v2 = vand.u32 4294901760, %v4588_v50 }
 0xa7f   : > { %v4364_v25 = vand.u32 4294901760, %v4363_v37  ;;  %v4593_v11 = vand.u32 4294901760, %v4592_v14  ;;  %4632 = vmatpush.msrb.mxu0 %v4592_v14  ;;  %4584 = vmatpush.msrb.mxu3 %v4583_v43 }
 0xa80   : > { %4662 = vmatpush.msrb.mxu1 %v4544_v4  ;;  %4549 = vmatpush.msrb.mxu2 %v4548_v36 }
 0xa81   : > { %4365 = vmatmul.f32.gmra.mxu0 %v4364_v25  ;;  %4400 = vmatmul.f32.gmra.mxu1 %v4360_v35  ;;  %v4594_v24 = vsub.f32 %v4592_v14, %v4593_v11 }
 0xa82   : > { %4664 = vmatpush.msrb.mxu1 %v4546_v7  ;;  %4695 = vmatpush.msra.mxu2 %v4581_v30 }
 0xa83   : > { %4590 = vmatpush.msrb.mxu3 %v4589_v2  ;;  %v4595_v63 = vand.u32 4294901760, %v4594_v24 }
 0xa84   : > { %4666 = vmatpush.msrb.mxu1 %v4548_v36  ;;  %4699 = vmatpush.msra.mxu2 %v4587_v21 }
 0xa85   : > { %4596 = vmatpush.msrb.mxu3 %v4595_v63  ;;  %v3018_v63 = vadd.f32 %v8550_v45, %v8552_v27 }
 0xa86   : > { %4703 = vmatpush.msra.mxu2 %v4593_v11 }
 0xa89   : > { %4489 = vmatmul.f32.vlgmr.msra.gmra.mxu0 %v4352_v9  ;;  %4516 = vmatmul.f32.vlgmr.msra.gmra.mxu1 %v4352_v9  ;;  %v4598_v9 = vsub.f32 %v2016_v15, %v4548_v36 }
 0xa8b   : > { %v4599_v3 = vand.u32 4294901760, %v4598_v9  ;;  %4635 = vmatpush.msrb.mxu0 %v4598_v9 }
 0xa8d   : > { %v4600_v38 = vsub.f32 %v4598_v9, %v4599_v3  ;;  %4707 = vmatpush.msra.mxu2 %v4599_v3 }
 0xa8f   : > { %v4601_v54 = vand.u32 4294901760, %v4600_v38  ;;  %v3052_v38 = vadd.f32 %v8556_v40, %v3018_v63  ;;  %v4828_v63 = vld [vmem:[#allocation11 + $0xa0] sm:$0xff] }
 0xa91   : > { %4493 = vmatmul.f32.gmra.mxu0 %v4360_v35  ;;  %4520 = vmatmul.f32.gmra.mxu1 %v4360_v35 }
 0xa92   : > { %4602 = vmatpush.msrb.mxu3 %v4601_v54  ;;  %v3084_v54 = vadd.f32 %v8558_v52, %v3052_v38 }
 0xa94   : > { %4730 = vmatpush.msra.mxu3 %v4542_v10 }
 0xa96   : > { %4732 = vmatpush.msra.mxu3 %v4544_v4 }
 0xa98   : > { %4734 = vmatpush.msra.mxu3 %v4546_v7 }
 0xa9a   : > { %4736 = vmatpush.msra.mxu3 %v4548_v36 }
 0xaf6   : > { %v4358_v62 = vpop.f32.mrf.mxu0  ;;  %v4397_v60 = vpop.f32.mrf.mxu1 }
 0xaf7   : > { %v4398_v58 = vadd.f32 %v4397_v60, %v4358_v62  ;;  %v4427_v47 = vpop.f32.mrf.mxu2  ;;  %v3022_v62 = vadd.f32 %v8554_v19, %v8560_v42  ;;  %v3123_v60 = vadd.f32 %v8568_v6, %v3084_v54 }
 0xaf8   : > { %v4457_v46 = vpop.f32.mrf.mxu3 }
 0xaf9   : > { %v4428_v5 = vadd.f32 %v4427_v47, %v4398_v58  ;;  %v3057_v58 = vadd.f32 %v8564_v55, %v3022_v62  ;;  %v3152_v47 = vadd.f32 %v8562_v48, %v3123_v60  ;;  %v8770_v62 = vand.u32 4294901760, %v4828_v63  ;;  %v4826_v60 = vld [vmem:[#allocation11 + $0x90] sm:$0xff] }
 0xafb   : > { %v4458_v35 = vadd.f32 %v4457_v46, %v4428_v5  ;;  %v3191_v5 = vadd.f32 %v8572_v28, %v3152_v47 }
 0xafd   : > { %v3240_v40 = vadd.f32 %v8574_v39, %v3191_v5  ;;  %v8783_v5 = vand.u32 4294901760, %v4826_v60 }
 0xafe   : > { %v4366_v8 = vpop.f32.mrf.mxu0  ;;  %v4401_v23 = vpop.f32.mrf.mxu1 }
 0xaff   : > { %v4402_v1 = vadd.f32 %v4401_v23, %v4366_v8  ;;  %v4432_v56 = vpop.f32.mrf.mxu2  ;;  %v3090_v23 = vadd.f32 %v8566_v41, %v3057_v58  ;;  %v3274_v19 = vadd.f32 %v8584_v44, %v3240_v40  ;;  %v4824_v58 = vld [vmem:[#allocation11 + $0x80] sm:$0xff]  ;;  %v8792_v40 = vsub.f32 %v4828_v63, %v8770_v62 }
 0xb00   : > { %v4463_v4 = vpop.f32.mrf.mxu3 }
 0xb01   : > { %v4433_v31 = vadd.f32 %v4432_v56, %v4402_v1  ;;  %v3127_v45 = vadd.f32 %v8576_v20, %v3090_v23 }
 0xb03   : > { %v4464_v30 = vadd.f32 %v4463_v4, %v4433_v31  ;;  %v3156_v52 = vadd.f32 %v8570_v29, %v3127_v45 }
 0xb05   : > { %v3199_v6 = vadd.f32 %v8580_v22, %v3156_v52  ;;  %v8794_v52 = vand.u32 4294901760, %v4824_v58 }
 0xb06   : > { %v4490_v57 = vpop.f32.mrf.mxu0  ;;  %v4517_v37 = vpop.f32.mrf.mxu1 }
 0xb07   : > { %v4491_v25 = vadd.f32 %v4490_v57, %v4458_v35  ;;  %v3306_v35 = vadd.f32 %v8578_v16, %v3274_v19  ;;  %v3244_v41 = vadd.f32 %v8582_v26, %v3199_v6 }
 0xb09   : > { %v4518_v10 = vadd.f32 %v4517_v37, %v4491_v25  ;;  %v3345_v20 = vadd.f32 %v8588_v34, %v3306_v35  ;;  %v3279_v39 = vadd.f32 %v8592_v53, %v3244_v41  ;;  %v6862_v34 = vld [vmem:[%s9994_s12] ss:$0 sm:$0xff] }
 0xb0b   : > { %v4525_v12 = vsel %vm2020_vm7, %v4518_v10, 0  ;;  %v3374_v25 = vadd.f32 %v8590_v51, %v3345_v20  ;;  %v3312_v22 = vadd.f32 %v8586_v32, %v3279_v39  ;;  %v8821_v20 = vsub.f32 %v4824_v58, %v8794_v52  ;;  %v4822_v39 = vld [vmem:[#allocation11 + $0x70] sm:$0xff]  ;;  %v4808_v58 = vld [vmem:[#allocation11] sm:$0xff] }
 0xb0c   : > { %v4550_v0 = vand.u32 4294901760, %v4525_v12 }
 0xb0d   : > { %v4062_v16 = vadd.f32 %v8697_v33, %v3374_v25  ;;  %v3349_v53 = vadd.f32 %v8594_v59, %v3312_v22 }
 0xb0e   : > { %v4551_v13 = vsub.f32 %v4525_v12, %v4550_v0  ;;  %v4494_v7 = vpop.f32.mrf.mxu0  ;;  %4604 = vmatmul.f32.vlgmr.msrb.gmra.mxu3 %v4550_v0  ;;  %v4521_v21 = vpop.f32.mrf.mxu1 }
 0xb0f   : > { %v4495_v15 = vadd.f32 %v4494_v7, %v4464_v30  ;;  %v3378_v32 = vadd.f32 %v8596_v18, %v3349_v53  ;;  %v6924_v7 = vld [vmem:[%s7473_s21] sm:$0xff]  ;;  %v4834_v18 = vld [vmem:[#allocation11 + $0xd0] sm:$0xff] }
 0xb10   : > { %v4552_v17 = vand.u32 4294901760, %v4551_v13  ;;  %4638 = vmatmul.f32.vlgmr.msrb.gmra.mxu0 %v4551_v13 }
 0xb11   : > { %v4522_v14 = vadd.f32 %v4521_v21, %v4495_v15 }
 0xb12   : > { %v4553_v36 = vsub.f32 %v4551_v13, %v4552_v17  ;;  %4670 = vmatmul.f32.vlgmr.msrb.gmra.mxu1 %v4552_v17  ;;  %v4063_v17 = vadd.f32 %v8699_v49, %v3378_v32  ;;  %v4832_v49 = vld [vmem:[#allocation11 + $0xc0] sm:$0xff] }
 0xb13   : > { %v4528_v43 = vsel %vm2020_vm7, %v4522_v14, 0  ;;  %v8766_v38 = vand.u32 4294901760, %v4832_v49 }
 0xb14   : > { %v4554_v50 = vand.u32 4294901760, %v4553_v36  ;;  %v4558_v11 = vand.u32 4294901760, %v4528_v43  ;;  %v6925_v36 = vld [vmem:[%s7473_s21 + $0x8] sm:$0xff] }
 0xb15   : > { %v8786_v45 = vsub.f32 %v4832_v49, %v8766_v38 }
 0xb16   : > { %v4559_v9 = vsub.f32 %v4528_v43, %v4558_v11  ;;  %4555 = vmatmul.f32.vlgmr.msrb.gmra.mxu2 %v4554_v50  ;;  %4608 = vmatmul.f32.gmra.mxu3 %v4558_v11  ;;  %v4838_v50 = vld [vmem:[#allocation11 + $0xf0] sm:$0xff] }
 0xb18   : > { %4643 = vmatmul.f32.gmra.mxu0 %v4559_v9  ;;  %v4560_v2 = vand.u32 4294901760, %v4559_v9 }
 0xb1a   : > { %4676 = vmatmul.f32.gmra.mxu1 %v4560_v2  ;;  %v4561_v24 = vsub.f32 %v4559_v9, %v4560_v2  ;;  %v8760_v9 = vand.u32 4294901760, %v4838_v50 }
 0xb1c   : > { %v4562_v3 = vand.u32 4294901760, %v4561_v24  ;;  %v8764_v24 = vand.u32 4294901760, %v4834_v18  ;;  %v8773_v47 = vsub.f32 %v4838_v50, %v8760_v9  ;;  %5060 = vmatpush.msrb.mxu3 %v8760_v9  ;;  %4847 = vmatpush.msra.mxu0 %v8760_v9 }
 0xb1e   : > { %4563 = vmatmul.f32.gmra.mxu2 %v4562_v3  ;;  %4738 = vmatmul.f32.vlgmr.msra.gmra.mxu3 %v4550_v0  ;;  %v4830_v3 = vld [vmem:[#allocation11 + $0xb0] sm:$0xff]  ;;  %v8779_v23 = vsub.f32 %v4834_v18, %v8764_v24  ;;  %v4897_v19 = vand.u32 4294901760, %v8773_v47 }
 0xb1f   : > { %v8768_v54 = vand.u32 4294901760, %v4830_v3  ;;  %5002 = vmatpush.msrb.mxu2 %v8773_v47 }
 0xb20   : > { %v4909_v6 = vand.u32 4294901760, %v8779_v23  ;;  %v4898_v35 = vsub.f32 %v8773_v47, %v4897_v19 }
 0xb26   : > { %4709 = vmatmul.f32.vlgmr.msra.gmra.mxu2 %v4550_v0  ;;  %4742 = vmatmul.f32.gmra.mxu3 %v4558_v11 }
 0xb2e   : > { %4713 = vmatmul.f32.gmra.mxu2 %v4558_v11  ;;  %v4836_v11 = vld [vmem:[#allocation11 + $0xe0] sm:$0xff] }
 0xb2f   : > { %v8762_v2 = vand.u32 4294901760, %v4836_v11 }
 0xb31   : > { %5062 = vmatpush.msrb.mxu3 %v8762_v2  ;;  %4849 = vmatpush.msra.mxu0 %v8762_v2 }
 0xb33   : > { %5064 = vmatpush.msrb.mxu3 %v8764_v24  ;;  %4851 = vmatpush.msra.mxu0 %v8764_v24 }
 0xb35   : > { %5066 = vmatpush.msrb.mxu3 %v8766_v38  ;;  %4853 = vmatpush.msra.mxu0 %v8766_v38 }
 0xb37   : > { %5068 = vmatpush.msrb.mxu3 %v8768_v54  ;;  %4855 = vmatpush.msra.mxu0 %v8768_v54 }
 0xb39   : > { %5070 = vmatpush.msrb.mxu3 %v8770_v62  ;;  %4857 = vmatpush.msra.mxu0 %v8770_v62 }
 0xb3b   : > { %5072 = vmatpush.msrb.mxu3 %v8783_v5  ;;  %4859 = vmatpush.msra.mxu0 %v8783_v5 }
 0xb3d   : > { %5074 = vmatpush.msrb.mxu3 %v8794_v52  ;;  %4861 = vmatpush.msra.mxu0 %v8794_v52 }
 0xb8d   : > { %v4639_v46 = vpop.f32.mrf.mxu0 }
 0xb8f   : > { %v4671_v1 = vpop.f32.mrf.mxu1 }
 0xb91   : > { %v4605_v8 = vpop.f32.mrf.mxu3 }
 0xb95   : > { %v4644_v31 = vpop.f32.mrf.mxu0 }
 0xb97   : > { %v4677_v4 = vpop.f32.mrf.mxu1 }
 0xb99   : > { %v4556_v27 = vpop.f32.mrf.mxu2  ;;  %v4609_v42 = vpop.f32.mrf.mxu3 }
 0xb9a   : > { %v4606_v55 = vadd.f32 %v4605_v8, %v4556_v27  ;;  %v8776_v8 = vsub.f32 %v4836_v11, %v8762_v2  ;;  %v8789_v27 = vsub.f32 %v4830_v3, %v8768_v54 }
 0xb9c   : > { %v4640_v28 = vadd.f32 %v4639_v46, %v4606_v55  ;;  %v4915_v55 = vand.u32 4294901760, %v8786_v45  ;;  %v4921_v46 = vand.u32 4294901760, %v8789_v27  ;;  %5005 = vmatpush.msrb.mxu2 %v8776_v8 }
 0xb9e   : > { %v4672_v29 = vadd.f32 %v4671_v1, %v4640_v28  ;;  %v4910_v28 = vsub.f32 %v8779_v23, %v4909_v6  ;;  %v4927_v1 = vand.u32 4294901760, %v8792_v40  ;;  %v4916_v25 = vsub.f32 %v8786_v45, %v4915_v55  ;;  %5008 = vmatpush.msrb.mxu2 %v8779_v23 }
 0xb9f   : > { %v4922_v22 = vsub.f32 %v8789_v27, %v4921_v46 }
 0xba0   : > { %5011 = vmatpush.msrb.mxu2 %v8786_v45  ;;  %v4928_v53 = vsub.f32 %v8792_v40, %v4927_v1 }
 0xba1   : > { %v4564_v48 = vpop.f32.mrf.mxu2  ;;  %v4739_v37 = vpop.f32.mrf.mxu3 }
 0xba2   : > { %v4610_v57 = vadd.f32 %v4609_v42, %v4564_v48  ;;  %v4903_v42 = vand.u32 4294901760, %v8776_v8  ;;  %v8805_v48 = vsub.f32 %v4826_v60, %v8783_v5  ;;  %5014 = vmatpush.msrb.mxu2 %v8789_v27  ;;  %v4929_v11 = vand.u32 4294901760, %v4928_v53 }
 0xba4   : > { %v4645_v26 = vadd.f32 %v4644_v31, %v4610_v57  ;;  %v4904_v41 = vsub.f32 %v8776_v8, %v4903_v42  ;;  %v4820_v57 = vld [vmem:[#allocation11 + $0x60] sm:$0xff]  ;;  %5017 = vmatpush.msrb.mxu2 %v8792_v40 }
 0xba5   : > { %v4816_v31 = vld [vmem:[#allocation11 + $0x40] sm:$0xff] }
 0xba6   : > { %v4678_v0 = vadd.f32 %v4677_v4, %v4645_v26  ;;  %v8834_v26 = vand.u32 4294901760, %v4822_v39  ;;  %v4814_v4 = vld [vmem:[#allocation11 + $0x30] sm:$0xff]  ;;  %v8853_v32 = vand.u32 4294901760, %v4816_v31  ;;  %5020 = vmatpush.msrb.mxu2 %v8805_v48 }
 0xba8   : > { %v8875_v49 = vsub.f32 %v4816_v31, %v8853_v32  ;;  %5023 = vmatpush.msrb.mxu2 %v8821_v20  ;;  %5076 = vmatpush.msrb.mxu3 %v8834_v26 }
 0xba9   : > { %v4710_v44 = vpop.f32.mrf.mxu2  ;;  %v4743_v33 = vpop.f32.mrf.mxu3  ;;  %4863 = vmatpush.msra.mxu0 %v8834_v26 }
 0xbaa   : > { %v4711_v56 = vadd.f32 %v4710_v44, %v4672_v29  ;;  %v4818_v29 = vld [vmem:[#allocation11 + $0x50] sm:$0xff]  ;;  %v4905_v44 = vand.u32 4294901760, %v4904_v41 }
 0xbac   : > { %v4740_v10 = vadd.f32 %v4739_v37, %v4711_v56  ;;  %v4899_v37 = vand.u32 4294901760, %v4898_v35  ;;  %v4933_v56 = vand.u32 4294901760, %v8805_v48 }
 0xbae   : > { %v4746_v12 = vadd.f32 %v4740_v10, %v4062_v16  ;;  %4900 = vmatpush.msra.mxu1 %v4899_v37  ;;  %v4911_v16 = vand.u32 4294901760, %v4910_v28  ;;  %v8836_v10 = vand.u32 4294901760, %v4820_v57 }
 0xbb0   : > { %v4752_v51 = vadd.f32 %v6862_v34, %v4746_v12  ;;  %v4939_v12 = vand.u32 4294901760, %v8821_v20  ;;  %4906 = vmatpush.msra.mxu1 %v4905_v44  ;;  %v4963_v44 = vand.u32 4294901760, %v8875_v49  ;;  %5078 = vmatpush.msrb.mxu3 %v8836_v10 }
 0xbb1   : > { %v4714_v30 = vpop.f32.mrf.mxu2  ;;  %4865 = vmatpush.msra.mxu0 %v8836_v10 }
 0xbb2   : > { %v4715_v13 = vadd.f32 %v4714_v30, %v4678_v0  ;;  %v8752_v15 = vadd.f32 %v6924_v7, %v4752_v51  ;;  %v4917_v0 = vand.u32 4294901760, %v4916_v25  ;;  %v8848_v51 = vsub.f32 %v4822_v39, %v8834_v26  ;;  %v4812_v7 = vld [vmem:[#allocation11 + $0x20] sm:$0xff]  ;;  %4912 = vmatpush.msra.mxu1 %v4911_v16 }
 0xbb3   : > { %v8851_v30 = vsub.f32 %v4820_v57, %v8836_v10  ;;  %v8877_v3 = vand.u32 4294901760, %v4812_v7 }
 0xbb4   : > { %10082 = vst [vmem:[#allocation28_spill] sm:$0xff] %v8752_v15  ;;  %v4744_v21 = vadd.f32 %v4743_v33, %v4715_v13  ;;  %4758 = vadd.xlane.f32.xlu2 %v8752_v15  ;;  %v4934_v13 = vsub.f32 %v8805_v48, %v4933_v56  ;;  %v4923_v33 = vand.u32 4294901760, %v4922_v22  ;;  %4918 = vmatpush.msra.mxu1 %v4917_v0  ;;  %v8905_v22 = vand.u32 4294901760, %v4808_v58 }
 0xbb5   : > { %v4951_v18 = vand.u32 4294901760, %v8851_v30  ;;  %5026 = vmatpush.msrb.mxu2 %v8848_v51  ;;  %v8903_v25 = vsub.f32 %v4812_v7, %v8877_v3 }
 0xbb6   : > { %v4747_v14 = vadd.f32 %v4744_v21, %v4063_v17  ;;  %v4945_v17 = vand.u32 4294901760, %v8848_v51  ;;  %v4935_v60 = vand.u32 4294901760, %v4934_v13  ;;  %4924 = vmatpush.msra.mxu1 %v4923_v33  ;;  %v4964_v33 = vsub.f32 %v8875_v49, %v4963_v44 }
 0xbb7   : > { %v4952_v37 = vsub.f32 %v8851_v30, %v4951_v18  ;;  %5029 = vmatpush.msrb.mxu2 %v8851_v30 }
 0xbb8   : > { %v4753_v59 = vadd.f32 %v6862_v34, %v4747_v14  ;;  %v8838_v34 = vand.u32 4294901760, %v4818_v29  ;;  %v8865_v14 = vand.u32 4294901760, %v4814_v4  ;;  %v4946_v35 = vsub.f32 %v8848_v51, %v4945_v17  ;;  %4930 = vmatpush.msra.mxu1 %v4929_v11 }
 0xbb9   : > { %v4953_v7 = vand.u32 4294901760, %v4952_v37 }
 0xbba   : > { %v8757_v43 = vadd.f32 %v6925_v36, %v4753_v59  ;;  %v8863_v21 = vsub.f32 %v4818_v29, %v8838_v34  ;;  %v4940_v59 = vsub.f32 %v8821_v20, %v4939_v12  ;;  %v4810_v36 = vld [vmem:[#allocation11 + $0x10] sm:$0xff]  ;;  %v8888_v28 = vsub.f32 %v4814_v4, %v8865_v14  ;;  %4936 = vmatpush.msra.mxu1 %v4935_v60 }
 0xbbb   : > { %v8890_v39 = vand.u32 4294901760, %v4810_v36  ;;  %v4947_v16 = vand.u32 4294901760, %v4946_v35  ;;  %5080 = vmatpush.msrb.mxu3 %v8838_v34  ;;  %4867 = vmatpush.msra.mxu0 %v8838_v34 }
 0xbbc   : > { %10083 = vst [vmem:[#allocation29_spill] sm:$0xff] %v8757_v43  ;;  %4760 = vadd.xlane.f32.xlu2 %v8757_v43  ;;  %v4957_v41 = vand.u32 4294901760, %v8863_v21  ;;  %v4941_v29 = vand.u32 4294901760, %v4940_v59  ;;  %v4969_v4 = vand.u32 4294901760, %v8888_v28  ;;  %5032 = vmatpush.msrb.mxu2 %v8863_v21  ;;  %v4975_v59 = vand.u32 4294901760, %v8903_v25 }
 0xbbd   : > { %v8917_v0 = vsub.f32 %v4810_v36, %v8890_v39  ;;  %5082 = vmatpush.msrb.mxu3 %v8853_v32  ;;  %4869 = vmatpush.msra.mxu0 %v8853_v32 }
 0xbbe   : > { %v4958_v53 = vsub.f32 %v8863_v21, %v4957_v41  ;;  %4942 = vmatpush.msra.mxu1 %v4941_v29  ;;  %5035 = vmatpush.msrb.mxu2 %v8875_v49  ;;  %v4976_v29 = vsub.f32 %v8903_v25, %v4975_v59 }
 0xbbf   : > { %v4981_v60 = vand.u32 4294901760, %v8917_v0  ;;  %5084 = vmatpush.msrb.mxu3 %v8865_v14  ;;  %4871 = vmatpush.msra.mxu0 %v8865_v14 }
 0xbc0   : > { %4948 = vmatpush.msra.mxu1 %v4947_v16  ;;  %v4959_v11 = vand.u32 4294901760, %v4958_v53  ;;  %5038 = vmatpush.msrb.mxu2 %v8888_v28 }
 0xbc1   : > { %5086 = vmatpush.msrb.mxu3 %v8877_v3  ;;  %v4982_v53 = vsub.f32 %v8917_v0, %v4981_v60  ;;  %4873 = vmatpush.msra.mxu0 %v8877_v3 }
 0xbc2   : > { %4954 = vmatpush.msra.mxu1 %v4953_v7  ;;  %5041 = vmatpush.msrb.mxu2 %v8903_v25 }
 0xbc3   : > { %5088 = vmatpush.msrb.mxu3 %v8890_v39  ;;  %4875 = vmatpush.msra.mxu0 %v8890_v39 }
 0xbc4   : > { %4960 = vmatpush.msra.mxu1 %v4959_v11  ;;  %5044 = vmatpush.msrb.mxu2 %v8917_v0 }
 0xbc5   : > { %5090 = vmatpush.msrb.mxu3 %v8905_v22  ;;  %4877 = vmatpush.msra.mxu0 %v8905_v22 }
 0xbc7   : > { %5107 = vmatpush.msrb.mxu0 %v4897_v19  ;;  %v4831_v19 = vld [vmem:[#allocation11 + $0xb8] sm:$0xff] }
 0xbc9   : > { %5111 = vmatpush.msrb.mxu0 %v4903_v42 }
 0xbcb   : > { %5115 = vmatpush.msrb.mxu0 %v4909_v6 }
 0xbcd   : > { %5119 = vmatpush.msrb.mxu0 %v4915_v55 }
 0xbcf   : > { %5123 = vmatpush.msrb.mxu0 %v4921_v46  ;;  %v9034_v46 = vand.u32 4294901760, %v4831_v19 }
 0xbd1   : > { %5127 = vmatpush.msrb.mxu0 %v4927_v1  ;;  %v4829_v1 = vld [vmem:[#allocation11 + $0xa8] sm:$0xff] }
 0xbd3   : > { %5131 = vmatpush.msrb.mxu0 %v4933_v56 }
 0xbd5   : > { %5135 = vmatpush.msrb.mxu0 %v4939_v12  ;;  %v4827_v12 = vld [vmem:[#allocation11 + $0x98] sm:$0xff] }
 0xbd7   : > { %5139 = vmatpush.msrb.mxu0 %v4945_v17 }
 0xbd9   : > { %5143 = vmatpush.msrb.mxu0 %v4951_v18 }
 0xbdb   : > { %5147 = vmatpush.msrb.mxu0 %v4957_v41 }
 0xbdd   : > { %5151 = vmatpush.msrb.mxu0 %v4963_v44 }
 0xbdf   : > { %5155 = vmatpush.msrb.mxu0 %v4969_v4 }
 0xbe1   : > { %5159 = vmatpush.msrb.mxu0 %v4975_v59  ;;  %v4821_v59 = vld [vmem:[#allocation11 + $0x68] sm:$0xff] }
 0xbe3   : > { %5163 = vmatpush.msrb.mxu0 %v4981_v60 }
 0xc27   : > { %v4759_v50 = vpop.xlane.xlu2 %4758 }
 0xc28   : > { %v4762_v63 = vmul.f32 %v4759_v50, %v7587_v61  ;;  %v8926_v50 = vsub.f32 %v4808_v58, %v8905_v22  ;;  %v4965_v58 = vand.u32 4294901760, %v4964_v33  ;;  %v4983_v33 = vand.u32 4294901760, %v4982_v53 }
 0xc2a   : > { %v8893_v57 = vsub.f32 %v8752_v15, %v4762_v63  ;;  %v4970_v63 = vsub.f32 %v8888_v28, %v4969_v4  ;;  %v4987_v37 = vand.u32 4294901760, %v8926_v50  ;;  %4966 = vmatpush.msra.mxu1 %v4965_v58  ;;  %5047 = vmatpush.msrb.mxu2 %v8926_v50 }
 0xc2c   : > { %v4766_v31 = vmul.f32 %v8893_v57, %v8893_v57  ;;  %v4971_v16 = vand.u32 4294901760, %v4970_v63  ;;  %v4988_v7 = vsub.f32 %v8926_v50, %v4987_v37  ;;  %5167 = vmatpush.msrb.mxu0 %v4987_v37  ;;  %v9083_v63 = vand.u32 4294901760, %v4821_v59 }
 0xc2e   : > { %4768 = vadd.xlane.f32.xlu2 %v4766_v31  ;;  %4972 = vmatpush.msra.mxu1 %v4971_v16  ;;  %v9094_v53 = vsub.f32 %v4821_v59, %v9083_v63 }
 0xc2f   : > { %v4761_v13 = vpop.xlane.xlu2 %4760 }
 0xc30   : > { %v4763_v36 = vmul.f32 %v4761_v13, %v7587_v61  ;;  %v4977_v13 = vand.u32 4294901760, %v4976_v29  ;;  %v4819_v29 = vld [vmem:[#allocation11 + $0x58] sm:$0xff] }
 0xc31   : > { %v9091_v16 = vand.u32 4294901760, %v4819_v29 }
 0xc32   : > { %v8937_v35 = vsub.f32 %v8757_v43, %v4763_v36  ;;  %4978 = vmatpush.msra.mxu1 %v4977_v13  ;;  %v4989_v36 = vand.u32 4294901760, %v4988_v7  ;;  %v4817_v7 = vld [vmem:[#allocation11 + $0x48] sm:$0xff] }
 0xc34   : > { %v4767_v31 = vmul.f32 %v8937_v35, %v8937_v35  ;;  %4984 = vmatpush.msra.mxu1 %v4983_v33 }
 0xc36   : > { %4770 = vadd.xlane.f32.xlu0 %v4767_v31  ;;  %4990 = vmatpush.msra.mxu1 %v4989_v36  ;;  %v5323_v36 = vand.u32 4294901760, %v9094_v53 }
 0xc38   : > { %5178 = vmatpush.msrb.mxu1 %v8760_v9  ;;  %v4839_v9 = vld [vmem:[#allocation11 + $0xf8] sm:$0xff] }
 0xc3a   : > { %5180 = vmatpush.msrb.mxu1 %v8762_v2  ;;  %v9004_v2 = vand.u32 4294901760, %v4839_v9 }
 0xc3c   : > { %5182 = vmatpush.msrb.mxu1 %v8764_v24  ;;  %v4837_v24 = vld [vmem:[#allocation11 + $0xe8] sm:$0xff]  ;;  %5219 = vmatpush.msra.mxu2 %v9004_v2 }
 0xc3e   : > { %5184 = vmatpush.msrb.mxu1 %v8766_v38  ;;  %v9008_v38 = vsub.f32 %v4839_v9, %v9004_v2  ;;  %v9104_v9 = vand.u32 4294901760, %v4817_v7 }
 0xc40   : > { %5186 = vmatpush.msrb.mxu1 %v8768_v54  ;;  %v9010_v54 = vand.u32 4294901760, %v4837_v24  ;;  %v5269_v47 = vand.u32 4294901760, %v9008_v38 }
 0xc42   : > { %5188 = vmatpush.msrb.mxu1 %v8770_v62  ;;  %v4835_v62 = vld [vmem:[#allocation11 + $0xd8] sm:$0xff]  ;;  %5221 = vmatpush.msra.mxu2 %v9010_v54  ;;  %v9017_v23 = vsub.f32 %v4837_v24, %v9010_v54  ;;  %v5270_v45 = vsub.f32 %v9008_v38, %v5269_v47  ;;  %v9107_v24 = vsub.f32 %v4819_v29, %v9091_v16 }
 0xc43   : > { %v9014_v8 = vand.u32 4294901760, %v4835_v62 }
 0xc44   : > { %5190 = vmatpush.msrb.mxu1 %v8783_v5  ;;  %v4833_v5 = vld [vmem:[#allocation11 + $0xc8] sm:$0xff]  ;;  %v5275_v27 = vand.u32 4294901760, %v9017_v23  ;;  %v5271_v42 = vand.u32 4294901760, %v5270_v45 }
 0xc45   : > { %5223 = vmatpush.msra.mxu2 %v9014_v8  ;;  %v9024_v40 = vand.u32 4294901760, %v4833_v5 }
 0xc46   : > { %5192 = vmatpush.msrb.mxu1 %v8794_v52  ;;  %v9027_v52 = vsub.f32 %v4835_v62, %v9014_v8  ;;  %v5276_v6 = vsub.f32 %v9017_v23, %v5275_v27  ;;  %5272 = vmatpush.msra.mxu3 %v5271_v42  ;;  %v10022_v42 = vand.u32 4294901760, %v9107_v24 }
 0xc47   : > { %5225 = vmatpush.msra.mxu2 %v9024_v40  ;;  %v9037_v48 = vsub.f32 %v4833_v5, %v9024_v40  ;;  %v4815_v5 = vld [vmem:[#allocation11 + $0x38] sm:$0xff] }
 0xc48   : > { %5194 = vmatpush.msrb.mxu1 %v8834_v26  ;;  %v5281_v55 = vand.u32 4294901760, %v9027_v52  ;;  %v5277_v20 = vand.u32 4294901760, %v5276_v6  ;;  %v9043_v26 = vand.u32 4294901760, %v4829_v1  ;;  %v9114_v6 = vand.u32 4294901760, %v4815_v5 }
 0xc49   : > { %5227 = vmatpush.msra.mxu2 %v9034_v46 }
 0xc4a   : > { %5196 = vmatpush.msrb.mxu1 %v8836_v10  ;;  %v5282_v56 = vsub.f32 %v9027_v52, %v5281_v55  ;;  %v9046_v10 = vsub.f32 %v4831_v19, %v9034_v46  ;;  %5278 = vmatpush.msra.mxu3 %v5277_v20  ;;  %v9054_v17 = vsub.f32 %v4829_v1, %v9043_v26  ;;  %v4813_v20 = vld [vmem:[#allocation11 + $0x28] sm:$0xff] }
 0xc4b   : > { %5229 = vmatpush.msra.mxu2 %v9043_v26  ;;  %v5324_v19 = vsub.f32 %v9094_v53, %v5323_v36  ;;  %v9117_v1 = vsub.f32 %v4817_v7, %v9104_v9 }
 0xc4c   : > { %5198 = vmatpush.msrb.mxu1 %v8838_v34  ;;  %v5287_v34 = vand.u32 4294901760, %v9037_v48  ;;  %v5283_v51 = vand.u32 4294901760, %v5282_v56  ;;  %v5293_v30 = vand.u32 4294901760, %v9046_v10  ;;  %v5299_v49 = vand.u32 4294901760, %v9054_v17 }
 0xc4d   : > { %v5325_v56 = vand.u32 4294901760, %v5324_v19 }
 0xc4e   : > { %5200 = vmatpush.msrb.mxu1 %v8853_v32  ;;  %v9051_v32 = vand.u32 4294901760, %v4827_v12  ;;  %v5288_v21 = vsub.f32 %v9037_v48, %v5287_v34  ;;  %5284 = vmatpush.msra.mxu3 %v5283_v51  ;;  %v5294_v18 = vsub.f32 %v9046_v10, %v5293_v30  ;;  %v5300_v25 = vsub.f32 %v9054_v17, %v5299_v49 }
 0xc4f   : > { %v9123_v51 = vand.u32 4294901760, %v4813_v20 }
 0xc50   : > { %5202 = vmatpush.msrb.mxu1 %v8865_v14  ;;  %v4825_v14 = vld [vmem:[#allocation11 + $0x88] sm:$0xff]  ;;  %5231 = vmatpush.msra.mxu2 %v9051_v32  ;;  %v9067_v41 = vsub.f32 %v4827_v12, %v9051_v32  ;;  %v5289_v28 = vand.u32 4294901760, %v5288_v21  ;;  %v5295_v44 = vand.u32 4294901760, %v5294_v18  ;;  %v5301_v50 = vand.u32 4294901760, %v5300_v25  ;;  %v4811_v18 = vld [vmem:[#allocation11 + $0x18] sm:$0xff] }
 0xc51   : > { %v5330_v12 = vsub.f32 %v9107_v24, %v10022_v42  ;;  %v9126_v21 = vsub.f32 %v4815_v5, %v9114_v6  ;;  %v9134_v25 = vsub.f32 %v4813_v20, %v9123_v51 }
 0xc52   : > { %5204 = vmatpush.msrb.mxu1 %v8877_v3  ;;  %v9064_v3 = vand.u32 4294901760, %v4825_v14  ;;  %5290 = vmatpush.msra.mxu3 %v5289_v28 }
 0xc53   : > { %v5331_v28 = vand.u32 4294901760, %v5330_v12  ;;  %v10019_v29 = vand.u32 4294901760, %v9134_v25 }
 0xc54   : > { %5206 = vmatpush.msrb.mxu1 %v8890_v39  ;;  %v4823_v39 = vld [vmem:[#allocation11 + $0x78] sm:$0xff]  ;;  %5233 = vmatpush.msra.mxu2 %v9064_v3  ;;  %v9077_v0 = vsub.f32 %v4825_v14, %v9064_v3  ;;  %v10021_v14 = vand.u32 4294901760, %v9117_v1 }
 0xc55   : > { %v9074_v4 = vand.u32 4294901760, %v4823_v39  ;;  %5296 = vmatpush.msra.mxu3 %v5295_v44  ;;  %v9131_v44 = vand.u32 4294901760, %v4811_v18 }
 0xc56   : > { %5208 = vmatpush.msrb.mxu1 %v8905_v22  ;;  %v5305_v22 = vand.u32 4294901760, %v9067_v41  ;;  %v5311_v58 = vand.u32 4294901760, %v9077_v0  ;;  %v5336_v59 = vsub.f32 %v9117_v1, %v10021_v14 }
 0xc57   : > { %5235 = vmatpush.msra.mxu2 %v9074_v4  ;;  %v9086_v60 = vsub.f32 %v4823_v39, %v9074_v4  ;;  %5302 = vmatpush.msra.mxu3 %v5301_v50  ;;  %v10020_v39 = vand.u32 4294901760, %v9126_v21  ;;  %v4809_v50 = vld [vmem:[#allocation11 + $0x8] sm:$0xff] }
 0xc58   : > { %v5306_v11 = vsub.f32 %v9067_v41, %v5305_v22  ;;  %v5312_v13 = vsub.f32 %v9077_v0, %v5311_v58  ;;  %v5337_v7 = vand.u32 4294901760, %v5336_v59 }
 0xc59   : > { %5237 = vmatpush.msra.mxu2 %v9083_v63  ;;  %v5317_v31 = vand.u32 4294901760, %v9086_v60 }
 0xc5a   : > { %v5307_v37 = vand.u32 4294901760, %v5306_v11  ;;  %v5313_v62 = vand.u32 4294901760, %v5312_v13  ;;  %v5342_v11 = vsub.f32 %v9126_v21, %v10020_v39  ;;  %v9147_v13 = vsub.f32 %v4811_v18, %v9131_v44 }
 0xc5b   : > { %v5318_v33 = vsub.f32 %v9086_v60, %v5317_v31  ;;  %5239 = vmatpush.msra.mxu2 %v9091_v16 }
 0xc5c   : > { %5308 = vmatpush.msra.mxu3 %v5307_v37  ;;  %v9144_v37 = vand.u32 4294901760, %v4809_v50  ;;  %v10018_v5 = vand.u32 4294901760, %v9147_v13 }
 0xc5d   : > { %v5319_v45 = vand.u32 4294901760, %v5318_v33  ;;  %5241 = vmatpush.msra.mxu2 %v9104_v9  ;;  %v5343_v33 = vand.u32 4294901760, %v5342_v11 }
 0xc5e   : > { %5314 = vmatpush.msra.mxu3 %v5313_v62  ;;  %v5348_v62 = vsub.f32 %v9134_v25, %v10019_v29 }
 0xc5f   : > { %5243 = vmatpush.msra.mxu2 %v9114_v6 }
 0xc60   : > { %5320 = vmatpush.msra.mxu3 %v5319_v45  ;;  %v9155_v45 = vsub.f32 %v4809_v50, %v9144_v37  ;;  %v5349_v20 = vand.u32 4294901760, %v5348_v62 }
 0xc61   : > { %5245 = vmatpush.msra.mxu2 %v9123_v51 }
 0xc62   : > { %5326 = vmatpush.msra.mxu3 %v5325_v56  ;;  %v5354_v56 = vsub.f32 %v9147_v13, %v10018_v5  ;;  %v5359_v12 = vand.u32 4294901760, %v9155_v45 }
 0xc63   : > { %5247 = vmatpush.msra.mxu2 %v9131_v44 }
 0xc64   : > { %5332 = vmatpush.msra.mxu3 %v5331_v28  ;;  %v5355_v28 = vand.u32 4294901760, %v5354_v56  ;;  %v5360_v59 = vsub.f32 %v9155_v45, %v5359_v12 }
 0xc65   : > { %5249 = vmatpush.msra.mxu2 %v9144_v37 }
 0xc66   : > { %5338 = vmatpush.msra.mxu3 %v5337_v7  ;;  %v5361_v50 = vand.u32 4294901760, %v5360_v59 }
 0xc68   : > { %5344 = vmatpush.msra.mxu3 %v5343_v33 }
 0xc6a   : > { %5350 = vmatpush.msra.mxu3 %v5349_v20  ;;  %v6863_v20 = vld [vmem:[%s9995_s13] ss:$0 sm:$0xff] }
 0xc6c   : > { %5356 = vmatpush.msra.mxu3 %v5355_v28 }
 0xc6e   : > { %5362 = vmatpush.msra.mxu3 %v5361_v50 }
 0xca1   : > { %v4769_v19 = vpop.xlane.xlu2 %4768 }
 0xca2   : > { %v4772_v18 = vmul.f32 %v4769_v19, %v7587_v61 }
 0xca4   : > { %v4774_v11 = vadd.f32 1e-06, %v4772_v18 }
 0xca6   : > { %6904 = vrsqrt.f32 %v4774_v11  ;;  %vm4782_vm9 = vweird.f32 %v4774_v11 }
 0xca9   : > { %v4771_v7 = vpop.xlane.xlu0 %4770 }
 0xcaa   : > { %v4773_v62 = vmul.f32 %v4771_v7, %v7587_v61  ;;  %v6864_v61 = vld [vmem:[%s9996_s14] ss:$0 sm:$0xff] }
 0xcac   : > { %v6905_v5 = vpop.eup %6904  ;;  %v4775_v29 = vadd.f32 1e-06, %v4773_v62 }
 0xcad   : > { %v4777_v39 = vmul.f32 %v6905_v5, %v4774_v11  ;;  %vm4783_vm7 = vweird.f32 %v6905_v5 }
 0xcae   : > { %6906 = vrsqrt.f32 %v4775_v29  ;;  %vm4784_vm1 = vmor %vm4782_vm9, %vm4783_vm7  ;;  %vm4792_vm3 = vweird.f32 %v4775_v29 }
 0xcaf   : > { %v4778_v19 = vmul.f32 %v6905_v5, %v4777_v39 }
 0xcb1   : > { %v4779_v33 = vmul.f32 0.5, %v4778_v19 }
 0xcb3   : > { %v4780_v56 = vsub.f32 1.5, %v4779_v33 }
 0xcb4   : > { %v6907_v14 = vpop.eup %6906 }
 0xcb5   : > { %v4781_v42 = vmul.f32 %v6905_v5, %v4780_v56  ;;  %v4787_v18 = vmul.f32 %v6907_v14, %v4775_v29  ;;  %vm4793_vm2 = vweird.f32 %v6907_v14 }
 0xcb6   : > { %vm4794_vm4 = vmor %vm4792_vm3, %vm4793_vm2 }
 0xcb7   : > { %v4785_v28 = vsel %vm4784_vm1, %v6905_v5, %v4781_v42  ;;  %v4788_v59 = vmul.f32 %v6907_v14, %v4787_v18 }
 0xcb8   : > { %v4796_v39 = vmul.f32 %v4785_v28, %v8893_v57 }
 0xcb9   : > { %v4789_v50 = vmul.f32 0.5, %v4788_v59 }
 0xcba   : > { %v4801_v7 = vmul.f32 %v6863_v20, %v4796_v39 }
 0xcbb   : > { %v4790_v62 = vsub.f32 1.5, %v4789_v50  ;;  %v5757_v50 = vld [vmem:[#allocation13 + $0x38] sm:$0xff] }
 0xcbc   : > { %v4806_v19 = vadd.f32 %v6864_v61, %v4801_v7 }
 0xcbd   : > { %v4791_v11 = vmul.f32 %v6907_v14, %v4790_v62 }
 0xcbe   : > { %v9173_v33 = vand.u32 4294901760, %v4806_v19 }
 0xcbf   : > { %v4795_v56 = vsel %vm4794_vm4, %v6907_v14, %v4791_v11 }
 0xcc0   : > { %v4797_v42 = vmul.f32 %v4795_v56, %v8937_v35  ;;  %4992 = vmatmul.f32.vlgmr.msra.gmra.mxu1 %v9173_v33  ;;  %v9178_v5 = vsub.f32 %v4806_v19, %v9173_v33  ;;  %v9383_v56 = vand.u32 4294901760, %v5757_v50 }
 0xcc1   : > { %5432 = vmatpush.msra.mxu1 %v9004_v2 }
 0xcc2   : > { %v4802_v57 = vmul.f32 %v6863_v20, %v4797_v42  ;;  %5050 = vmatmul.f32.vlgmr.msrb.gmra.mxu2 %v9178_v5  ;;  %v9183_v18 = vand.u32 4294901760, %v9178_v5  ;;  %v5756_v42 = vld [vmem:[#allocation13 + $0x30] sm:$0xff] }
 0xcc3   : > { %5434 = vmatpush.msra.mxu1 %v9010_v54  ;;  %5479 = vmatpush.msrb.mxu2 %v5269_v47 }
 0xcc4   : > { %v4807_v14 = vadd.f32 %v6864_v61, %v4802_v57  ;;  %5094 = vmatmul.f32.vlgmr.msrb.gmra.mxu3 %v9183_v18  ;;  %v4881_v35 = vsub.f32 %v9178_v5, %v9183_v18 }
 0xcc5   : > { %5436 = vmatpush.msra.mxu1 %v9014_v8  ;;  %5483 = vmatpush.msrb.mxu2 %v5275_v27  ;;  %v10086_v27 = vand.u32 4294901760, %v9126_v21 }
 0xcc6   : > { %v9194_v29 = vand.u32 4294901760, %v4807_v14  ;;  %5550 = vmatpush.msrb.mxu3 %v9004_v2  ;;  %v4882_v20 = vand.u32 4294901760, %v4881_v35 }
 0xcc7   : > { %5438 = vmatpush.msra.mxu1 %v9024_v40  ;;  %5487 = vmatpush.msrb.mxu2 %v5281_v55  ;;  %v5765_v55 = vld [vmem:[#allocation13 + $0x78] sm:$0xff] }
 0xcc8   : > { %5552 = vmatpush.msrb.mxu3 %v9010_v54  ;;  %4883 = vmatmul.f32.vlgmr.msra.gmra.mxu0 %v4882_v20  ;;  %v9202_v47 = vsub.f32 %v4807_v14, %v9194_v29 }
 0xcc9   : > { %4996 = vmatmul.f32.gmra.mxu1 %v9194_v29  ;;  %5374 = vmatpush.msra.mxu0 %v9008_v38 }
 0xcca   : > { %5440 = vmatpush.msra.mxu1 %v9034_v46  ;;  %5491 = vmatpush.msrb.mxu2 %v5287_v34  ;;  %v9210_v2 = vand.u32 4294901760, %v9202_v47  ;;  %v5763_v34 = vld [vmem:[#allocation13 + $0x68] sm:$0xff] }
 0xccb   : > { %5554 = vmatpush.msrb.mxu3 %v9014_v8  ;;  %5055 = vmatmul.f32.gmra.mxu2 %v9202_v47  ;;  %v10084_v8 = vand.u32 4294901760, %v9107_v24 }
 0xccc   : > { %5377 = vmatpush.msra.mxu0 %v9017_v23  ;;  %5442 = vmatpush.msra.mxu1 %v9043_v26  ;;  %v4889_v54 = vsub.f32 %v9202_v47, %v9210_v2  ;;  %v10085_v23 = vand.u32 4294901760, %v9117_v1 }
 0xccd   : > { %5495 = vmatpush.msrb.mxu2 %v5293_v30  ;;  %5556 = vmatpush.msrb.mxu3 %v9024_v40  ;;  %v10087_v40 = vand.u32 4294901760, %v9134_v25 }
 0xcce   : > { %5100 = vmatmul.f32.gmra.mxu3 %v9210_v2  ;;  %5380 = vmatpush.msra.mxu0 %v9027_v52  ;;  %v4890_v38 = vand.u32 4294901760, %v4889_v54  ;;  %v10088_v52 = vand.u32 4294901760, %v9147_v13 }
 0xccf   : > { %5444 = vmatpush.msra.mxu1 %v9051_v32  ;;  %5499 = vmatpush.msrb.mxu2 %v5299_v49  ;;  %v5762_v49 = vld [vmem:[#allocation13 + $0x60] sm:$0xff] }
 0xcd0   : > { %5558 = vmatpush.msrb.mxu3 %v9034_v46  ;;  %5383 = vmatpush.msra.mxu0 %v9037_v48  ;;  %v9294_v46 = vand.u32 4294901760, %v5765_v55  ;;  %v5764_v48 = vld [vmem:[#allocation13 + $0x70] sm:$0xff] }
 0xcd1   : > { %5446 = vmatpush.msra.mxu1 %v9064_v3  ;;  %5503 = vmatpush.msrb.mxu2 %v5305_v22 }
 0xcd2   : > { %5560 = vmatpush.msrb.mxu3 %v9043_v26  ;;  %4891 = vmatmul.f32.gmra.mxu0 %v4890_v38  ;;  %v9297_v26 = vsub.f32 %v5765_v55, %v9294_v46  ;;  %v5754_v55 = vld [vmem:[#allocation13 + $0x20] sm:$0xff] }
 0xcd3   : > { %5210 = vmatmul.f32.vlgmr.msrb.gmra.mxu1 %v9173_v33  ;;  %5386 = vmatpush.msra.mxu0 %v9046_v10  ;;  %v9299_v10 = vand.u32 4294901760, %v5764_v48 }
 0xcd4   : > { %5448 = vmatpush.msra.mxu1 %v9074_v4  ;;  %5507 = vmatpush.msrb.mxu2 %v5311_v58  ;;  %v5837_v30 = vand.u32 4294901760, %v9297_v26 }
 0xcd5   : > { %5562 = vmatpush.msrb.mxu3 %v9051_v32  ;;  %5255 = vmatmul.f32.vlgmr.msra.gmra.mxu2 %v4882_v20  ;;  %v9305_v32 = vsub.f32 %v5764_v48, %v9299_v10 }
 0xcd6   : > { %5389 = vmatpush.msra.mxu0 %v9054_v17  ;;  %5450 = vmatpush.msra.mxu1 %v9083_v63  ;;  %v9307_v17 = vand.u32 4294901760, %v5763_v34 }
 0xcd7   : > { %5511 = vmatpush.msrb.mxu2 %v5317_v31  ;;  %5564 = vmatpush.msrb.mxu3 %v9064_v3  ;;  %v5838_v3 = vsub.f32 %v9297_v26, %v5837_v30  ;;  %v5761_v31 = vld [vmem:[#allocation13 + $0x58] sm:$0xff] }
 0xcd8   : > { %5364 = vmatmul.f32.vlgmr.msra.gmra.mxu3 %v9173_v33  ;;  %5392 = vmatpush.msra.mxu0 %v9067_v41  ;;  %v5843_v41 = vand.u32 4294901760, %v9305_v32  ;;  %v9317_v22 = vsub.f32 %v5763_v34, %v9307_v17 }
 0xcd9   : > { %5452 = vmatpush.msra.mxu1 %v9091_v16  ;;  %5515 = vmatpush.msrb.mxu2 %v5323_v36 }
 0xcda   : > { %5566 = vmatpush.msrb.mxu3 %v9074_v4  ;;  %5395 = vmatpush.msra.mxu0 %v9077_v0  ;;  %v9319_v4 = vand.u32 4294901760, %v5762_v49  ;;  %v5839_v0 = vand.u32 4294901760, %v5838_v3  ;;  %v9423_v3 = vand.u32 4294901760, %v5754_v55 }
 0xcdb   : > { %5454 = vmatpush.msra.mxu1 %v9104_v9  ;;  %5519 = vmatpush.msrb.mxu2 %v10084_v8 }
 0xcdc   : > { %5568 = vmatpush.msrb.mxu3 %v9083_v63  ;;  %5169 = vmatmul.f32.vlgmr.msrb.gmra.mxu0 %v9173_v33  ;;  %v5844_v63 = vsub.f32 %v9305_v32, %v5843_v41  ;;  %v9329_v58 = vsub.f32 %v5762_v49, %v9319_v4 }
 0xcdd   : > { %5214 = vmatmul.f32.gmra.mxu1 %v9194_v29  ;;  %5398 = vmatpush.msra.mxu0 %v9086_v60  ;;  %v5849_v60 = vand.u32 4294901760, %v9317_v22 }
 0xcde   : > { %5456 = vmatpush.msra.mxu1 %v9114_v6  ;;  %5523 = vmatpush.msrb.mxu2 %v10085_v23 }
 0xcdf   : > { %5570 = vmatpush.msrb.mxu3 %v9091_v16  ;;  %5263 = vmatmul.f32.gmra.mxu2 %v4890_v38  ;;  %v9333_v16 = vand.u32 4294901760, %v5761_v31  ;;  %v5850_v36 = vsub.f32 %v9317_v22, %v5849_v60 }
 0xce0   : > { %5401 = vmatpush.msra.mxu0 %v9094_v53  ;;  %5458 = vmatpush.msra.mxu1 %v9123_v51  ;;  %v5845_v53 = vand.u32 4294901760, %v5844_v63  ;;  %v5753_v63 = vld [vmem:[#allocation13 + $0x18] sm:$0xff] }
 0xce1   : > { %5527 = vmatpush.msrb.mxu2 %v10086_v27  ;;  %5572 = vmatpush.msrb.mxu3 %v9104_v9  ;;  %v5855_v9 = vand.u32 4294901760, %v9329_v58 }
 0xce2   : > { %5368 = vmatmul.f32.gmra.mxu3 %v9194_v29  ;;  %5404 = vmatpush.msra.mxu0 %v9107_v24  ;;  %v5760_v24 = vld [vmem:[#allocation13 + $0x50] sm:$0xff] }
 0xce3   : > { %5460 = vmatpush.msra.mxu1 %v9131_v44  ;;  %5531 = vmatpush.msrb.mxu2 %v10087_v40 }
 0xce4   : > { %5574 = vmatpush.msrb.mxu3 %v9114_v6  ;;  %5407 = vmatpush.msra.mxu0 %v9117_v1  ;;  %v9341_v6 = vsub.f32 %v5761_v31, %v9333_v16  ;;  %v9343_v1 = vand.u32 4294901760, %v5760_v24 }
 0xce5   : > { %5462 = vmatpush.msra.mxu1 %v9144_v37  ;;  %5535 = vmatpush.msrb.mxu2 %v10088_v52 }
 0xce6   : > { %5576 = vmatpush.msrb.mxu3 %v9123_v51  ;;  %5173 = vmatmul.f32.gmra.mxu0 %v9194_v29  ;;  %v5851_v51 = vand.u32 4294901760, %v5850_v36  ;;  %v9436_v36 = vsub.f32 %v5754_v55, %v9423_v3 }
 0xce7   : > { %5466 = vmatmul.f32.vlgmr.msra.gmra.mxu1 %v9183_v18  ;;  %5410 = vmatpush.msra.mxu0 %v9126_v21  ;;  %v5856_v21 = vsub.f32 %v9329_v58, %v5855_v9 }
 0xce8   : > { %5539 = vmatpush.msrb.mxu2 %v5359_v12  ;;  %5578 = vmatpush.msrb.mxu3 %v9131_v44  ;;  %v5759_v44 = vld [vmem:[#allocation13 + $0x48] sm:$0xff]  ;;  %v5758_v12 = vld [vmem:[#allocation13 + $0x40] sm:$0xff] }
 0xce9   : > { %5541 = vmatmul.f32.vlgmr.msrb.gmra.mxu2 %v9173_v33  ;;  %5413 = vmatpush.msra.mxu0 %v9134_v25  ;;  %v5861_v25 = vand.u32 4294901760, %v9341_v6  ;;  %v9367_v39 = vand.u32 4294901760, %v5758_v12 }
 0xcea   : > { %5580 = vmatpush.msrb.mxu3 %v9144_v37  ;;  %5942 = vmatpush.msra.mxu2 %v9297_v26  ;;  %v9353_v37 = vsub.f32 %v5760_v24, %v9343_v1  ;;  %v9438_v24 = vand.u32 4294901760, %v5753_v63 }
 0xceb   : > { %5582 = vmatmul.f32.vlgmr.msrb.gmra.mxu3 %v9173_v33  ;;  %5416 = vmatpush.msra.mxu0 %v9147_v13  ;;  %v9355_v13 = vand.u32 4294901760, %v5759_v44  ;;  %v5862_v28 = vsub.f32 %v9341_v6, %v5861_v25  ;;  %v9377_v11 = vsub.f32 %v5758_v12, %v9367_v39  ;;  %v10025_v12 = vand.u32 4294901760, %v9436_v36 }
 0xcec   : > { %6000 = vmatpush.msra.mxu3 %v9294_v46  ;;  %5945 = vmatpush.msra.mxu2 %v9305_v32  ;;  %v5867_v59 = vand.u32 4294901760, %v9353_v37 }
 0xced   : > { %5419 = vmatpush.msra.mxu0 %v9155_v45  ;;  %5840 = vmatpush.msrb.mxu1 %v5839_v0  ;;  %v5857_v45 = vand.u32 4294901760, %v5856_v21  ;;  %v9365_v61 = vsub.f32 %v5759_v44, %v9355_v13  ;;  %v5863_v7 = vand.u32 4294901760, %v5862_v28  ;;  %v5879_v35 = vand.u32 4294901760, %v9377_v11 }
 0xcee   : > { %5422 = vmatmul.f32.vlgmr.msra.gmra.mxu0 %v9178_v5  ;;  %6002 = vmatpush.msra.mxu3 %v9299_v10  ;;  %v5868_v62 = vsub.f32 %v9353_v37, %v5867_v59  ;;  %v9389_v5 = vld [vmem:[%s9998_s16] sm:$0x3]  ;;  %v9450_v28 = vsub.f32 %v5753_v63, %v9438_v24 }
 0xcef   : > { %5472 = vmatmul.f32.gmra.mxu1 %v9210_v2  ;;  %5787 = vmatpush.msrb.mxu0 %v9294_v46  ;;  %v5873_v19 = vand.u32 4294901760, %v9365_v61  ;;  %v5755_v2 = vld [vmem:[#allocation13 + $0x28] sm:$0xff]  ;;  %v5880_v38 = vsub.f32 %v9377_v11, %v5879_v35  ;;  %v4842_v27 = vperm.slane %v9389_v5, 0 }
 0xcf0   : > { %6004 = vmatpush.msra.mxu3 %v9307_v17  ;;  %5948 = vmatpush.msra.mxu2 %v9317_v22  ;;  %v5869_v18 = vand.u32 4294901760, %v5868_v62  ;;  %v9410_v23 = vand.u32 4294901760, %v5755_v2 }
 0xcf1   : > { %5545 = vmatmul.f32.gmra.mxu2 %v9194_v29  ;;  %5789 = vmatpush.msrb.mxu0 %v9299_v10  ;;  %v5874_v14 = vsub.f32 %v9365_v61, %v5873_v19  ;;  %v5881_v48 = vand.u32 4294901760, %v5880_v38 }
 0xcf2   : > { %6006 = vmatpush.msra.mxu3 %v9319_v4  ;;  %5846 = vmatpush.msrb.mxu1 %v5845_v53  ;;  %v9421_v49 = vsub.f32 %v5755_v2, %v9410_v23  ;;  %v5751_v2 = vld [vmem:[#allocation13 + $0x8] sm:$0xff] }
 0xcf3   : > { %5586 = vmatmul.f32.gmra.mxu3 %v9194_v29  ;;  %5791 = vmatpush.msrb.mxu0 %v9307_v17  ;;  %v9395_v29 = vand.u32 4294901760, %v5756_v42  ;;  %v5875_v54 = vand.u32 4294901760, %v5874_v14  ;;  %v10024_v14 = vand.u32 4294901760, %v9450_v28 }
 0xcf4   : > { %6008 = vmatpush.msra.mxu3 %v9333_v16  ;;  %5951 = vmatpush.msra.mxu2 %v9329_v58  ;;  %v5897_v53 = vand.u32 4294901760, %v9421_v49 }
 0xcf5   : > { %5793 = vmatpush.msrb.mxu0 %v9319_v4  ;;  %5852 = vmatpush.msrb.mxu1 %v5851_v51  ;;  %v9408_v8 = vsub.f32 %v5756_v42, %v9395_v29  ;;  %v5910_v63 = vsub.f32 %v9450_v28, %v10024_v14 }
 0xcf6   : > { %5427 = vmatmul.f32.gmra.mxu0 %v9202_v47  ;;  %6010 = vmatpush.msra.mxu3 %v9343_v1  ;;  %v9400_v47 = vsub.f32 %v5757_v50, %v9383_v56  ;;  %v5752_v50 = vld [vmem:[#allocation13 + $0x10] sm:$0xff] }
 0xcf7   : > { %5795 = vmatpush.msrb.mxu0 %v9333_v16  ;;  %5954 = vmatpush.msra.mxu2 %v9341_v6  ;;  %v5891_v34 = vand.u32 4294901760, %v9408_v8  ;;  %v9453_v62 = vand.u32 4294901760, %v5752_v50  ;;  %v4843_v6 = vperm.slane %v9389_v5, 1 }
 0xcf8   : > { %6012 = vmatpush.msra.mxu3 %v9355_v13  ;;  %5858 = vmatpush.msrb.mxu1 %v5857_v45  ;;  %v5885_v52 = vand.u32 4294901760, %v9400_v47  ;;  %v5898_v45 = vsub.f32 %v9421_v49, %v5897_v53 }
 0xcf9   : > { %5797 = vmatpush.msrb.mxu0 %v9343_v1  ;;  %5957 = vmatpush.msra.mxu2 %v9353_v37  ;;  %v5892_v31 = vsub.f32 %v9408_v8, %v5891_v34  ;;  %v9466_v55 = vsub.f32 %v5752_v50, %v9453_v62 }
 0xcfa   : > { %6014 = vmatpush.msra.mxu3 %v9367_v39  ;;  %5864 = vmatpush.msrb.mxu1 %v5863_v7  ;;  %v5886_v0 = vsub.f32 %v9400_v47, %v5885_v52 }
 0xcfb   : > { %5799 = vmatpush.msrb.mxu0 %v9355_v13  ;;  %5960 = vmatpush.msra.mxu2 %v9365_v61  ;;  %v5893_v44 = vand.u32 4294901760, %v5892_v31  ;;  %v5750_v31 = vld [vmem:[#allocation13] sm:$0xff] }
 0xcfc   : > { %6016 = vmatpush.msra.mxu3 %v9383_v56  ;;  %5870 = vmatpush.msrb.mxu1 %v5869_v18  ;;  %v5887_v21 = vand.u32 4294901760, %v5886_v0  ;;  %v5904_v18 = vsub.f32 %v9436_v36, %v10025_v12 }
 0xcfd   : > { %5801 = vmatpush.msrb.mxu0 %v9367_v39  ;;  %5963 = vmatpush.msra.mxu2 %v9377_v11 }
 0xcfe   : > { %6018 = vmatpush.msra.mxu3 %v9395_v29  ;;  %5876 = vmatpush.msrb.mxu1 %v5875_v54  ;;  %v5905_v0 = vand.u32 4294901760, %v5904_v18 }
 0xcff   : > { %5803 = vmatpush.msrb.mxu0 %v9383_v56  ;;  %5966 = vmatpush.msra.mxu2 %v9400_v47 }
 0xd00   : > { %6020 = vmatpush.msra.mxu3 %v9410_v23  ;;  %5882 = vmatpush.msrb.mxu1 %v5881_v48  ;;  %v9468_v48 = vand.u32 4294901760, %v5751_v2 }
 0xd01   : > { %5805 = vmatpush.msrb.mxu0 %v9395_v29  ;;  %5969 = vmatpush.msra.mxu2 %v9408_v8 }
 0xd02   : > { %6022 = vmatpush.msra.mxu3 %v9423_v3  ;;  %5888 = vmatpush.msrb.mxu1 %v5887_v21  ;;  %v9480_v21 = vsub.f32 %v5751_v2, %v9468_v48 }
 0xd03   : > { %5807 = vmatpush.msrb.mxu0 %v9410_v23  ;;  %5972 = vmatpush.msra.mxu2 %v9421_v49 }
 0xd04   : > { %6024 = vmatpush.msra.mxu3 %v9438_v24  ;;  %5894 = vmatpush.msrb.mxu1 %v5893_v44  ;;  %v9482_v44 = vand.u32 4294901760, %v5750_v31  ;;  %v10026_v18 = vand.u32 4294901760, %v9480_v21 }
 0xd05   : > { %5809 = vmatpush.msrb.mxu0 %v9423_v3  ;;  %5975 = vmatpush.msra.mxu2 %v9436_v36 }
 0xd06   : > { %6026 = vmatpush.msra.mxu3 %v9453_v62  ;;  %v9493_v2 = vsub.f32 %v5750_v31, %v9482_v44 }
 0xd07   : > { %5811 = vmatpush.msrb.mxu0 %v9438_v24  ;;  %5978 = vmatpush.msra.mxu2 %v9450_v28 }
 0xd08   : > { %6028 = vmatpush.msra.mxu3 %v9468_v48 }
 0xd09   : > { %5813 = vmatpush.msrb.mxu0 %v9453_v62  ;;  %5981 = vmatpush.msra.mxu2 %v9466_v55 }
 0xd0a   : > { %6030 = vmatpush.msra.mxu3 %v9482_v44 }
 0xd0b   : > { %5815 = vmatpush.msrb.mxu0 %v9468_v48  ;;  %5984 = vmatpush.msra.mxu2 %v9480_v21 }
 0xd0d   : > { %5817 = vmatpush.msrb.mxu0 %v9482_v44  ;;  %5987 = vmatpush.msra.mxu2 %v9493_v2 }
 0xd0f   : > { %6047 = vmatpush.msra.mxu0 %v5837_v30 }
 0xd11   : > { %6051 = vmatpush.msra.mxu0 %v5843_v41 }
 0xd13   : > { %6055 = vmatpush.msra.mxu0 %v5849_v60 }
 0xd15   : > { %6059 = vmatpush.msra.mxu0 %v5855_v9  ;;  %v5777_v9 = vld [vmem:[#allocation13 + $0xd8] sm:$0xff] }
 0xd17   : > { %6063 = vmatpush.msra.mxu0 %v5861_v25  ;;  %v9566_v25 = vand.u32 4294901760, %v5777_v9 }
 0xd19   : > { %6067 = vmatpush.msra.mxu0 %v5867_v59  ;;  %v9580_v37 = vsub.f32 %v5777_v9, %v9566_v25  ;;  %v5775_v59 = vld [vmem:[#allocation13 + $0xc8] sm:$0xff] }
 0xd1b   : > { %6071 = vmatpush.msra.mxu0 %v5873_v19  ;;  %v10032_v61 = vand.u32 4294901760, %v9580_v37  ;;  %v5774_v19 = vld [vmem:[#allocation13 + $0xc0] sm:$0xff] }
 0xd1d   : > { %6075 = vmatpush.msra.mxu0 %v5879_v35  ;;  %v5773_v35 = vld [vmem:[#allocation13 + $0xb8] sm:$0xff] }
 0xd1f   : > { %6079 = vmatpush.msra.mxu0 %v5885_v52 }
 0xd21   : > { %6083 = vmatpush.msra.mxu0 %v5891_v34 }
 0xd23   : > { %6087 = vmatpush.msra.mxu0 %v5897_v53 }
 0xd3d   : > { %v9381_v33 = vpop.f32.mrf.mxu1 }
 0xd45   : > { %v4884_v57 = vpop.f32.mrf.mxu0  ;;  %v9397_v20 = vpop.f32.mrf.mxu2 }
 0xd46   : > { %v4885_v51 = vadd.f32 %v4884_v57, %v4842_v27  ;;  %v4997_v7 = vpop.f32.mrf.mxu1  ;;  %v5899_v57 = vand.u32 4294901760, %v5898_v45  ;;  %v5911_v45 = vand.u32 4294901760, %v5910_v63 }
 0xd47   : > { %v9414_v40 = vpop.f32.mrf.mxu3 }
 0xd48   : > { %v4994_v54 = vadd.f32 %v9381_v33, %v4885_v51  ;;  %5900 = vmatpush.msrb.mxu1 %v5899_v57  ;;  %v10023_v51 = vand.u32 4294901760, %v9466_v55 }
 0xd4a   : > { %v5052_v50 = vadd.f32 %v9397_v20, %v4994_v54  ;;  %5906 = vmatpush.msrb.mxu1 %v5905_v0  ;;  %v5916_v57 = vsub.f32 %v9466_v55, %v10023_v51  ;;  %v5922_v54 = vsub.f32 %v9480_v21, %v10026_v18  ;;  %v10027_v0 = vand.u32 4294901760, %v9493_v2  ;;  %v5781_v51 = vld [vmem:[#allocation13 + $0xf8] sm:$0xff]  ;;  %v5779_v18 = vld [vmem:[#allocation13 + $0xe8] sm:$0xff] }
 0xd4b   : > { %v9506_v31 = vand.u32 4294901760, %v5781_v51 }
 0xd4c   : > { %5912 = vmatpush.msrb.mxu1 %v5911_v45  ;;  %v5917_v20 = vand.u32 4294901760, %v5916_v57  ;;  %v5096_v14 = vadd.f32 %v9414_v40, %v5052_v50  ;;  %v5780_v45 = vld [vmem:[#allocation13 + $0xf0] sm:$0xff] }
 0xd4d   : > { %v9516_v26 = vsub.f32 %v5781_v51, %v9506_v31  ;;  %v9518_v30 = vand.u32 4294901760, %v5780_v45  ;;  %6159 = vmatpush.msrb.mxu2 %v9506_v31  ;;  %v9527_v51 = vand.u32 4294901760, %v5779_v18 }
 0xd4e   : > { %v9463_v38 = vpop.f32.mrf.mxu2  ;;  %5918 = vmatpush.msrb.mxu1 %v5917_v20 }
 0xd4f   : > { %v4892_v42 = vpop.f32.mrf.mxu0  ;;  %v10034_v32 = vand.u32 4294901760, %v9516_v26  ;;  %v9525_v41 = vsub.f32 %v5780_v45, %v9518_v30  ;;  %6161 = vmatpush.msrb.mxu2 %v9518_v30 }
 0xd50   : > { %v4893_v63 = vadd.f32 %v4892_v42, %v4842_v27  ;;  %v5211_v12 = vpop.f32.mrf.mxu1  ;;  %v5923_v27 = vand.u32 4294901760, %v5922_v54  ;;  %v5928_v42 = vsub.f32 %v9493_v2, %v10027_v0 }
 0xd51   : > { %v9476_v33 = vpop.f32.mrf.mxu3  ;;  %v6210_v22 = vsub.f32 %v9516_v26, %v10034_v32  ;;  %v10028_v60 = vand.u32 4294901760, %v9525_v41  ;;  %6163 = vmatpush.msrb.mxu2 %v9527_v51 }
 0xd52   : > { %v4998_v40 = vadd.f32 %v4997_v7, %v4893_v63  ;;  %5924 = vmatpush.msrb.mxu1 %v5923_v27  ;;  %v5929_v54 = vand.u32 4294901760, %v5928_v42  ;;  %v9542_v63 = vsub.f32 %v5779_v18, %v9527_v51 }
 0xd53   : > { %v6216_v18 = vsub.f32 %v9525_v41, %v10028_v60 }
 0xd54   : > { %5930 = vmatpush.msrb.mxu1 %v5929_v54  ;;  %v5057_v27 = vadd.f32 %v9463_v38, %v4998_v40  ;;  %v10029_v42 = vand.u32 4294901760, %v9542_v63 }
 0xd56   : > { %6118 = vmatpush.msra.mxu1 %v9294_v46  ;;  %v6211_v46 = vand.u32 4294901760, %v6210_v22  ;;  %v6222_v40 = vsub.f32 %v9542_v63, %v10029_v42 }
 0xd58   : > { %v5256_v20 = vpop.f32.mrf.mxu2  ;;  %6120 = vmatpush.msra.mxu1 %v9299_v10  ;;  %v5776_v10 = vld [vmem:[#allocation13 + $0xd0] sm:$0xff]  ;;  %6212 = vmatpush.msrb.mxu3 %v6211_v46  ;;  %v6223_v46 = vand.u32 4294901760, %v6222_v40  ;;  %v9602_v40 = vand.u32 4294901760, %v5775_v59 }
 0xd59   : > { %v5170_v57 = vpop.f32.mrf.mxu0  ;;  %v9575_v54 = vand.u32 4294901760, %v5776_v10 }
 0xd5a   : > { %v5171_v50 = vadd.f32 %v5170_v57, %v5096_v14  ;;  %v5778_v14 = vld [vmem:[#allocation13 + $0xe0] sm:$0xff]  ;;  %6122 = vmatpush.msra.mxu1 %v9307_v17  ;;  %v6217_v57 = vand.u32 4294901760, %v6216_v18  ;;  %v5215_v60 = vpop.f32.mrf.mxu1 }
 0xd5b   : > { %v9532_v7 = vpop.f32.mrf.mxu3 }
 0xd5c   : > { %v9530_v0 = vadd.f32 %v5211_v12, %v5171_v50  ;;  %v9544_v12 = vand.u32 4294901760, %v5778_v14  ;;  %6124 = vmatpush.msra.mxu1 %v9319_v4  ;;  %6218 = vmatpush.msrb.mxu3 %v6217_v57  ;;  %v5257_v4 = vadd.f32 %v5256_v20, %v4843_v6 }
 0xd5e   : > { %v9549_v58 = vmul.f32 0.70710677, %v9530_v0  ;;  %v9559_v45 = vsub.f32 %v5778_v14, %v9544_v12  ;;  %6165 = vmatpush.msrb.mxu2 %v9544_v12  ;;  %v5102_v14 = vadd.f32 %v9476_v33, %v5057_v27  ;;  %v9590_v27 = vsub.f32 %v5776_v10, %v9575_v54  ;;  %6126 = vmatpush.msra.mxu1 %v9333_v16 }
 0xd5f   : > { %6224 = vmatpush.msrb.mxu3 %v6223_v46  ;;  %v6234_v16 = vsub.f32 %v9580_v37, %v10032_v61  ;;  %v5772_v46 = vld [vmem:[#allocation13 + $0xb0] sm:$0xff] }
 0xd60   : > { %v9563_v38 = vand.u32 2147483647, %v9549_v58  ;;  %v10033_v50 = vand.u32 4294901760, %v9559_v45  ;;  %6167 = vmatpush.msrb.mxu2 %v9566_v25  ;;  %v10030_v57 = vand.u32 4294901760, %v9590_v27  ;;  %6128 = vmatpush.msra.mxu1 %v9343_v1  ;;  %v5366_v1 = vadd.f32 %v9532_v7, %v5257_v4 }
 0xd61   : > { %v6235_v52 = vand.u32 4294901760, %v6234_v16  ;;  %vm5730_vm1 = vcmp.ge.f32.partialorder %v9549_v58, 0.0 }
 0xd62   : > { %v5602_v22 = vmul.f32 0.3275911, %v9563_v38  ;;  %v6228_v33 = vsub.f32 %v9559_v45, %v10033_v50  ;;  %v5264_v42 = vpop.f32.mrf.mxu2  ;;  %6169 = vmatpush.msrb.mxu2 %v9575_v54  ;;  %v6240_v20 = vsub.f32 %v9590_v27, %v10030_v57  ;;  %6130 = vmatpush.msra.mxu1 %v9355_v13  ;;  %v9644_v13 = vand.u32 4294901760, %v5772_v46 }
 0xd63   : > { %v5174_v17 = vpop.f32.mrf.mxu0  ;;  %v10090_v50 = vand.u32 4294901760, %v9450_v28 }
 0xd64   : > { %v9592_v9 = vadd.f32 1.0, %v5602_v22  ;;  %v5175_v18 = vadd.f32 %v5174_v17, %v5102_v14  ;;  %v6229_v10 = vand.u32 4294901760, %v6228_v33  ;;  %v9607_v22 = vand.u32 4294901760, %v5774_v19  ;;  %6171 = vmatpush.msrb.mxu2 %v9602_v40  ;;  %6132 = vmatpush.msra.mxu1 %v9367_v39  ;;  %v5467_v4 = vpop.f32.mrf.mxu1 }
 0xd65   : > { %v9605_v14 = vpop.f32.mrf.mxu3  ;;  %v9621_v17 = vsub.f32 %v5775_v59, %v9602_v40  ;;  %v10089_v39 = vand.u32 4294901760, %v9436_v36 }
 0xd66   : > { %6908 = vrcp.f32 %v9592_v9  ;;  %v9611_v11 = vadd.f32 %v5215_v60, %v5175_v18  ;;  %6230 = vmatpush.msrb.mxu3 %v6229_v10  ;;  %v6241_v60 = vand.u32 4294901760, %v6240_v20  ;;  %v9633_v59 = vsub.f32 %v5774_v19, %v9607_v22  ;;  %v5771_v10 = vld [vmem:[#allocation13 + $0xa8] sm:$0xff]  ;;  %6173 = vmatpush.msrb.mxu2 %v9607_v22 }
 0xd67   : > { %v10031_v33 = vand.u32 4294901760, %v9621_v17  ;;  %v9635_v18 = vand.u32 4294901760, %v5773_v35  ;;  %v9646_v7 = vand.u32 4294901760, %v5771_v10  ;;  %6091 = vmatpush.msra.mxu0 %v10089_v39  ;;  %v5619_v57 = vand.u32 2147483647, %v9592_v9  ;;  %6134 = vmatpush.msra.mxu1 %v9383_v56 }
 0xd68   : > { %v9628_v47 = vmul.f32 0.70710677, %v9611_v11  ;;  %6236 = vmatpush.msrb.mxu3 %v6235_v52  ;;  %v10040_v53 = vand.u32 4294901760, %v9633_v59  ;;  %v5621_v5 = vand.u32 2147483648, %v9592_v9  ;;  %v9679_v56 = vsub.f32 %v5772_v46, %v9644_v13 }
 0xd69   : > { %v6246_v49 = vsub.f32 %v9621_v17, %v10031_v33  ;;  %v9655_v20 = vsub.f32 %v5773_v35, %v9635_v18  ;;  %6175 = vmatpush.msrb.mxu2 %v9635_v18  ;;  %6095 = vmatpush.msra.mxu0 %v10090_v50  ;;  %v9685_v28 = vsub.f32 %v5771_v10, %v9646_v7  ;;  %vm5615_vm6 = vweird.f32 %v9592_v9 }
 0xd6a   : > { %v9641_v8 = vand.u32 2147483647, %v9628_v47  ;;  %6242 = vmatpush.msrb.mxu3 %v6241_v60  ;;  %v6252_v36 = vsub.f32 %v9633_v59, %v10040_v53  ;;  %6136 = vmatpush.msra.mxu1 %v9395_v29  ;;  %v10091_v29 = vand.u32 4294901760, %v9466_v55  ;;  %v10092_v55 = vand.u32 4294901760, %v9480_v21 }
 0xd6b   : > { %v5423_v34 = vpop.f32.mrf.mxu0  ;;  %v6247_v61 = vand.u32 4294901760, %v6246_v49  ;;  %v10039_v39 = vand.u32 4294901760, %v9655_v20  ;;  %6177 = vmatpush.msrb.mxu2 %v9644_v13  ;;  %v10038_v49 = vand.u32 4294901760, %v9679_v56  ;;  %vm5620_vm10 = vcmp.eq.f32.partialorder %v5619_v57, 8.507059e+37 }
 0xd6c   : > { %v9648_v19 = vpop.eup %6908  ;;  %v5424_v16 = vadd.f32 %v5423_v34, %v5366_v1  ;;  %v5604_v1 = vmul.f32 0.3275911, %v9641_v8  ;;  %v5265_v34 = vadd.f32 %v5264_v42, %v4843_v6  ;;  %v5542_v33 = vpop.f32.mrf.mxu2  ;;  %6138 = vmatpush.msra.mxu1 %v9410_v23  ;;  %6099 = vmatpush.msra.mxu0 %v10091_v29  ;;  %v10036_v23 = vand.u32 4294901760, %v9685_v28 }
 0xd6d   : > { %v5611_v52 = vmul.f32 %v9648_v19, %v9592_v9  ;;  %6248 = vmatpush.msrb.mxu3 %v6247_v61  ;;  %6179 = vmatpush.msrb.mxu2 %v9646_v7  ;;  %vm5616_vm5 = vweird.f32 %v9648_v19  ;;  %v5622_v9 = vor.u32 1.1754944e-38, %v5621_v5 }
 0xd6e   : > { %v5468_v35 = vadd.f32 %v5467_v4, %v5424_v16  ;;  %v9675_v42 = vadd.f32 1.0, %v5604_v1  ;;  %v5583_v60 = vpop.f32.mrf.mxu3  ;;  %v6253_v4 = vand.u32 4294901760, %v6252_v36  ;;  %v6258_v16 = vsub.f32 %v9655_v20, %v10039_v39  ;;  %6140 = vmatpush.msra.mxu1 %v9423_v3  ;;  %6103 = vmatpush.msra.mxu0 %v10092_v55  ;;  %vm5617_vm8 = vmor %vm5615_vm6, %vm5616_vm5  ;;  %v5473_v36 = vpop.f32.mrf.mxu1 }
 0xd6f   : > { %v5612_v32 = vsub.f32 1.0, %v5611_v52  ;;  %v5370_v10 = vadd.f32 %v9605_v14, %v5265_v34  ;;  %v5770_v52 = vld [vmem:[#allocation13 + $0xa0] sm:$0xff]  ;;  %v5706_v1 = vsub.f32 0.0, %v9563_v38  ;;  %v6270_v21 = vsub.f32 %v9685_v28, %v10036_v23 }
 0xd70   : > { %v5543_v6 = vadd.f32 %v5542_v33, %v5468_v35  ;;  %6910 = vrcp.f32 %v9675_v42  ;;  %6254 = vmatpush.msrb.mxu3 %v6253_v4  ;;  %v6259_v46 = vand.u32 4294901760, %v6258_v16  ;;  %v6264_v35 = vsub.f32 %v9679_v56, %v10038_v49  ;;  %6142 = vmatpush.msra.mxu1 %v9438_v24 }
 0xd71   : > { %v5613_v50 = vmul.f32 %v9648_v19, %v5612_v32  ;;  %v6271_v29 = vand.u32 4294901760, %v6270_v21  ;;  %vm5645_vm12 = vweird.f32 %v9675_v42  ;;  %vm5732_vm6 = vcmp.ge.f32.partialorder %v9628_v47, 0.0 }
 0xd72   : > { %v9695_v61 = vadd.f32 %v5583_v60, %v5543_v6  ;;  %6260 = vmatpush.msrb.mxu3 %v6259_v46  ;;  %v9723_v6 = vand.u32 4294901760, %v5770_v52  ;;  %v10093_v60 = vand.u32 4294901760, %v9493_v2  ;;  %6144 = vmatpush.msra.mxu1 %v9453_v62  ;;  %v5710_v46 = vmul.f32 %v5706_v1, %v9563_v38  ;;  %v5768_v62 = vld [vmem:[#allocation13 + $0x90] sm:$0xff] }
 0xd73   : > { %v5614_v33 = vadd.f32 %v9648_v19, %v5613_v50  ;;  %v5428_v32 = vpop.f32.mrf.mxu0  ;;  %v6265_v50 = vand.u32 4294901760, %v6264_v35  ;;  %v5649_v38 = vand.u32 2147483647, %v9675_v42  ;;  %v5651_v1 = vand.u32 2147483648, %v9675_v42 }
 0xd74   : > { %v9708_v14 = vmul.f32 0.70710677, %v9695_v61  ;;  %v5429_v34 = vadd.f32 %v5428_v32, %v5370_v10  ;;  %6107 = vmatpush.msra.mxu0 %v10093_v60  ;;  %v5546_v32 = vpop.f32.mrf.mxu2  ;;  %6181 = vmatpush.msrb.mxu2 %v9723_v6 }
 0xd75   : > { %v5618_v3 = vsel %vm5617_vm8, %v9648_v19, %v5614_v33  ;;  %v5769_v19 = vld [vmem:[#allocation13 + $0x98] sm:$0xff]  ;;  %6266 = vmatpush.msrb.mxu3 %v6265_v50  ;;  %6146 = vmatpush.msra.mxu1 %v9468_v48  ;;  %vm5650_vm14 = vcmp.eq.f32.partialorder %v5649_v38, 8.507059e+37 }
 0xd76   : > { %v9718_v57 = vsel %vm5620_vm10, %v5622_v9, %v5618_v3  ;;  %v9721_v5 = vand.u32 2147483647, %v9708_v14  ;;  %v6911_v4 = vpop.eup %6910  ;;  %v5474_v24 = vadd.f32 %v5473_v36, %v5429_v34  ;;  %v9734_v9 = vsub.f32 %v5770_v52, %v9723_v6  ;;  %v5587_v21 = vpop.f32.mrf.mxu3 }
 0xd77   : > { %v5670_v16 = vmul.f32 1.0614054, %v9718_v57  ;;  %v5641_v33 = vmul.f32 %v6911_v4, %v9675_v42  ;;  %v9737_v3 = vand.u32 4294901760, %v5769_v19  ;;  %6272 = vmatpush.msrb.mxu3 %v6271_v29  ;;  %6148 = vmatpush.msra.mxu1 %v9482_v44  ;;  %vm5646_vm11 = vweird.f32 %v6911_v4 }
 0xd78   : > { %v5603_v10 = vmul.f32 0.3275911, %v9721_v5  ;;  %v5547_v2 = vadd.f32 %v5546_v32, %v5474_v24  ;;  %v10035_v52 = vand.u32 4294901760, %v9734_v9  ;;  %v9752_v24 = vand.u32 4294901760, %v5768_v62  ;;  %vm5647_vm13 = vmor %vm5645_vm12, %vm5646_vm11 }
 0xd79   : > { %v5674_v55 = vadd.f32 -1.4531521, %v5670_v16  ;;  %v5642_v34 = vsub.f32 1.0, %v5641_v33  ;;  %v9748_v48 = vsub.f32 %v5769_v19, %v9737_v3  ;;  %6183 = vmatpush.msrb.mxu2 %v9737_v3  ;;  %v5714_v33 = vmul.f32 1.442695, %v5710_v46 }
 0xd7a   : > { %v9741_v35 = vadd.f32 1.0, %v5603_v10  ;;  %v9744_v60 = vadd.f32 %v5587_v21, %v5547_v2  ;;  %v6276_v44 = vsub.f32 %v9734_v9, %v10035_v52  ;;  %v5652_v32 = vor.u32 1.1754944e-38, %v5651_v1  ;;  %v5767_v2 = vld [vmem:[#allocation13 + $0x88] sm:$0xff] }
 0xd7b   : > { %v5678_v36 = vmul.f32 %v5674_v55, %v9718_v57  ;;  %v5643_v16 = vmul.f32 %v6911_v4, %v5642_v34  ;;  %6185 = vmatpush.msrb.mxu2 %v9752_v24  ;;  %v5708_v55 = vsub.f32 0.0, %v9641_v8  ;;  %v10037_v46 = vand.u32 4294901760, %v9748_v48 }
 0xd7c   : > { %6912 = vrcp.f32 %v9741_v35  ;;  %v9757_v29 = vmul.f32 0.70710677, %v9744_v60  ;;  %v6277_v21 = vand.u32 4294901760, %v6276_v44  ;;  %v9775_v1 = vsub.f32 %v5768_v62, %v9752_v24 }
 0xd7d   : > { %v5682_v50 = vadd.f32 1.4214138, %v5678_v36  ;;  %v5644_v10 = vadd.f32 %v6911_v4, %v5643_v16  ;;  %6914 = vpow2.f32 %v5714_v33  ;;  %v9779_v38 = vand.u32 4294901760, %v5767_v2 }
 0xd7e   : > { %v9767_v42 = vand.u32 2147483647, %v9757_v29  ;;  %10094 = vst [vmem:[#allocation30_spill] sm:$0xff] %v9775_v1  ;;  %6278 = vmatpush.msrb.mxu3 %v6277_v21  ;;  %v5636_v62 = vand.u32 2147483648, %v9741_v35  ;;  %v10043_v33 = vand.u32 4294901760, %v9775_v1  ;;  %vm5630_vm0 = vweird.f32 %v9741_v35 }
 0xd7f   : > { %v5686_v19 = vmul.f32 %v5682_v50, %v9718_v57  ;;  %v5648_v34 = vsel %vm5647_vm13, %v6911_v4, %v5644_v10  ;;  %v6282_v50 = vsub.f32 %v9748_v48, %v10037_v46  ;;  %v5766_v10 = vld [vmem:[#allocation13 + $0x80] sm:$0xff]  ;;  %6187 = vmatpush.msrb.mxu2 %v9779_v38  ;;  %v9790_v53 = vsub.f32 %v5767_v2, %v9779_v38 }
 0xd80   : > { %v9769_v16 = vsel %vm5650_vm14, %v5652_v32, %v5648_v34  ;;  %v5605_v4 = vmul.f32 0.3275911, %v9767_v42  ;;  %v6288_v2 = vsub.f32 %v9775_v1, %v10043_v33  ;;  %vm5731_vm8 = vcmp.ge.f32.partialorder %v9708_v14, 0.0 }
 0xd81   : > { %v5690_v36 = vadd.f32 -0.28449672, %v5686_v19  ;;  %v5672_v23 = vmul.f32 1.0614054, %v9769_v16  ;;  %v5712_v19 = vmul.f32 %v5708_v55, %v9641_v8  ;;  %v6283_v34 = vand.u32 4294901760, %v6282_v50  ;;  %10095 = vst [vmem:[#allocation31_spill] sm:$0xff] %v9790_v53 }
 0xd82   : > { %v6913_v52 = vpop.eup %6912  ;;  %v9785_v49 = vadd.f32 1.0, %v5605_v4  ;;  %v5634_v50 = vand.u32 2147483647, %v9741_v35  ;;  %vm5733_vm10 = vcmp.ge.f32.partialorder %v9757_v29, 0.0  ;;  %v10106_v29 = vand.u32 4294901760, %v9685_v28 }
 0xd83   : > { %v5694_v44 = vmul.f32 %v5690_v36, %v9718_v57  ;;  %v5626_v32 = vmul.f32 %v6913_v52, %v9741_v35  ;;  %v5676_v46 = vadd.f32 -1.4531521, %v5672_v23  ;;  %6284 = vmatpush.msrb.mxu3 %v6283_v34  ;;  %v9792_v36 = vand.u32 4294901760, %v5766_v10  ;;  %v6915_v4 = vpop.eup %6914 }
 0xd84   : > { %6916 = vrcp.f32 %v9785_v49  ;;  %vm5631_vm15 = vweird.f32 %v6913_v52  ;;  %v10044_v34 = vand.u32 4294901760, %v9790_v53  ;;  %vm5635_vm9 = vcmp.eq.f32.partialorder %v5634_v50, 8.507059e+37 }
 0xd85   : > { %v5698_v21 = vadd.f32 0.2548296, %v5694_v44  ;;  %v5627_v39 = vsub.f32 1.0, %v5626_v32  ;;  %v5680_v8 = vmul.f32 %v5676_v46, %v9769_v16  ;;  %6189 = vmatpush.msrb.mxu2 %v9792_v36  ;;  %v5718_v32 = vmul.f32 1.442695, %v5712_v19  ;;  %vm5632_vm7 = vmor %vm5630_vm0, %vm5631_vm15 }
 0xd86   : > { %v9809_v19 = vsub.f32 %v5766_v10, %v9792_v36  ;;  %vm5660_vm3 = vweird.f32 %v9785_v49 }
 0xd87   : > { %v5702_v23 = vmul.f32 %v5698_v21, %v9718_v57  ;;  %v5628_v55 = vmul.f32 %v6913_v52, %v5627_v39  ;;  %v5684_v44 = vadd.f32 1.4214138, %v5680_v8  ;;  %v5637_v57 = vor.u32 1.1754944e-38, %v5636_v62 }
 0xd88   : > { %v6289_v21 = vand.u32 4294901760, %v6288_v2  ;;  %v6294_v8 = vsub.f32 %v9790_v53, %v10044_v34  ;;  %6918 = vpow2.f32 %v5718_v32 }
 0xd89   : > { %v5722_v46 = vmul.f32 %v6915_v4, %v5702_v23  ;;  %v5629_v43 = vadd.f32 %v6913_v52, %v5628_v55  ;;  %v5688_v39 = vmul.f32 %v5684_v44, %v9769_v16  ;;  %v5707_v23 = vsub.f32 0.0, %v9721_v5 }
 0xd8a   : > { %v6917_v55 = vpop.eup %6916  ;;  %6290 = vmatpush.msrb.mxu3 %v6289_v21  ;;  %v6295_v62 = vand.u32 4294901760, %v6294_v8  ;;  %v6299_v44 = vand.u32 4294901760, %v9809_v19  ;;  %v5666_v8 = vand.u32 2147483648, %v9785_v49 }
 0xd8b   : > { %v5726_v15 = vsub.f32 1.0, %v5722_v46  ;;  %v5633_v33 = vsel %vm5632_vm7, %v6913_v52, %v5629_v43  ;;  %v5692_v4 = vadd.f32 -0.28449672, %v5688_v39  ;;  %v5656_v10 = vmul.f32 %v6917_v55, %v9785_v49 }
 0xd8c   : > { %v9812_v35 = vsel %vm5635_vm9, %v5637_v57, %v5633_v33  ;;  %v5590_v46 = vmul.f32 0.5, %v9530_v0  ;;  %6296 = vmatpush.msrb.mxu3 %v6295_v62  ;;  %v6300_v52 = vsub.f32 %v9809_v19, %v6299_v44  ;;  %v5711_v57 = vmul.f32 %v5707_v23, %v9721_v5 }
 0xd8d   : > { %v5734_v2 = vsub.f32 0.0, %v5726_v15  ;;  %v5671_v34 = vmul.f32 1.0614054, %v9812_v35  ;;  %v5696_v43 = vmul.f32 %v5692_v4, %v9769_v16  ;;  %v5657_v32 = vsub.f32 1.0, %v5656_v10 }
 0xd8e   : > { %v6301_v53 = vand.u32 4294901760, %v6300_v52  ;;  %vm5661_vm2 = vweird.f32 %v6917_v55  ;;  %v5664_v4 = vand.u32 2147483647, %v9785_v49  ;;  %v5716_v10 = vmul.f32 1.442695, %v5711_v57 }
 0xd8f   : > { %v5738_v33 = vsel %vm5730_vm1, %v5726_v15, %v5734_v2  ;;  %v5675_v50 = vadd.f32 -1.4531521, %v5671_v34  ;;  %v5700_v21 = vadd.f32 0.2548296, %v5696_v43  ;;  %v5658_v58 = vmul.f32 %v6917_v55, %v5657_v32  ;;  %v6919_v15 = vpop.eup %6918  ;;  %vm5662_vm4 = vmor %vm5660_vm3, %vm5661_vm2 }
 0xd90   : > { %v5742_v39 = vadd.f32 1.0, %v5738_v33  ;;  %6302 = vmatpush.msrb.mxu3 %v6301_v53  ;;  %v5667_v43 = vor.u32 1.1754944e-38, %v5666_v8  ;;  %vm5665_vm5 = vcmp.eq.f32.partialorder %v5664_v4, 8.507059e+37  ;;  %v5709_v53 = vsub.f32 0.0, %v9767_v42 }
 0xd91   : > { %v5679_v0 = vmul.f32 %v5675_v50, %v9812_v35  ;;  %v5704_v1 = vmul.f32 %v5700_v21, %v9769_v16  ;;  %v5659_v2 = vadd.f32 %v6917_v55, %v5658_v58  ;;  %6920 = vpow2.f32 %v5716_v10 }
 0xd92   : > { %v5746_v62 = vmul.f32 %v5742_v39, %v5590_v46  ;;  %v10096_v21 = vand.u32 4294901760, %v9516_v26  ;;  %v5592_v4 = vmul.f32 0.5, %v9611_v11 }
 0xd93   : > { %v5683_v34 = vadd.f32 1.4214138, %v5679_v0  ;;  %v5724_v23 = vmul.f32 %v6919_v15, %v5704_v1  ;;  %v5663_v33 = vsel %vm5662_vm4, %v6917_v55, %v5659_v2  ;;  %v5713_v0 = vmul.f32 %v5709_v53, %v9767_v42 }
 0xd94   : > { %v9829_v5 = vand.u32 4294901760, %v5746_v62  ;;  %v9833_v16 = vsel %vm5665_vm5, %v5667_v43, %v5663_v33  ;;  %v10097_v2 = vand.u32 4294901760, %v9525_v41 }
 0xd95   : > { %v5687_v52 = vmul.f32 %v5683_v34, %v9812_v35  ;;  %v5728_v50 = vsub.f32 1.0, %v5724_v23  ;;  %v5673_v32 = vmul.f32 1.0614054, %v9833_v16  ;;  %v5720_v43 = vmul.f32 1.442695, %v5713_v0 }
 0xd96   : > { %v5819_v46 = vsub.f32 %v5746_v62, %v9829_v5  ;;  %5932 = vmatmul.f32.vlgmr.msrb.gmra.mxu1 %v9829_v5 }
 0xd97   : > { %v5691_v49 = vadd.f32 -0.28449672, %v5687_v52  ;;  %6372 = vmatpush.msrb.mxu1 %v9506_v31  ;;  %v5736_v1 = vsub.f32 0.0, %v5728_v50  ;;  %v5677_v39 = vadd.f32 -1.4531521, %v5673_v32  ;;  %v6921_v11 = vpop.eup %6920  ;;  %v10098_v52 = vand.u32 4294901760, %v9542_v63 }
 0xd98   : > { %5990 = vmatmul.f32.vlgmr.msra.gmra.mxu2 %v5819_v46  ;;  %v5820_v57 = vand.u32 4294901760, %v5819_v46  ;;  %6922 = vpow2.f32 %v5720_v43 }
 0xd99   : > { %v5695_v55 = vmul.f32 %v5691_v49, %v9812_v35  ;;  %6374 = vmatpush.msrb.mxu1 %v9518_v30  ;;  %6419 = vmatpush.msra.mxu2 %v10096_v21  ;;  %v5740_v8 = vsel %vm5732_vm6, %v5728_v50, %v5736_v1  ;;  %v5681_v34 = vmul.f32 %v5677_v39, %v9833_v16  ;;  %v10102_v21 = vand.u32 4294901760, %v9621_v17 }
 0xd9a   : > { %6034 = vmatmul.f32.vlgmr.msra.gmra.mxu3 %v5820_v57  ;;  %v5821_v58 = vsub.f32 %v5819_v46, %v5820_v57  ;;  %v5744_v62 = vadd.f32 1.0, %v5740_v8 }
 0xd9b   : > { %v5699_v15 = vadd.f32 0.2548296, %v5695_v55  ;;  %6376 = vmatpush.msrb.mxu1 %v9527_v51  ;;  %6490 = vmatpush.msra.mxu3 %v9506_v31  ;;  %v5685_v42 = vadd.f32 1.4214138, %v5681_v34 }
 0xd9c   : > { %v5822_v47 = vand.u32 4294901760, %v5821_v58  ;;  %6423 = vmatpush.msra.mxu2 %v10097_v2  ;;  %v5748_v23 = vmul.f32 %v5744_v62, %v5592_v4  ;;  %v5593_v58 = vmul.f32 0.5, %v9744_v60  ;;  %v10110_v62 = vand.u32 4294901760, %v9748_v48 }
 0xd9d   : > { %v5703_v10 = vmul.f32 %v5699_v15, %v9812_v35  ;;  %6378 = vmatpush.msrb.mxu1 %v9544_v12  ;;  %6492 = vmatpush.msra.mxu3 %v9518_v30  ;;  %v5689_v31 = vmul.f32 %v5685_v42, %v9833_v16  ;;  %v10099_v35 = vand.u32 4294901760, %v9559_v45  ;;  %v6865_v15 = vld [vmem:[%s10113_s28] ss:$0 sm:$0xff] }
 0xd9e   : > { %5823 = vmatmul.f32.vlgmr.msrb.gmra.mxu0 %v5822_v47  ;;  %6427 = vmatpush.msra.mxu2 %v10098_v52  ;;  %v9857_v46 = vand.u32 4294901760, %v5748_v23  ;;  %v6923_v55 = vpop.eup %6922 }
 0xd9f   : > { %v5723_v33 = vmul.f32 %v6921_v11, %v5703_v10  ;;  %6314 = vmatpush.msrb.mxu0 %v9516_v26  ;;  %6380 = vmatpush.msrb.mxu1 %v9566_v25  ;;  %v5693_v50 = vadd.f32 -0.28449672, %v5689_v31 }
 0xda0   : > { %6494 = vmatpush.msra.mxu3 %v9527_v51  ;;  %6431 = vmatpush.msra.mxu2 %v10099_v35  ;;  %v5827_v53 = vsub.f32 %v5748_v23, %v9857_v46 }
 0xda1   : > { %v5727_v30 = vsub.f32 1.0, %v5723_v33  ;;  %5936 = vmatmul.f32.gmra.mxu1 %v9857_v46  ;;  %6317 = vmatpush.msrb.mxu0 %v9525_v41  ;;  %v5697_v49 = vmul.f32 %v5693_v50, %v9833_v16 }
 0xda2   : > { %6382 = vmatpush.msrb.mxu1 %v9575_v54  ;;  %6496 = vmatpush.msra.mxu3 %v9544_v12  ;;  %v5828_v51 = vand.u32 4294901760, %v5827_v53  ;;  %v5591_v12 = vmul.f32 0.5, %v9695_v61 }
 0xda3   : > { %v5735_v26 = vsub.f32 0.0, %v5727_v30  ;;  %5995 = vmatmul.f32.gmra.mxu2 %v5827_v53  ;;  %6320 = vmatpush.msrb.mxu0 %v9542_v63  ;;  %v5701_v41 = vadd.f32 0.2548296, %v5697_v49 }
 0xda4   : > { %6384 = vmatpush.msrb.mxu1 %v9602_v40  ;;  %6498 = vmatpush.msra.mxu3 %v9566_v25  ;;  %v5829_v1 = vsub.f32 %v5827_v53, %v5828_v51  ;;  %v10100_v25 = vand.u32 4294901760, %v9580_v37 }
 0xda5   : > { %v5739_v32 = vsel %vm5731_vm8, %v5727_v30, %v5735_v26  ;;  %6040 = vmatmul.f32.gmra.mxu3 %v5828_v51  ;;  %6323 = vmatpush.msrb.mxu0 %v9559_v45  ;;  %v5705_v63 = vmul.f32 %v5701_v41, %v9833_v16 }
 0xda6   : > { %v5743_v57 = vadd.f32 1.0, %v5739_v32  ;;  %6386 = vmatpush.msrb.mxu1 %v9607_v22  ;;  %6500 = vmatpush.msra.mxu3 %v9575_v54  ;;  %v5830_v14 = vand.u32 4294901760, %v5829_v1 }
 0xda7   : > { %6326 = vmatpush.msrb.mxu0 %v9580_v37  ;;  %6435 = vmatpush.msra.mxu2 %v10100_v25  ;;  %v5725_v45 = vmul.f32 %v6923_v55, %v5705_v63  ;;  %v10101_v37 = vand.u32 4294901760, %v9590_v27 }
 0xda8   : > { %v5747_v39 = vmul.f32 %v5743_v57, %v5591_v12  ;;  %6388 = vmatpush.msrb.mxu1 %v9635_v18  ;;  %6502 = vmatpush.msra.mxu3 %v9602_v40 }
 0xda9   : > { %5831 = vmatmul.f32.gmra.mxu0 %v5830_v14  ;;  %6150 = vmatmul.f32.vlgmr.msra.gmra.mxu1 %v9829_v5  ;;  %v5729_v54 = vsub.f32 1.0, %v5725_v45 }
 0xdaa   : > { %v9885_v61 = vand.u32 4294901760, %v5747_v39  ;;  %6329 = vmatpush.msrb.mxu0 %v9590_v27  ;;  %6390 = vmatpush.msrb.mxu1 %v9644_v13 }
 0xdab   : > { %6504 = vmatpush.msra.mxu3 %v9607_v22  ;;  %6439 = vmatpush.msra.mxu2 %v10101_v37  ;;  %v5737_v40 = vsub.f32 0.0, %v5729_v54  ;;  %v10103_v22 = vand.u32 4294901760, %v9633_v59 }
 0xdac   : > { %v6191_v16 = vsub.f32 %v5747_v39, %v9885_v61  ;;  %6332 = vmatpush.msrb.mxu0 %v9621_v17  ;;  %6392 = vmatpush.msrb.mxu1 %v9646_v7 }
 0xdad   : > { %6304 = vmatmul.f32.vlgmr.msrb.gmra.mxu3 %v9885_v61  ;;  %6443 = vmatpush.msra.mxu2 %v10102_v21  ;;  %v5741_v27 = vsel %vm5733_vm10, %v5729_v54, %v5737_v40 }
 0xdae   : > { %v6192_v8 = vand.u32 4294901760, %v6191_v16  ;;  %6506 = vmatpush.msra.mxu3 %v9635_v18  ;;  %6335 = vmatpush.msrb.mxu0 %v9633_v59  ;;  %v5745_v4 = vadd.f32 1.0, %v5741_v27  ;;  %v10104_v59 = vand.u32 4294901760, %v9655_v20  ;;  %v10115_v27 = vld [vmem:[#allocation28_spill] sm:$0xff] }
 0xdaf   : > { %6394 = vmatpush.msrb.mxu1 %v9723_v6  ;;  %6447 = vmatpush.msra.mxu2 %v10103_v22 }
 0xdb0   : > { %v6193_v0 = vsub.f32 %v6191_v16, %v6192_v8  ;;  %6508 = vmatpush.msra.mxu3 %v9644_v13  ;;  %6338 = vmatpush.msrb.mxu0 %v9655_v20  ;;  %v5749_v18 = vmul.f32 %v5745_v4, %v5593_v58 }
 0xdb1   : > { %6109 = vmatmul.f32.vlgmr.msra.gmra.mxu0 %v9829_v5  ;;  %6154 = vmatmul.f32.gmra.mxu1 %v9857_v46 }
 0xdb2   : > { %v6194_v17 = vand.u32 4294901760, %v6193_v0  ;;  %6396 = vmatpush.msrb.mxu1 %v9737_v3  ;;  %6510 = vmatpush.msra.mxu3 %v9646_v7  ;;  %v6198_v60 = vand.u32 4294901760, %v5749_v18  ;;  %v10105_v7 = vand.u32 4294901760, %v9679_v56 }
 0xdb3   : > { %6341 = vmatpush.msrb.mxu0 %v9679_v56  ;;  %6451 = vmatpush.msra.mxu2 %v10104_v59  ;;  %v10108_v56 = vand.u32 4294901760, %v9734_v9 }
 0xdb4   : > { %6398 = vmatpush.msrb.mxu1 %v9752_v24  ;;  %6512 = vmatpush.msra.mxu3 %v9723_v6  ;;  %v6199_v13 = vsub.f32 %v5749_v18, %v6198_v60 }
 0xdb5   : > { %6195 = vmatmul.f32.vlgmr.msrb.gmra.mxu2 %v6194_v17  ;;  %6344 = vmatpush.msrb.mxu0 %v9685_v28 }
 0xdb6   : > { %6308 = vmatmul.f32.gmra.mxu3 %v6198_v60  ;;  %6400 = vmatpush.msrb.mxu1 %v9779_v38  ;;  %v6200_v20 = vand.u32 4294901760, %v6199_v13 }
 0xdb7   : > { %6514 = vmatpush.msra.mxu3 %v9737_v3  ;;  %6347 = vmatpush.msrb.mxu0 %v9734_v9  ;;  %v10107_v3 = vld [vmem:[#allocation30_spill] sm:$0xff] }
 0xdb8   : > { %6402 = vmatpush.msrb.mxu1 %v9792_v36  ;;  %6455 = vmatpush.msra.mxu2 %v10105_v7  ;;  %v6201_v6 = vsub.f32 %v6199_v13, %v6200_v20  ;;  %v10111_v28 = vand.u32 4294901760, %v10107_v3 }
 0xdb9   : > { %6516 = vmatpush.msra.mxu3 %v9752_v24  ;;  %6113 = vmatmul.f32.gmra.mxu0 %v9857_v46  ;;  %v10109_v24 = vld [vmem:[#allocation31_spill] sm:$0xff] }
 0xdba   : > { %6406 = vmatmul.f32.vlgmr.msrb.gmra.mxu1 %v6192_v8  ;;  %6350 = vmatpush.msrb.mxu0 %v9748_v48  ;;  %v6202_v5 = vand.u32 4294901760, %v6201_v6  ;;  %v10112_v9 = vand.u32 4294901760, %v10109_v24 }
 0xdbb   : > { %6459 = vmatpush.msra.mxu2 %v10106_v29  ;;  %6518 = vmatpush.msra.mxu3 %v9779_v38 }
 0xdbc   : > { %6353 = vmatpush.msrb.mxu0 %v10107_v3 }
 0xdbd   : > { %6463 = vmatpush.msra.mxu2 %v10108_v56  ;;  %6520 = vmatpush.msra.mxu3 %v9792_v36 }
 0xdbe   : > { %6203 = vmatmul.f32.gmra.mxu2 %v6202_v5  ;;  %6522 = vmatmul.f32.vlgmr.msra.gmra.mxu3 %v9885_v61 }
 0xdbf   : > { %6356 = vmatpush.msrb.mxu0 %v10109_v24  ;;  %6467 = vmatpush.msra.mxu2 %v10110_v62 }
 0xdc1   : > { %6359 = vmatpush.msrb.mxu0 %v9809_v19  ;;  %6471 = vmatpush.msra.mxu2 %v10111_v28 }
 0xdc2   : > { %6362 = vmatmul.f32.vlgmr.msrb.gmra.mxu0 %v6191_v16  ;;  %6412 = vmatmul.f32.gmra.mxu1 %v6200_v20 }
 0xdc3   : > { %6475 = vmatpush.msra.mxu2 %v10112_v9 }
 0xdc5   : > { %6479 = vmatpush.msra.mxu2 %v6299_v44 }
 0xdc6   : > { %6481 = vmatmul.f32.vlgmr.msra.gmra.mxu2 %v9885_v61  ;;  %6526 = vmatmul.f32.gmra.mxu3 %v6198_v60 }
 0xdca   : > { %6367 = vmatmul.f32.gmra.mxu0 %v6199_v13 }
 0xdce   : > { %6485 = vmatmul.f32.gmra.mxu2 %v6198_v60  ;;  %v10118_v60 = vld [vmem:[#allocation29_spill] sm:$0xff] }
 0xe13   : > { %v5933_v38 = vpop.f32.mrf.mxu1 }
 0xe1b   : > { %v5824_v48 = vpop.f32.mrf.mxu0  ;;  %v5991_v34 = vpop.f32.mrf.mxu2 }
 0xe1c   : > { %v5825_v23 = vadd.f32 %v6865_v15, %v5824_v48 }
 0xe1d   : > { %v6035_v36 = vpop.f32.mrf.mxu3 }
 0xe1e   : > { %v5937_v2 = vpop.f32.mrf.mxu1  ;;  %v5934_v42 = vadd.f32 %v5933_v38, %v5825_v23 }
 0xe20   : > { %v5992_v43 = vadd.f32 %v5991_v34, %v5934_v42 }
 0xe22   : > { %v6036_v31 = vadd.f32 %v6035_v36, %v5992_v43 }
 0xe26   : > { %v5832_v47 = vpop.f32.mrf.mxu0  ;;  %v5996_v44 = vpop.f32.mrf.mxu2 }
 0xe27   : > { %v6151_v11 = vpop.f32.mrf.mxu1  ;;  %v5833_v52 = vadd.f32 %v6865_v15, %v5832_v47 }
 0xe28   : > { %v6041_v10 = vpop.f32.mrf.mxu3 }
 0xe29   : > { %v5938_v46 = vadd.f32 %v5937_v2, %v5833_v52 }
 0xe2b   : > { %v5997_v53 = vadd.f32 %v5996_v44, %v5938_v46 }
 0xe2d   : > { %v6042_v51 = vadd.f32 %v6041_v10, %v5997_v53 }
 0xe2e   : > { %v6110_v19 = vpop.f32.mrf.mxu0 }
 0xe2f   : > { %v6111_v30 = vadd.f32 %v6110_v19, %v6036_v31  ;;  %v6155_v26 = vpop.f32.mrf.mxu1 }
 0xe30   : > { %v6305_v33 = vpop.f32.mrf.mxu3 }
 0xe31   : > { %v6152_v49 = vadd.f32 %v6151_v11, %v6111_v30 }
 0xe36   : > { %v6114_v35 = vpop.f32.mrf.mxu0 }
 0xe37   : > { %v6115_v12 = vadd.f32 %v6114_v35, %v6042_v51  ;;  %v6407_v55 = vpop.f32.mrf.mxu1 }
 0xe38   : > { %v6196_v50 = vpop.f32.mrf.mxu2 }
 0xe39   : > { %v6197_v32 = vadd.f32 %v6196_v50, %v6152_v49  ;;  %v6309_v41 = vpop.f32.mrf.mxu3  ;;  %v6156_v25 = vadd.f32 %v6155_v26, %v6115_v12 }
 0xe3b   : > { %v6306_v63 = vadd.f32 %v6305_v33, %v6197_v32 }
 0xe3f   : > { %v6363_v1 = vpop.f32.mrf.mxu0  ;;  %v6413_v0 = vpop.f32.mrf.mxu1 }
 0xe40   : > { %v6364_v14 = vadd.f32 %v6363_v1, %v6306_v63 }
 0xe41   : > { %v6204_v57 = vpop.f32.mrf.mxu2  ;;  %v6523_v45 = vpop.f32.mrf.mxu3 }
 0xe42   : > { %v6205_v39 = vadd.f32 %v6204_v57, %v6156_v25  ;;  %v6408_v61 = vadd.f32 %v6407_v55, %v6364_v14 }
 0xe44   : > { %v6310_v16 = vadd.f32 %v6309_v41, %v6205_v39 }
 0xe47   : > { %v6368_v54 = vpop.f32.mrf.mxu0 }
 0xe48   : > { %v6369_v21 = vadd.f32 %v6368_v54, %v6310_v16 }
 0xe49   : > { %v6482_v37 = vpop.f32.mrf.mxu2  ;;  %v6527_v18 = vpop.f32.mrf.mxu3 }
 0xe4a   : > { %v6483_v40 = vadd.f32 %v6482_v37, %v6408_v61  ;;  %v6414_v58 = vadd.f32 %v6413_v0, %v6369_v21 }
 0xe4c   : > { %v6524_v8 = vadd.f32 %v6523_v45, %v6483_v40 }
 0xe4e   : > { %v6530_v22 = vadd.f32 %v6524_v8, %v10115_v27 }
 0xe50   : > { %6532 = vst [vmem:[%s735_s25] sm:$0xff] %v6530_v22 }
 0xe51   : > { %v6486_v4 = vpop.f32.mrf.mxu2 }
 0xe52   : > { %v6487_v17 = vadd.f32 %v6486_v4, %v6414_v58 }
 0xe54   : > { %v6528_v59 = vadd.f32 %v6527_v18, %v6487_v17 }
 0xe56   : > { %v6531_v13 = vadd.f32 %v6528_v59, %v10118_v60 }
 0xe58   : > { %6533 = vst [vmem:[%s735_s25 + $0x8] sm:$0xff] %v6531_v13 }
 0xe59   : > { %7163 = shalt.err (!%p7160_p8)
}
 0xe5a   : > { %s7232_s0 = smov 128   ;;  %s7233_s27 = smov 8  }
 0xe5b   : > { %6761 = dma.vmem_to_hbm [thread:$0]  (%p7372_p5), %s6548_s22, 256, %s6550_s15, %s6535_s1, %s7232_s0, %s7232_s0, %s7233_s27  }
 0xe5c PF: > { %s10119_s5 = sld [smem:[#allocation23_spill]] }
 0xe5d   : > { %s10120_s25 = sld [smem:[#allocation20_spill]] }
 0xe62   : > { %p6803_p9 = scmp.ge.s32.totalorder %s10119_s5, 2 }
 0xe63   : > { %s6564_s9 = sand.u32 1, %s10120_s25  }
 0xe64   : > { %p6786_p10 = pnand %p6803_p9, %p7376_p6  ;;  %s6565_s20 = scalar_lea.sflag [#allocation4], %s6564_s9 }
 0xe66   : > { %p6787_p11 = pneg %p6786_p10 }
 0xe68   : > { %7197 = dma.done.wait (%p6787_p11), %s6565_s20, 256  }
 0xe69   : > { %7199 = vsyncadd (%p6787_p11), %s6565_s20, 4294967040  ;;  %s10122_s21 = sld [smem:[#allocation24_spill]] }
 0xe6a   : > { %s10123_s0 = sld [smem:[#allocation21_spill]] }
 0xe6b   : > { %s10124_s30 = sld [smem:[#allocation22_spill]] }
 0xe6c   : > { %s10125_s20 = sld [smem:[#allocation25_spill]] }
 0xe6f   : > { %p33_p12 = scmp.ge.s32.totalorder %s10122_s21, 4  }
 0xe71   :  { %35 = sbr.rel (!%p33_p12) target bundleno = 17 (0x11), region = 166 }
 0xe76   :  { %6571 = vsyncpa [#allocation3], 1 }
 0xe77   :  { %6573 = vsyncpa [#allocation3 + $0x1], 1 }
 0xe78   :  { %6574 = vsyncpa [#allocation6], 1 }
 0xe79   :  { %6575 = vsyncpa [#allocation9], 1 }
 0xe7a   :  { %6576 = vsyncpa [#allocation12], 1 }
 0xe7b   :  { %6577 = vsyncpa [#allocation4], 1 }
 0xe7c   :  { %6579 = vsyncpa [#allocation4 + $0x1], 1 }

</bundles_post_ra>
